<compile_context>
chip_gen: v7x
topology: tpu7x:2x2x1
jax: 0.10.0
libtpu: 0.0.40
codegen_flags: <defaults>
</compile_context>

<pallas_src>
import functools
import math

import jax
import jax.numpy as jnp
from jax.experimental import pallas as pl
from jax.experimental.pallas import tpu as pltpu

# ----- small synthetic BERT config -----
VOCAB = 64
HIDDEN = 32
NUM_HEADS = 4
HEAD_DIM = HIDDEN // NUM_HEADS
NUM_LAYERS = 2
INTERMEDIATE = 64
MAX_POS = 16
TYPE_VOCAB = 2
NUM_LABELS = 2
LN_EPS = 1e-12


# ----------------------------- in-kernel helpers ----------------------------
def _ln(x, g, b, eps):
    mean = jnp.mean(x, axis=-1, keepdims=True)
    cen = x - mean
    var = jnp.mean(cen * cen, axis=-1, keepdims=True)
    return cen * jax.lax.rsqrt(var + eps) * g + b


# ----------------------------- fused encoder kernel -------------------------
def _bert_encoder_kernel(emb_ref, mask_ref, emb_g_ref, emb_b_ref,
                         qkv_w_ref, qkv_b_ref, o_w_ref, o_b_ref,
                         ln1_g_ref, ln1_b_ref, i_w_ref, i_b_ref,
                         f_w_ref, f_b_ref, ln2_g_ref, ln2_b_ref,
                         o_ref, attn_ref,
                         *, num_layers, num_heads, head_dim, batch, seq, eps):
    """Embedding LayerNorm + all encoder layers for the whole (B*S, H) slab."""
    H = num_heads * head_dim
    scale = 1.0 / math.sqrt(head_dim)

    # --- embedding LayerNorm (no zeros residual materialized) ---------------
    x = _ln(emb_ref[...], emb_g_ref[...], emb_b_ref[...], eps)      # (B*S, H) f32

    for l in range(num_layers):                                     # static unroll
        # --- fused QKV projection for the whole slab: one MXU push ----------
        qkv = jnp.dot(x.astype(jnp.bfloat16), qkv_w_ref[l],
                      preferred_element_type=jnp.float32) + qkv_b_ref[l]   # (B*S, 3H)

        o_w = o_w_ref[l]                                             # (H, H) f32

        # --- multi-head self-attention, per sequence (static row slices) ----
        for b in range(batch):
            r0 = b * seq
            qkv_b = qkv[r0:r0 + seq]                                 # (S, 3H)
            # mask broadcast hoisted out of the head loop
            mask_b = jnp.broadcast_to(mask_ref[b], (seq, seq))       # (S, S)
            # K transposed ONCE per sequence, sliced per head by rows below
            kT = qkv_b[:, H:2 * H].T.astype(jnp.bfloat16)            # (H, S)

            acc = jnp.zeros((seq, H), jnp.float32)
            for h in range(num_heads):                               # static unroll
                lo = h * head_dim
                qh = qkv_b[:, lo:lo + head_dim].astype(jnp.bfloat16)           # (S, d)
                khT = kT[lo:lo + head_dim, :]                                   # (d, S)
                vh = qkv_b[:, 2 * H + lo:2 * H + lo + head_dim].astype(jnp.bfloat16)
                s = jnp.dot(qh, khT, preferred_element_type=jnp.float32) * scale + mask_b
                s = s - jnp.max(s, axis=-1, keepdims=True)
                p = jnp.exp(s)
                p = p * pl.reciprocal(jnp.sum(p, axis=-1, keepdims=True), approx=True)
                ctx = jnp.dot(p.astype(jnp.bfloat16), vh,
                              preferred_element_type=jnp.float32)               # (S, d)
                # concat-then-project == sum_h ctx_h @ o_w[h*d:(h+1)*d, :]
                acc = acc + jnp.dot(ctx.astype(jnp.bfloat16),
                                    o_w[lo:lo + head_dim, :].astype(jnp.bfloat16),
                                    preferred_element_type=jnp.float32)
            attn_ref[r0:r0 + seq, :] = acc

        attn = attn_ref[...] + o_b_ref[l]                            # (B*S, H)

        # --- residual + LN1 --------------------------------------------------
        x = _ln(attn + x, ln1_g_ref[l], ln1_b_ref[l], eps)

        # --- feed-forward -----------------------------------------------------
        ff = jnp.dot(x.astype(jnp.bfloat16), i_w_ref[l],
                     preferred_element_type=jnp.float32) + i_b_ref[l]
        # TODO(synk): HF BERT uses exact erf-GELU; tanh-approx used for safe Mosaic lowering.
        ff = jax.nn.gelu(ff, approximate=True)
        ff = jnp.dot(ff.astype(jnp.bfloat16), f_w_ref[l],
                     preferred_element_type=jnp.float32) + f_b_ref[l]

        # --- residual + LN2 ---------------------------------------------------
        x = _ln(ff + x, ln2_g_ref[l], ln2_b_ref[l], eps)

    # NOTE: output last dim is H=32 (<128 lanes) -> masked stores; negligible
    # at this size, pad/reshape to a lane-dense slab if scaled up (v5e note).
    o_ref[...] = x.astype(o_ref.dtype)


def bert_encoder(emb, ext_mask, params):
    """Single fused pallas_call: embedding LN + all encoder layers.

    emb:      (B*S, H) f32 pre-LN embedding sum
    ext_mask: (B, 1, S) f32 additive attention mask
    """
    BS, H = emb.shape
    B = ext_mask.shape[0]
    S = BS // B

    operands = [
        emb, ext_mask, params["emb_ln_g"], params["emb_ln_b"],
        params["qkv_w"], params["qkv_b"], params["o_w"], params["o_b"],
        params["ln1_g"], params["ln1_b"], params["i_w"], params["i_b"],
        params["f_w"], params["f_b"], params["ln2_g"], params["ln2_b"],
    ]

    def _full_spec(x):
        nd = x.ndim
        return pl.BlockSpec(x.shape, lambda *_: (0,) * nd)

    kernel = functools.partial(
        _bert_encoder_kernel,
        num_layers=NUM_LAYERS, num_heads=NUM_HEADS, head_dim=HEAD_DIM,
        batch=B, seq=S, eps=LN_EPS)

    return pl.pallas_call(
        kernel,
        out_shape=jax.ShapeDtypeStruct((BS, H), jnp.float32),
        in_specs=[_full_spec(op) for op in operands],
        out_specs=_full_spec(emb),
        scratch_shapes=[pltpu.VMEM((BS, H), jnp.float32)],   # attention-out slab
        compiler_params=pltpu.CompilerParams(
            # explicit scoped-VMEM budget (v5e default is only 16 MiB; fine
            # headroom on v6e/v7x too -- everything here is a few tens of KiB).
            vmem_limit_bytes=32 * 1024 * 1024),
    )(*operands)


# ---------------------------- parameter init --------------------------------
def init_bert_params(key):
    def dense(k, fan_in, fan_out):
        return 0.02 * jax.random.normal(k, (fan_in, fan_out), jnp.float32)

    keys = jax.random.split(key, 8 + NUM_LAYERS)
    params = {
        "word_emb": 0.02 * jax.random.normal(keys[0], (VOCAB, HIDDEN), jnp.float32),
        "pos_emb": 0.02 * jax.random.normal(keys[1], (MAX_POS, HIDDEN), jnp.float32),
        "type_emb": 0.02 * jax.random.normal(keys[2], (TYPE_VOCAB, HIDDEN), jnp.float32),
        "emb_ln_g": jnp.ones((1, HIDDEN), jnp.float32),
        "emb_ln_b": jnp.zeros((1, HIDDEN), jnp.float32),
        "pool_w": dense(keys[3], HIDDEN, HIDDEN),
        "pool_b": jnp.zeros((HIDDEN,), jnp.float32),
        "cls_w": dense(keys[4], HIDDEN, NUM_LABELS),
        "cls_b": jnp.zeros((NUM_LABELS,), jnp.float32),
    }

    qkv_w, o_w, i_w, f_w = [], [], [], []
    for l in range(NUM_LAYERS):
        lk = jax.random.split(keys[8 + l], 6)
        q = dense(lk[0], HIDDEN, HIDDEN)
        k = dense(lk[1], HIDDEN, HIDDEN)
        v = dense(lk[2], HIDDEN, HIDDEN)
        qkv_w.append(jnp.concatenate([q, k, v], axis=1))     # (H, 3H)
        o_w.append(dense(lk[3], HIDDEN, HIDDEN))
        i_w.append(dense(lk[4], HIDDEN, INTERMEDIATE))
        f_w.append(dense(lk[5], INTERMEDIATE, HIDDEN))

    L, H, I = NUM_LAYERS, HIDDEN, INTERMEDIATE
    # Matmul weights in bf16 (MXU-native on v6e/v7x, halves weight DMA).
    # o_w kept f32: it is row-sliced per head in-kernel (f32 keeps the slices
    # (8,128)-tile aligned); cast to bf16 at the matmul.
    params.update({
        "qkv_w": jnp.stack(qkv_w).astype(jnp.bfloat16),          # (L, H, 3H)
        "qkv_b": jnp.zeros((L, 1, 3 * H), jnp.float32),
        "o_w": jnp.stack(o_w),                                   # (L, H, H) f32
        "o_b": jnp.zeros((L, 1, H), jnp.float32),
        "ln1_g": jnp.ones((L, 1, H), jnp.float32),
        "ln1_b": jnp.zeros((L, 1, H), jnp.float32),
        "i_w": jnp.stack(i_w).astype(jnp.bfloat16),              # (L, H, I)
        "i_b": jnp.zeros((L, 1, I), jnp.float32),
        "f_w": jnp.stack(f_w).astype(jnp.bfloat16),              # (L, I, H)
        "f_b": jnp.zeros((L, 1, H), jnp.float32),
        "ln2_g": jnp.ones((L, 1, H), jnp.float32),
        "ln2_b": jnp.zeros((L, 1, H), jnp.float32),
    })
    return params


# ------------------------------ forward pass --------------------------------
def bert_model_forward(params, batch_seqs, batch_seq_masks, batch_seq_segments, labels):
    """Mirrors BertModel.forward: returns (loss, logits, probabilities)."""
    B, S = batch_seqs.shape
    H = HIDDEN

    # --- embeddings: gathers are glue (plain JAX); LN + encoder are fused ---
    emb = (params["word_emb"][batch_seqs]
           + params["pos_emb"][jnp.arange(S)][None, :, :]
           + params["type_emb"][batch_seq_segments])              # (B, S, H)

    # HF-style additive attention mask: (1 - mask) * -10000
    ext_mask = ((1.0 - batch_seq_masks.astype(jnp.float32)) * -10000.0).reshape(B, 1, S)

    # --- ONE fused pallas_call: embedding LN + all transformer layers -------
    x = bert_encoder(emb.reshape(B * S, H), ext_mask, params)     # (B*S, H)

    # --- pooler / classifier / loss in plain JAX (tiny; launch-bound as kernels)
    seq_out = x.reshape(B, S, H)
    cls_tok = seq_out[:, 0, :]                                    # (B, H)
    pooled = jnp.tanh(cls_tok @ params["pool_w"] + params["pool_b"])
    logits = pooled @ params["cls_w"] + params["cls_b"]           # (B, NUM_LABELS)

    log_probs = jax.nn.log_softmax(logits, axis=-1)
    loss = -jnp.mean(jnp.take_along_axis(log_probs, labels[:, None], axis=-1))
    probabilities = jax.nn.softmax(logits, axis=-1)
    return loss, logits, probabilities


# --------------------------------- main --------------------------------------
if __name__ == "__main__":
    key = jax.random.PRNGKey(0)
    pkey, ikey = jax.random.split(key, 2)

    B, S = 2, 8
    params = init_bert_params(pkey)

    batch_seqs = jax.random.randint(ikey, (B, S), 0, VOCAB, dtype=jnp.int32)
    lengths = jnp.array([8, 5], dtype=jnp.int32)
    batch_seq_masks = (jnp.arange(S)[None, :] < lengths[:, None]).astype(jnp.int32)
    batch_seq_segments = jnp.concatenate(
        [jnp.zeros((B, S // 2), jnp.int32), jnp.ones((B, S // 2), jnp.int32)], axis=1)
    labels = jnp.array([0, 1], dtype=jnp.int32)

    forward = jax.jit(bert_model_forward)
    loss, logits, probs = forward(
        params, batch_seqs, batch_seq_masks, batch_seq_segments, labels)
    jax.block_until_ready((loss, logits, probs))

    assert logits.shape == (B, NUM_LABELS)
    assert probs.shape == (B, NUM_LABELS)
    assert loss.shape == ()
    assert bool(jnp.isfinite(loss)) and bool(jnp.all(jnp.isfinite(probs)))
    print("KERNEL_OK")
</pallas_src>

<mosaic_0001>
module attributes {stable_mosaic.version = 11 : i64} {
  func.func @_bert_encoder_kernel(%arg0: memref<16x32xf32, #tpu.memory_space<vmem>>, %arg1: memref<2x1x8xf32, #tpu.memory_space<vmem>>, %arg2: memref<1x32xf32, #tpu.memory_space<vmem>>, %arg3: memref<1x32xf32, #tpu.memory_space<vmem>>, %arg4: memref<2x32x96xbf16, #tpu.memory_space<vmem>>, %arg5: memref<2x1x96xf32, #tpu.memory_space<vmem>>, %arg6: memref<2x32x32xf32, #tpu.memory_space<vmem>>, %arg7: memref<2x1x32xf32, #tpu.memory_space<vmem>>, %arg8: memref<2x1x32xf32, #tpu.memory_space<vmem>>, %arg9: memref<2x1x32xf32, #tpu.memory_space<vmem>>, %arg10: memref<2x32x64xbf16, #tpu.memory_space<vmem>>, %arg11: memref<2x1x64xf32, #tpu.memory_space<vmem>>, %arg12: memref<2x64x32xbf16, #tpu.memory_space<vmem>>, %arg13: memref<2x1x32xf32, #tpu.memory_space<vmem>>, %arg14: memref<2x1x32xf32, #tpu.memory_space<vmem>>, %arg15: memref<2x1x32xf32, #tpu.memory_space<vmem>>, %arg16: memref<16x32xf32, #tpu.memory_space<vmem>>, %arg17: memref<16x32xf32, #tpu.memory_space<vmem>>) attributes {dimension_semantics = [], scalar_prefetch = 0 : i64, scratch_operands = 1 : i64, tpu.core_type = #tpu.core_type<tc>} {
    %c0 = arith.constant 0 : index
    %c0_0 = arith.constant 0 : index
    %0 = vector.load %arg0[%c0, %c0_0] : memref<16x32xf32, #tpu.memory_space<vmem>>, vector<16x32xf32>
    %c0_1 = arith.constant 0 : index
    %c0_2 = arith.constant 0 : index
    %1 = vector.load %arg2[%c0_1, %c0_2] : memref<1x32xf32, #tpu.memory_space<vmem>>, vector<1x32xf32>
    %c0_3 = arith.constant 0 : index
    %c0_4 = arith.constant 0 : index
    %2 = vector.load %arg3[%c0_3, %c0_4] : memref<1x32xf32, #tpu.memory_space<vmem>>, vector<1x32xf32>
    %cst = arith.constant dense<0.000000e+00> : vector<16xf32>
    %3 = vector.multi_reduction <add>, %0, %cst [1] : vector<16x32xf32> to vector<16xf32>
    %4 = vector.shape_cast %3 : vector<16xf32> to vector<16x1xf32>
    %cst_5 = arith.constant 3.200000e+01 : f32
    %5 = vector.broadcast %cst_5 : f32 to vector<16x1xf32>
    %6 = arith.divf %4, %5 : vector<16x1xf32>
    %7 = vector.broadcast %6 : vector<16x1xf32> to vector<16x32xf32>
    %8 = arith.subf %0, %7 : vector<16x32xf32>
    %9 = arith.mulf %8, %8 : vector<16x32xf32>
    %cst_6 = arith.constant dense<0.000000e+00> : vector<16xf32>
    %10 = vector.multi_reduction <add>, %9, %cst_6 [1] : vector<16x32xf32> to vector<16xf32>
    %11 = vector.shape_cast %10 : vector<16xf32> to vector<16x1xf32>
    %cst_7 = arith.constant 3.200000e+01 : f32
    %12 = vector.broadcast %cst_7 : f32 to vector<16x1xf32>
    %13 = arith.divf %11, %12 : vector<16x1xf32>
    %cst_8 = arith.constant 9.99999996E-13 : f32
    %14 = vector.broadcast %cst_8 : f32 to vector<16x1xf32>
    %15 = arith.addf %13, %14 : vector<16x1xf32>
    %16 = math.rsqrt %15 : vector<16x1xf32>
    %17 = vector.broadcast %16 : vector<16x1xf32> to vector<16x32xf32>
    %18 = arith.mulf %8, %17 : vector<16x32xf32>
    %19 = vector.broadcast %1 : vector<1x32xf32> to vector<16x32xf32>
    %20 = arith.mulf %18, %19 : vector<16x32xf32>
    %21 = vector.broadcast %2 : vector<1x32xf32> to vector<16x32xf32>
    %22 = arith.addf %20, %21 : vector<16x32xf32>
    %23 = arith.truncf %22 : vector<16x32xf32> to vector<16x32xbf16>
    %c0_9 = arith.constant 0 : index
    %c0_10 = arith.constant 0 : index
    %c0_11 = arith.constant 0 : index
    %24 = vector.load %arg4[%c0_9, %c0_10, %c0_11] : memref<2x32x96xbf16, #tpu.memory_space<vmem>>, vector<1x32x96xbf16>
    %25 = vector.shape_cast %24 : vector<1x32x96xbf16> to vector<32x96xbf16>
    %cst_12 = arith.constant dense<0.000000e+00> : vector<16x96xf32>
    %26 = tpu.matmul %23, %25, %cst_12 {dimension_numbers = #tpu.dot_dimension_numbers<[1], [0], [0], [1], [0, 0, 1, 1], [], []>} : vector<16x32xbf16>, vector<32x96xbf16>, vector<16x96xf32> -> vector<16x96xf32>
    %c0_13 = arith.constant 0 : index
    %c0_14 = arith.constant 0 : index
    %c0_15 = arith.constant 0 : index
    %27 = vector.load %arg5[%c0_13, %c0_14, %c0_15] : memref<2x1x96xf32, #tpu.memory_space<vmem>>, vector<1x1x96xf32>
    %28 = vector.shape_cast %27 : vector<1x1x96xf32> to vector<1x96xf32>
    %29 = vector.broadcast %28 : vector<1x96xf32> to vector<16x96xf32>
    %30 = arith.addf %26, %29 : vector<16x96xf32>
    %c0_16 = arith.constant 0 : index
    %c0_17 = arith.constant 0 : index
    %c0_18 = arith.constant 0 : index
    %31 = vector.load %arg6[%c0_16, %c0_17, %c0_18] : memref<2x32x32xf32, #tpu.memory_space<vmem>>, vector<1x32x32xf32>
    %32 = vector.shape_cast %31 : vector<1x32x32xf32> to vector<32x32xf32>
    %33 = vector.extract_strided_slice %30 {offsets = [0, 0], sizes = [8, 96], strides = [1, 1]} : vector<16x96xf32> to vector<8x96xf32>
    %c0_19 = arith.constant 0 : index
    %c0_20 = arith.constant 0 : index
    %c0_21 = arith.constant 0 : index
    %34 = vector.load %arg1[%c0_19, %c0_20, %c0_21] : memref<2x1x8xf32, #tpu.memory_space<vmem>>, vector<1x1x8xf32>
    %35 = vector.shape_cast %34 : vector<1x1x8xf32> to vector<1x8xf32>
    %36 = vector.shape_cast %35 : vector<1x8xf32> to vector<1x8xf32>
    %37 = vector.broadcast %36 : vector<1x8xf32> to vector<8x8xf32>
    %38 = vector.extract_strided_slice %33 {offsets = [0, 32], sizes = [8, 32], strides = [1, 1]} : vector<8x96xf32> to vector<8x32xf32>
    %39 = tpu.transpose %38, [1, 0] : vector<8x32xf32> -> vector<32x8xf32>
    %40 = arith.truncf %39 : vector<32x8xf32> to vector<32x8xbf16>
    %cst_22 = arith.constant 0.000000e+00 : f32
    %41 = vector.broadcast %cst_22 : f32 to vector<8x32xf32>
    %42 = vector.extract_strided_slice %33 {offsets = [0, 0], sizes = [8, 8], strides = [1, 1]} : vector<8x96xf32> to vector<8x8xf32>
    %43 = arith.truncf %42 : vector<8x8xf32> to vector<8x8xbf16>
    %44 = vector.extract_strided_slice %40 {offsets = [0, 0], sizes = [8, 8], strides = [1, 1]} : vector<32x8xbf16> to vector<8x8xbf16>
    %45 = vector.extract_strided_slice %33 {offsets = [0, 64], sizes = [8, 8], strides = [1, 1]} : vector<8x96xf32> to vector<8x8xf32>
    %46 = arith.truncf %45 : vector<8x8xf32> to vector<8x8xbf16>
    %cst_23 = arith.constant dense<0.000000e+00> : vector<8x8xf32>
    %47 = tpu.matmul %43, %44, %cst_23 {dimension_numbers = #tpu.dot_dimension_numbers<[1], [0], [0], [1], [0, 0, 1, 1], [], []>} : vector<8x8xbf16>, vector<8x8xbf16>, vector<8x8xf32> -> vector<8x8xf32>
    %cst_24 = arith.constant 0.353553385 : f32
    %48 = vector.broadcast %cst_24 : f32 to vector<8x8xf32>
    %49 = arith.mulf %47, %48 : vector<8x8xf32>
    %50 = arith.addf %49, %37 : vector<8x8xf32>
    %cst_25 = arith.constant dense<0xFF800000> : vector<8xf32>
    %51 = vector.multi_reduction <maximumf>, %50, %cst_25 [1] : vector<8x8xf32> to vector<8xf32>
    %52 = vector.shape_cast %51 : vector<8xf32> to vector<8x1xf32>
    %53 = vector.broadcast %52 : vector<8x1xf32> to vector<8x8xf32>
    %54 = arith.subf %50, %53 : vector<8x8xf32>
    %55 = math.exp %54 : vector<8x8xf32>
    %cst_26 = arith.constant dense<0.000000e+00> : vector<8xf32>
    %56 = vector.multi_reduction <add>, %55, %cst_26 [1] : vector<8x8xf32> to vector<8xf32>
    %57 = vector.shape_cast %56 : vector<8xf32> to vector<8x1xf32>
    %58 = tpu.reciprocal %57 {approx = true} : vector<8x1xf32> -> vector<8x1xf32>
    %59 = vector.broadcast %58 : vector<8x1xf32> to vector<8x8xf32>
    %60 = arith.mulf %55, %59 : vector<8x8xf32>
    %61 = arith.truncf %60 : vector<8x8xf32> to vector<8x8xbf16>
    %cst_27 = arith.constant dense<0.000000e+00> : vector<8x8xf32>
    %62 = tpu.matmul %61, %46, %cst_27 {dimension_numbers = #tpu.dot_dimension_numbers<[1], [0], [0], [1], [0, 0, 1, 1], [], []>} : vector<8x8xbf16>, vector<8x8xbf16>, vector<8x8xf32> -> vector<8x8xf32>
    %63 = arith.truncf %62 : vector<8x8xf32> to vector<8x8xbf16>
    %64 = vector.extract_strided_slice %32 {offsets = [0, 0], sizes = [8, 32], strides = [1, 1]} : vector<32x32xf32> to vector<8x32xf32>
    %65 = arith.truncf %64 : vector<8x32xf32> to vector<8x32xbf16>
    %cst_28 = arith.constant dense<0.000000e+00> : vector<8x32xf32>
    %66 = tpu.matmul %63, %65, %cst_28 {dimension_numbers = #tpu.dot_dimension_numbers<[1], [0], [0], [1], [0, 0, 1, 1], [], []>} : vector<8x8xbf16>, vector<8x32xbf16>, vector<8x32xf32> -> vector<8x32xf32>
    %67 = arith.addf %41, %66 : vector<8x32xf32>
    %68 = vector.extract_strided_slice %33 {offsets = [0, 8], sizes = [8, 8], strides = [1, 1]} : vector<8x96xf32> to vector<8x8xf32>
    %69 = arith.truncf %68 : vector<8x8xf32> to vector<8x8xbf16>
    %70 = vector.extract_strided_slice %40 {offsets = [8, 0], sizes = [8, 8], strides = [1, 1]} : vector<32x8xbf16> to vector<8x8xbf16>
    %71 = vector.extract_strided_slice %33 {offsets = [0, 72], sizes = [8, 8], strides = [1, 1]} : vector<8x96xf32> to vector<8x8xf32>
    %72 = arith.truncf %71 : vector<8x8xf32> to vector<8x8xbf16>
    %cst_29 = arith.constant dense<0.000000e+00> : vector<8x8xf32>
    %73 = tpu.matmul %69, %70, %cst_29 {dimension_numbers = #tpu.dot_dimension_numbers<[1], [0], [0], [1], [0, 0, 1, 1], [], []>} : vector<8x8xbf16>, vector<8x8xbf16>, vector<8x8xf32> -> vector<8x8xf32>
    %cst_30 = arith.constant 0.353553385 : f32
    %74 = vector.broadcast %cst_30 : f32 to vector<8x8xf32>
    %75 = arith.mulf %73, %74 : vector<8x8xf32>
    %76 = arith.addf %75, %37 : vector<8x8xf32>
    %cst_31 = arith.constant dense<0xFF800000> : vector<8xf32>
    %77 = vector.multi_reduction <maximumf>, %76, %cst_31 [1] : vector<8x8xf32> to vector<8xf32>
    %78 = vector.shape_cast %77 : vector<8xf32> to vector<8x1xf32>
    %79 = vector.broadcast %78 : vector<8x1xf32> to vector<8x8xf32>
    %80 = arith.subf %76, %79 : vector<8x8xf32>
    %81 = math.exp %80 : vector<8x8xf32>
    %cst_32 = arith.constant dense<0.000000e+00> : vector<8xf32>
    %82 = vector.multi_reduction <add>, %81, %cst_32 [1] : vector<8x8xf32> to vector<8xf32>
    %83 = vector.shape_cast %82 : vector<8xf32> to vector<8x1xf32>
    %84 = tpu.reciprocal %83 {approx = true} : vector<8x1xf32> -> vector<8x1xf32>
    %85 = vector.broadcast %84 : vector<8x1xf32> to vector<8x8xf32>
    %86 = arith.mulf %81, %85 : vector<8x8xf32>
    %87 = arith.truncf %86 : vector<8x8xf32> to vector<8x8xbf16>
    %cst_33 = arith.constant dense<0.000000e+00> : vector<8x8xf32>
    %88 = tpu.matmul %87, %72, %cst_33 {dimension_numbers = #tpu.dot_dimension_numbers<[1], [0], [0], [1], [0, 0, 1, 1], [], []>} : vector<8x8xbf16>, vector<8x8xbf16>, vector<8x8xf32> -> vector<8x8xf32>
    %89 = arith.truncf %88 : vector<8x8xf32> to vector<8x8xbf16>
    %90 = vector.extract_strided_slice %32 {offsets = [8, 0], sizes = [8, 32], strides = [1, 1]} : vector<32x32xf32> to vector<8x32xf32>
    %91 = arith.truncf %90 : vector<8x32xf32> to vector<8x32xbf16>
    %cst_34 = arith.constant dense<0.000000e+00> : vector<8x32xf32>
    %92 = tpu.matmul %89, %91, %cst_34 {dimension_numbers = #tpu.dot_dimension_numbers<[1], [0], [0], [1], [0, 0, 1, 1], [], []>} : vector<8x8xbf16>, vector<8x32xbf16>, vector<8x32xf32> -> vector<8x32xf32>
    %93 = arith.addf %67, %92 : vector<8x32xf32>
    %94 = vector.extract_strided_slice %33 {offsets = [0, 16], sizes = [8, 8], strides = [1, 1]} : vector<8x96xf32> to vector<8x8xf32>
    %95 = arith.truncf %94 : vector<8x8xf32> to vector<8x8xbf16>
    %96 = vector.extract_strided_slice %40 {offsets = [16, 0], sizes = [8, 8], strides = [1, 1]} : vector<32x8xbf16> to vector<8x8xbf16>
    %97 = vector.extract_strided_slice %33 {offsets = [0, 80], sizes = [8, 8], strides = [1, 1]} : vector<8x96xf32> to vector<8x8xf32>
    %98 = arith.truncf %97 : vector<8x8xf32> to vector<8x8xbf16>
    %cst_35 = arith.constant dense<0.000000e+00> : vector<8x8xf32>
    %99 = tpu.matmul %95, %96, %cst_35 {dimension_numbers = #tpu.dot_dimension_numbers<[1], [0], [0], [1], [0, 0, 1, 1], [], []>} : vector<8x8xbf16>, vector<8x8xbf16>, vector<8x8xf32> -> vector<8x8xf32>
    %cst_36 = arith.constant 0.353553385 : f32
    %100 = vector.broadcast %cst_36 : f32 to vector<8x8xf32>
    %101 = arith.mulf %99, %100 : vector<8x8xf32>
    %102 = arith.addf %101, %37 : vector<8x8xf32>
    %cst_37 = arith.constant dense<0xFF800000> : vector<8xf32>
    %103 = vector.multi_reduction <maximumf>, %102, %cst_37 [1] : vector<8x8xf32> to vector<8xf32>
    %104 = vector.shape_cast %103 : vector<8xf32> to vector<8x1xf32>
    %105 = vector.broadcast %104 : vector<8x1xf32> to vector<8x8xf32>
    %106 = arith.subf %102, %105 : vector<8x8xf32>
    %107 = math.exp %106 : vector<8x8xf32>
    %cst_38 = arith.constant dense<0.000000e+00> : vector<8xf32>
    %108 = vector.multi_reduction <add>, %107, %cst_38 [1] : vector<8x8xf32> to vector<8xf32>
    %109 = vector.shape_cast %108 : vector<8xf32> to vector<8x1xf32>
    %110 = tpu.reciprocal %109 {approx = true} : vector<8x1xf32> -> vector<8x1xf32>
    %111 = vector.broadcast %110 : vector<8x1xf32> to vector<8x8xf32>
    %112 = arith.mulf %107, %111 : vector<8x8xf32>
    %113 = arith.truncf %112 : vector<8x8xf32> to vector<8x8xbf16>
    %cst_39 = arith.constant dense<0.000000e+00> : vector<8x8xf32>
    %114 = tpu.matmul %113, %98, %cst_39 {dimension_numbers = #tpu.dot_dimension_numbers<[1], [0], [0], [1], [0, 0, 1, 1], [], []>} : vector<8x8xbf16>, vector<8x8xbf16>, vector<8x8xf32> -> vector<8x8xf32>
    %115 = arith.truncf %114 : vector<8x8xf32> to vector<8x8xbf16>
    %116 = vector.extract_strided_slice %32 {offsets = [16, 0], sizes = [8, 32], strides = [1, 1]} : vector<32x32xf32> to vector<8x32xf32>
    %117 = arith.truncf %116 : vector<8x32xf32> to vector<8x32xbf16>
    %cst_40 = arith.constant dense<0.000000e+00> : vector<8x32xf32>
    %118 = tpu.matmul %115, %117, %cst_40 {dimension_numbers = #tpu.dot_dimension_numbers<[1], [0], [0], [1], [0, 0, 1, 1], [], []>} : vector<8x8xbf16>, vector<8x32xbf16>, vector<8x32xf32> -> vector<8x32xf32>
    %119 = arith.addf %93, %118 : vector<8x32xf32>
    %120 = vector.extract_strided_slice %33 {offsets = [0, 24], sizes = [8, 8], strides = [1, 1]} : vector<8x96xf32> to vector<8x8xf32>
    %121 = arith.truncf %120 : vector<8x8xf32> to vector<8x8xbf16>
    %122 = vector.extract_strided_slice %40 {offsets = [24, 0], sizes = [8, 8], strides = [1, 1]} : vector<32x8xbf16> to vector<8x8xbf16>
    %123 = vector.extract_strided_slice %33 {offsets = [0, 88], sizes = [8, 8], strides = [1, 1]} : vector<8x96xf32> to vector<8x8xf32>
    %124 = arith.truncf %123 : vector<8x8xf32> to vector<8x8xbf16>
    %cst_41 = arith.constant dense<0.000000e+00> : vector<8x8xf32>
    %125 = tpu.matmul %121, %122, %cst_41 {dimension_numbers = #tpu.dot_dimension_numbers<[1], [0], [0], [1], [0, 0, 1, 1], [], []>} : vector<8x8xbf16>, vector<8x8xbf16>, vector<8x8xf32> -> vector<8x8xf32>
    %cst_42 = arith.constant 0.353553385 : f32
    %126 = vector.broadcast %cst_42 : f32 to vector<8x8xf32>
    %127 = arith.mulf %125, %126 : vector<8x8xf32>
    %128 = arith.addf %127, %37 : vector<8x8xf32>
    %cst_43 = arith.constant dense<0xFF800000> : vector<8xf32>
    %129 = vector.multi_reduction <maximumf>, %128, %cst_43 [1] : vector<8x8xf32> to vector<8xf32>
    %130 = vector.shape_cast %129 : vector<8xf32> to vector<8x1xf32>
    %131 = vector.broadcast %130 : vector<8x1xf32> to vector<8x8xf32>
    %132 = arith.subf %128, %131 : vector<8x8xf32>
    %133 = math.exp %132 : vector<8x8xf32>
    %cst_44 = arith.constant dense<0.000000e+00> : vector<8xf32>
    %134 = vector.multi_reduction <add>, %133, %cst_44 [1] : vector<8x8xf32> to vector<8xf32>
    %135 = vector.shape_cast %134 : vector<8xf32> to vector<8x1xf32>
    %136 = tpu.reciprocal %135 {approx = true} : vector<8x1xf32> -> vector<8x1xf32>
    %137 = vector.broadcast %136 : vector<8x1xf32> to vector<8x8xf32>
    %138 = arith.mulf %133, %137 : vector<8x8xf32>
    %139 = arith.truncf %138 : vector<8x8xf32> to vector<8x8xbf16>
    %cst_45 = arith.constant dense<0.000000e+00> : vector<8x8xf32>
    %140 = tpu.matmul %139, %124, %cst_45 {dimension_numbers = #tpu.dot_dimension_numbers<[1], [0], [0], [1], [0, 0, 1, 1], [], []>} : vector<8x8xbf16>, vector<8x8xbf16>, vector<8x8xf32> -> vector<8x8xf32>
    %141 = arith.truncf %140 : vector<8x8xf32> to vector<8x8xbf16>
    %142 = vector.extract_strided_slice %32 {offsets = [24, 0], sizes = [8, 32], strides = [1, 1]} : vector<32x32xf32> to vector<8x32xf32>
    %143 = arith.truncf %142 : vector<8x32xf32> to vector<8x32xbf16>
    %cst_46 = arith.constant dense<0.000000e+00> : vector<8x32xf32>
    %144 = tpu.matmul %141, %143, %cst_46 {dimension_numbers = #tpu.dot_dimension_numbers<[1], [0], [0], [1], [0, 0, 1, 1], [], []>} : vector<8x8xbf16>, vector<8x32xbf16>, vector<8x32xf32> -> vector<8x32xf32>
    %145 = arith.addf %119, %144 : vector<8x32xf32>
    %c0_47 = arith.constant 0 : index
    %c0_48 = arith.constant 0 : index
    %146 = vector.load %arg17[%c0_47, %c0_48] : memref<16x32xf32, #tpu.memory_space<vmem>>, vector<8x32xf32>
    tpu.vector_store %arg17[%c0_47, %c0_48], %145 {strides = array<i32>} : memref<16x32xf32, #tpu.memory_space<vmem>>, vector<8x32xf32>,
    %147 = vector.extract_strided_slice %30 {offsets = [8, 0], sizes = [8, 96], strides = [1, 1]} : vector<16x96xf32> to vector<8x96xf32>
    %c1 = arith.constant 1 : index
    %c0_49 = arith.constant 0 : index
    %c0_50 = arith.constant 0 : index
    %148 = vector.load %arg1[%c1, %c0_49, %c0_50] : memref<2x1x8xf32, #tpu.memory_space<vmem>>, vector<1x1x8xf32>
    %149 = vector.shape_cast %148 : vector<1x1x8xf32> to vector<1x8xf32>
    %150 = vector.shape_cast %149 : vector<1x8xf32> to vector<1x8xf32>
    %151 = vector.broadcast %150 : vector<1x8xf32> to vector<8x8xf32>
    %152 = vector.extract_strided_slice %147 {offsets = [0, 32], sizes = [8, 32], strides = [1, 1]} : vector<8x96xf32> to vector<8x32xf32>
    %153 = tpu.transpose %152, [1, 0] : vector<8x32xf32> -> vector<32x8xf32>
    %154 = arith.truncf %153 : vector<32x8xf32> to vector<32x8xbf16>
    %cst_51 = arith.constant 0.000000e+00 : f32
    %155 = vector.broadcast %cst_51 : f32 to vector<8x32xf32>
    %156 = vector.extract_strided_slice %147 {offsets = [0, 0], sizes = [8, 8], strides = [1, 1]} : vector<8x96xf32> to vector<8x8xf32>
    %157 = arith.truncf %156 : vector<8x8xf32> to vector<8x8xbf16>
    %158 = vector.extract_strided_slice %154 {offsets = [0, 0], sizes = [8, 8], strides = [1, 1]} : vector<32x8xbf16> to vector<8x8xbf16>
    %159 = vector.extract_strided_slice %147 {offsets = [0, 64], sizes = [8, 8], strides = [1, 1]} : vector<8x96xf32> to vector<8x8xf32>
    %160 = arith.truncf %159 : vector<8x8xf32> to vector<8x8xbf16>
    %cst_52 = arith.constant dense<0.000000e+00> : vector<8x8xf32>
    %161 = tpu.matmul %157, %158, %cst_52 {dimension_numbers = #tpu.dot_dimension_numbers<[1], [0], [0], [1], [0, 0, 1, 1], [], []>} : vector<8x8xbf16>, vector<8x8xbf16>, vector<8x8xf32> -> vector<8x8xf32>
    %cst_53 = arith.constant 0.353553385 : f32
    %162 = vector.broadcast %cst_53 : f32 to vector<8x8xf32>
    %163 = arith.mulf %161, %162 : vector<8x8xf32>
    %164 = arith.addf %163, %151 : vector<8x8xf32>
    %cst_54 = arith.constant dense<0xFF800000> : vector<8xf32>
    %165 = vector.multi_reduction <maximumf>, %164, %cst_54 [1] : vector<8x8xf32> to vector<8xf32>
    %166 = vector.shape_cast %165 : vector<8xf32> to vector<8x1xf32>
    %167 = vector.broadcast %166 : vector<8x1xf32> to vector<8x8xf32>
    %168 = arith.subf %164, %167 : vector<8x8xf32>
    %169 = math.exp %168 : vector<8x8xf32>
    %cst_55 = arith.constant dense<0.000000e+00> : vector<8xf32>
    %170 = vector.multi_reduction <add>, %169, %cst_55 [1] : vector<8x8xf32> to vector<8xf32>
    %171 = vector.shape_cast %170 : vector<8xf32> to vector<8x1xf32>
    %172 = tpu.reciprocal %171 {approx = true} : vector<8x1xf32> -> vector<8x1xf32>
    %173 = vector.broadcast %172 : vector<8x1xf32> to vector<8x8xf32>
    %174 = arith.mulf %169, %173 : vector<8x8xf32>
    %175 = arith.truncf %174 : vector<8x8xf32> to vector<8x8xbf16>
    %cst_56 = arith.constant dense<0.000000e+00> : vector<8x8xf32>
    %176 = tpu.matmul %175, %160, %cst_56 {dimension_numbers = #tpu.dot_dimension_numbers<[1], [0], [0], [1], [0, 0, 1, 1], [], []>} : vector<8x8xbf16>, vector<8x8xbf16>, vector<8x8xf32> -> vector<8x8xf32>
    %177 = arith.truncf %176 : vector<8x8xf32> to vector<8x8xbf16>
    %178 = vector.extract_strided_slice %32 {offsets = [0, 0], sizes = [8, 32], strides = [1, 1]} : vector<32x32xf32> to vector<8x32xf32>
    %179 = arith.truncf %178 : vector<8x32xf32> to vector<8x32xbf16>
    %cst_57 = arith.constant dense<0.000000e+00> : vector<8x32xf32>
    %180 = tpu.matmul %177, %179, %cst_57 {dimension_numbers = #tpu.dot_dimension_numbers<[1], [0], [0], [1], [0, 0, 1, 1], [], []>} : vector<8x8xbf16>, vector<8x32xbf16>, vector<8x32xf32> -> vector<8x32xf32>
    %181 = arith.addf %155, %180 : vector<8x32xf32>
    %182 = vector.extract_strided_slice %147 {offsets = [0, 8], sizes = [8, 8], strides = [1, 1]} : vector<8x96xf32> to vector<8x8xf32>
    %183 = arith.truncf %182 : vector<8x8xf32> to vector<8x8xbf16>
    %184 = vector.extract_strided_slice %154 {offsets = [8, 0], sizes = [8, 8], strides = [1, 1]} : vector<32x8xbf16> to vector<8x8xbf16>
    %185 = vector.extract_strided_slice %147 {offsets = [0, 72], sizes = [8, 8], strides = [1, 1]} : vector<8x96xf32> to vector<8x8xf32>
    %186 = arith.truncf %185 : vector<8x8xf32> to vector<8x8xbf16>
    %cst_58 = arith.constant dense<0.000000e+00> : vector<8x8xf32>
    %187 = tpu.matmul %183, %184, %cst_58 {dimension_numbers = #tpu.dot_dimension_numbers<[1], [0], [0], [1], [0, 0, 1, 1], [], []>} : vector<8x8xbf16>, vector<8x8xbf16>, vector<8x8xf32> -> vector<8x8xf32>
    %cst_59 = arith.constant 0.353553385 : f32
    %188 = vector.broadcast %cst_59 : f32 to vector<8x8xf32>
    %189 = arith.mulf %187, %188 : vector<8x8xf32>
    %190 = arith.addf %189, %151 : vector<8x8xf32>
    %cst_60 = arith.constant dense<0xFF800000> : vector<8xf32>
    %191 = vector.multi_reduction <maximumf>, %190, %cst_60 [1] : vector<8x8xf32> to vector<8xf32>
    %192 = vector.shape_cast %191 : vector<8xf32> to vector<8x1xf32>
    %193 = vector.broadcast %192 : vector<8x1xf32> to vector<8x8xf32>
    %194 = arith.subf %190, %193 : vector<8x8xf32>
    %195 = math.exp %194 : vector<8x8xf32>
    %cst_61 = arith.constant dense<0.000000e+00> : vector<8xf32>
    %196 = vector.multi_reduction <add>, %195, %cst_61 [1] : vector<8x8xf32> to vector<8xf32>
    %197 = vector.shape_cast %196 : vector<8xf32> to vector<8x1xf32>
    %198 = tpu.reciprocal %197 {approx = true} : vector<8x1xf32> -> vector<8x1xf32>
    %199 = vector.broadcast %198 : vector<8x1xf32> to vector<8x8xf32>
    %200 = arith.mulf %195, %199 : vector<8x8xf32>
    %201 = arith.truncf %200 : vector<8x8xf32> to vector<8x8xbf16>
    %cst_62 = arith.constant dense<0.000000e+00> : vector<8x8xf32>
    %202 = tpu.matmul %201, %186, %cst_62 {dimension_numbers = #tpu.dot_dimension_numbers<[1], [0], [0], [1], [0, 0, 1, 1], [], []>} : vector<8x8xbf16>, vector<8x8xbf16>, vector<8x8xf32> -> vector<8x8xf32>
    %203 = arith.truncf %202 : vector<8x8xf32> to vector<8x8xbf16>
    %204 = vector.extract_strided_slice %32 {offsets = [8, 0], sizes = [8, 32], strides = [1, 1]} : vector<32x32xf32> to vector<8x32xf32>
    %205 = arith.truncf %204 : vector<8x32xf32> to vector<8x32xbf16>
    %cst_63 = arith.constant dense<0.000000e+00> : vector<8x32xf32>
    %206 = tpu.matmul %203, %205, %cst_63 {dimension_numbers = #tpu.dot_dimension_numbers<[1], [0], [0], [1], [0, 0, 1, 1], [], []>} : vector<8x8xbf16>, vector<8x32xbf16>, vector<8x32xf32> -> vector<8x32xf32>
    %207 = arith.addf %181, %206 : vector<8x32xf32>
    %208 = vector.extract_strided_slice %147 {offsets = [0, 16], sizes = [8, 8], strides = [1, 1]} : vector<8x96xf32> to vector<8x8xf32>
    %209 = arith.truncf %208 : vector<8x8xf32> to vector<8x8xbf16>
    %210 = vector.extract_strided_slice %154 {offsets = [16, 0], sizes = [8, 8], strides = [1, 1]} : vector<32x8xbf16> to vector<8x8xbf16>
    %211 = vector.extract_strided_slice %147 {offsets = [0, 80], sizes = [8, 8], strides = [1, 1]} : vector<8x96xf32> to vector<8x8xf32>
    %212 = arith.truncf %211 : vector<8x8xf32> to vector<8x8xbf16>
    %cst_64 = arith.constant dense<0.000000e+00> : vector<8x8xf32>
    %213 = tpu.matmul %209, %210, %cst_64 {dimension_numbers = #tpu.dot_dimension_numbers<[1], [0], [0], [1], [0, 0, 1, 1], [], []>} : vector<8x8xbf16>, vector<8x8xbf16>, vector<8x8xf32> -> vector<8x8xf32>
    %cst_65 = arith.constant 0.353553385 : f32
    %214 = vector.broadcast %cst_65 : f32 to vector<8x8xf32>
    %215 = arith.mulf %213, %214 : vector<8x8xf32>
    %216 = arith.addf %215, %151 : vector<8x8xf32>
    %cst_66 = arith.constant dense<0xFF800000> : vector<8xf32>
    %217 = vector.multi_reduction <maximumf>, %216, %cst_66 [1] : vector<8x8xf32> to vector<8xf32>
    %218 = vector.shape_cast %217 : vector<8xf32> to vector<8x1xf32>
    %219 = vector.broadcast %218 : vector<8x1xf32> to vector<8x8xf32>
    %220 = arith.subf %216, %219 : vector<8x8xf32>
    %221 = math.exp %220 : vector<8x8xf32>
    %cst_67 = arith.constant dense<0.000000e+00> : vector<8xf32>
    %222 = vector.multi_reduction <add>, %221, %cst_67 [1] : vector<8x8xf32> to vector<8xf32>
    %223 = vector.shape_cast %222 : vector<8xf32> to vector<8x1xf32>
    %224 = tpu.reciprocal %223 {approx = true} : vector<8x1xf32> -> vector<8x1xf32>
    %225 = vector.broadcast %224 : vector<8x1xf32> to vector<8x8xf32>
    %226 = arith.mulf %221, %225 : vector<8x8xf32>
    %227 = arith.truncf %226 : vector<8x8xf32> to vector<8x8xbf16>
    %cst_68 = arith.constant dense<0.000000e+00> : vector<8x8xf32>
    %228 = tpu.matmul %227, %212, %cst_68 {dimension_numbers = #tpu.dot_dimension_numbers<[1], [0], [0], [1], [0, 0, 1, 1], [], []>} : vector<8x8xbf16>, vector<8x8xbf16>, vector<8x8xf32> -> vector<8x8xf32>
    %229 = arith.truncf %228 : vector<8x8xf32> to vector<8x8xbf16>
    %230 = vector.extract_strided_slice %32 {offsets = [16, 0], sizes = [8, 32], strides = [1, 1]} : vector<32x32xf32> to vector<8x32xf32>
    %231 = arith.truncf %230 : vector<8x32xf32> to vector<8x32xbf16>
    %cst_69 = arith.constant dense<0.000000e+00> : vector<8x32xf32>
    %232 = tpu.matmul %229, %231, %cst_69 {dimension_numbers = #tpu.dot_dimension_numbers<[1], [0], [0], [1], [0, 0, 1, 1], [], []>} : vector<8x8xbf16>, vector<8x32xbf16>, vector<8x32xf32> -> vector<8x32xf32>
    %233 = arith.addf %207, %232 : vector<8x32xf32>
    %234 = vector.extract_strided_slice %147 {offsets = [0, 24], sizes = [8, 8], strides = [1, 1]} : vector<8x96xf32> to vector<8x8xf32>
    %235 = arith.truncf %234 : vector<8x8xf32> to vector<8x8xbf16>
    %236 = vector.extract_strided_slice %154 {offsets = [24, 0], sizes = [8, 8], strides = [1, 1]} : vector<32x8xbf16> to vector<8x8xbf16>
    %237 = vector.extract_strided_slice %147 {offsets = [0, 88], sizes = [8, 8], strides = [1, 1]} : vector<8x96xf32> to vector<8x8xf32>
    %238 = arith.truncf %237 : vector<8x8xf32> to vector<8x8xbf16>
    %cst_70 = arith.constant dense<0.000000e+00> : vector<8x8xf32>
    %239 = tpu.matmul %235, %236, %cst_70 {dimension_numbers = #tpu.dot_dimension_numbers<[1], [0], [0], [1], [0, 0, 1, 1], [], []>} : vector<8x8xbf16>, vector<8x8xbf16>, vector<8x8xf32> -> vector<8x8xf32>
    %cst_71 = arith.constant 0.353553385 : f32
    %240 = vector.broadcast %cst_71 : f32 to vector<8x8xf32>
    %241 = arith.mulf %239, %240 : vector<8x8xf32>
    %242 = arith.addf %241, %151 : vector<8x8xf32>
    %cst_72 = arith.constant dense<0xFF800000> : vector<8xf32>
    %243 = vector.multi_reduction <maximumf>, %242, %cst_72 [1] : vector<8x8xf32> to vector<8xf32>
    %244 = vector.shape_cast %243 : vector<8xf32> to vector<8x1xf32>
    %245 = vector.broadcast %244 : vector<8x1xf32> to vector<8x8xf32>
    %246 = arith.subf %242, %245 : vector<8x8xf32>
    %247 = math.exp %246 : vector<8x8xf32>
    %cst_73 = arith.constant dense<0.000000e+00> : vector<8xf32>
    %248 = vector.multi_reduction <add>, %247, %cst_73 [1] : vector<8x8xf32> to vector<8xf32>
    %249 = vector.shape_cast %248 : vector<8xf32> to vector<8x1xf32>
    %250 = tpu.reciprocal %249 {approx = true} : vector<8x1xf32> -> vector<8x1xf32>
    %251 = vector.broadcast %250 : vector<8x1xf32> to vector<8x8xf32>
    %252 = arith.mulf %247, %251 : vector<8x8xf32>
    %253 = arith.truncf %252 : vector<8x8xf32> to vector<8x8xbf16>
    %cst_74 = arith.constant dense<0.000000e+00> : vector<8x8xf32>
    %254 = tpu.matmul %253, %238, %cst_74 {dimension_numbers = #tpu.dot_dimension_numbers<[1], [0], [0], [1], [0, 0, 1, 1], [], []>} : vector<8x8xbf16>, vector<8x8xbf16>, vector<8x8xf32> -> vector<8x8xf32>
    %255 = arith.truncf %254 : vector<8x8xf32> to vector<8x8xbf16>
    %256 = vector.extract_strided_slice %32 {offsets = [24, 0], sizes = [8, 32], strides = [1, 1]} : vector<32x32xf32> to vector<8x32xf32>
    %257 = arith.truncf %256 : vector<8x32xf32> to vector<8x32xbf16>
    %cst_75 = arith.constant dense<0.000000e+00> : vector<8x32xf32>
    %258 = tpu.matmul %255, %257, %cst_75 {dimension_numbers = #tpu.dot_dimension_numbers<[1], [0], [0], [1], [0, 0, 1, 1], [], []>} : vector<8x8xbf16>, vector<8x32xbf16>, vector<8x32xf32> -> vector<8x32xf32>
    %259 = arith.addf %233, %258 : vector<8x32xf32>
    %c8 = arith.constant 8 : index
    %c0_76 = arith.constant 0 : index
    %260 = vector.load %arg17[%c8, %c0_76] : memref<16x32xf32, #tpu.memory_space<vmem>>, vector<8x32xf32>
    tpu.vector_store %arg17[%c8, %c0_76], %259 {strides = array<i32>} : memref<16x32xf32, #tpu.memory_space<vmem>>, vector<8x32xf32>,
    %c0_77 = arith.constant 0 : index
    %c0_78 = arith.constant 0 : index
    %261 = vector.load %arg17[%c0_77, %c0_78] : memref<16x32xf32, #tpu.memory_space<vmem>>, vector<16x32xf32>
    %c0_79 = arith.constant 0 : index
    %c0_80 = arith.constant 0 : index
    %c0_81 = arith.constant 0 : index
    %262 = vector.load %arg7[%c0_79, %c0_80, %c0_81] : memref<2x1x32xf32, #tpu.memory_space<vmem>>, vector<1x1x32xf32>
    %263 = vector.shape_cast %262 : vector<1x1x32xf32> to vector<1x32xf32>
    %264 = vector.broadcast %263 : vector<1x32xf32> to vector<16x32xf32>
    %265 = arith.addf %261, %264 : vector<16x32xf32>
    %266 = arith.addf %265, %22 : vector<16x32xf32>
    %c0_82 = arith.constant 0 : index
    %c0_83 = arith.constant 0 : index
    %c0_84 = arith.constant 0 : index
    %267 = vector.load %arg8[%c0_82, %c0_83, %c0_84] : memref<2x1x32xf32, #tpu.memory_space<vmem>>, vector<1x1x32xf32>
    %268 = vector.shape_cast %267 : vector<1x1x32xf32> to vector<1x32xf32>
    %c0_85 = arith.constant 0 : index
    %c0_86 = arith.constant 0 : index
    %c0_87 = arith.constant 0 : index
    %269 = vector.load %arg9[%c0_85, %c0_86, %c0_87] : memref<2x1x32xf32, #tpu.memory_space<vmem>>, vector<1x1x32xf32>
    %270 = vector.shape_cast %269 : vector<1x1x32xf32> to vector<1x32xf32>
    %cst_88 = arith.constant dense<0.000000e+00> : vector<16xf32>
    %271 = vector.multi_reduction <add>, %266, %cst_88 [1] : vector<16x32xf32> to vector<16xf32>
    %272 = vector.shape_cast %271 : vector<16xf32> to vector<16x1xf32>
    %cst_89 = arith.constant 3.200000e+01 : f32
    %273 = vector.broadcast %cst_89 : f32 to vector<16x1xf32>
    %274 = arith.divf %272, %273 : vector<16x1xf32>
    %275 = vector.broadcast %274 : vector<16x1xf32> to vector<16x32xf32>
    %276 = arith.subf %266, %275 : vector<16x32xf32>
    %277 = arith.mulf %276, %276 : vector<16x32xf32>
    %cst_90 = arith.constant dense<0.000000e+00> : vector<16xf32>
    %278 = vector.multi_reduction <add>, %277, %cst_90 [1] : vector<16x32xf32> to vector<16xf32>
    %279 = vector.shape_cast %278 : vector<16xf32> to vector<16x1xf32>
    %cst_91 = arith.constant 3.200000e+01 : f32
    %280 = vector.broadcast %cst_91 : f32 to vector<16x1xf32>
    %281 = arith.divf %279, %280 : vector<16x1xf32>
    %cst_92 = arith.constant 9.99999996E-13 : f32
    %282 = vector.broadcast %cst_92 : f32 to vector<16x1xf32>
    %283 = arith.addf %281, %282 : vector<16x1xf32>
    %284 = math.rsqrt %283 : vector<16x1xf32>
    %285 = vector.broadcast %284 : vector<16x1xf32> to vector<16x32xf32>
    %286 = arith.mulf %276, %285 : vector<16x32xf32>
    %287 = vector.broadcast %268 : vector<1x32xf32> to vector<16x32xf32>
    %288 = arith.mulf %286, %287 : vector<16x32xf32>
    %289 = vector.broadcast %270 : vector<1x32xf32> to vector<16x32xf32>
    %290 = arith.addf %288, %289 : vector<16x32xf32>
    %291 = arith.truncf %290 : vector<16x32xf32> to vector<16x32xbf16>
    %c0_93 = arith.constant 0 : index
    %c0_94 = arith.constant 0 : index
    %c0_95 = arith.constant 0 : index
    %292 = vector.load %arg10[%c0_93, %c0_94, %c0_95] : memref<2x32x64xbf16, #tpu.memory_space<vmem>>, vector<1x32x64xbf16>
    %293 = vector.shape_cast %292 : vector<1x32x64xbf16> to vector<32x64xbf16>
    %cst_96 = arith.constant dense<0.000000e+00> : vector<16x64xf32>
    %294 = tpu.matmul %291, %293, %cst_96 {dimension_numbers = #tpu.dot_dimension_numbers<[1], [0], [0], [1], [0, 0, 1, 1], [], []>} : vector<16x32xbf16>, vector<32x64xbf16>, vector<16x64xf32> -> vector<16x64xf32>
    %c0_97 = arith.constant 0 : index
    %c0_98 = arith.constant 0 : index
    %c0_99 = arith.constant 0 : index
    %295 = vector.load %arg11[%c0_97, %c0_98, %c0_99] : memref<2x1x64xf32, #tpu.memory_space<vmem>>, vector<1x1x64xf32>
    %296 = vector.shape_cast %295 : vector<1x1x64xf32> to vector<1x64xf32>
    %297 = vector.broadcast %296 : vector<1x64xf32> to vector<16x64xf32>
    %298 = arith.addf %294, %297 : vector<16x64xf32>
    %299 = arith.mulf %298, %298 : vector<16x64xf32>
    %300 = arith.mulf %298, %299 : vector<16x64xf32>
    %cst_100 = arith.constant 4.471500e-02 : f32
    %301 = vector.broadcast %cst_100 : f32 to vector<16x64xf32>
    %302 = arith.mulf %301, %300 : vector<16x64xf32>
    %303 = arith.addf %298, %302 : vector<16x64xf32>
    %cst_101 = arith.constant 0.797884583 : f32
    %304 = vector.broadcast %cst_101 : f32 to vector<16x64xf32>
    %305 = arith.mulf %304, %303 : vector<16x64xf32>
    %306 = math.tanh %305 : vector<16x64xf32>
    %cst_102 = arith.constant 1.000000e+00 : f32
    %307 = vector.broadcast %cst_102 : f32 to vector<16x64xf32>
    %308 = arith.addf %307, %306 : vector<16x64xf32>
    %cst_103 = arith.constant 5.000000e-01 : f32
    %309 = vector.broadcast %cst_103 : f32 to vector<16x64xf32>
    %310 = arith.mulf %309, %308 : vector<16x64xf32>
    %311 = arith.mulf %298, %310 : vector<16x64xf32>
    %312 = arith.truncf %311 : vector<16x64xf32> to vector<16x64xbf16>
    %c0_104 = arith.constant 0 : index
    %c0_105 = arith.constant 0 : index
    %c0_106 = arith.constant 0 : index
    %313 = vector.load %arg12[%c0_104, %c0_105, %c0_106] : memref<2x64x32xbf16, #tpu.memory_space<vmem>>, vector<1x64x32xbf16>
    %314 = vector.shape_cast %313 : vector<1x64x32xbf16> to vector<64x32xbf16>
    %cst_107 = arith.constant dense<0.000000e+00> : vector<16x32xf32>
    %315 = tpu.matmul %312, %314, %cst_107 {dimension_numbers = #tpu.dot_dimension_numbers<[1], [0], [0], [1], [0, 0, 1, 1], [], []>} : vector<16x64xbf16>, vector<64x32xbf16>, vector<16x32xf32> -> vector<16x32xf32>
    %c0_108 = arith.constant 0 : index
    %c0_109 = arith.constant 0 : index
    %c0_110 = arith.constant 0 : index
    %316 = vector.load %arg13[%c0_108, %c0_109, %c0_110] : memref<2x1x32xf32, #tpu.memory_space<vmem>>, vector<1x1x32xf32>
    %317 = vector.shape_cast %316 : vector<1x1x32xf32> to vector<1x32xf32>
    %318 = vector.broadcast %317 : vector<1x32xf32> to vector<16x32xf32>
    %319 = arith.addf %315, %318 : vector<16x32xf32>
    %320 = arith.addf %319, %290 : vector<16x32xf32>
    %c0_111 = arith.constant 0 : index
    %c0_112 = arith.constant 0 : index
    %c0_113 = arith.constant 0 : index
    %321 = vector.load %arg14[%c0_111, %c0_112, %c0_113] : memref<2x1x32xf32, #tpu.memory_space<vmem>>, vector<1x1x32xf32>
    %322 = vector.shape_cast %321 : vector<1x1x32xf32> to vector<1x32xf32>
    %c0_114 = arith.constant 0 : index
    %c0_115 = arith.constant 0 : index
    %c0_116 = arith.constant 0 : index
    %323 = vector.load %arg15[%c0_114, %c0_115, %c0_116] : memref<2x1x32xf32, #tpu.memory_space<vmem>>, vector<1x1x32xf32>
    %324 = vector.shape_cast %323 : vector<1x1x32xf32> to vector<1x32xf32>
    %cst_117 = arith.constant dense<0.000000e+00> : vector<16xf32>
    %325 = vector.multi_reduction <add>, %320, %cst_117 [1] : vector<16x32xf32> to vector<16xf32>
    %326 = vector.shape_cast %325 : vector<16xf32> to vector<16x1xf32>
    %cst_118 = arith.constant 3.200000e+01 : f32
    %327 = vector.broadcast %cst_118 : f32 to vector<16x1xf32>
    %328 = arith.divf %326, %327 : vector<16x1xf32>
    %329 = vector.broadcast %328 : vector<16x1xf32> to vector<16x32xf32>
    %330 = arith.subf %320, %329 : vector<16x32xf32>
    %331 = arith.mulf %330, %330 : vector<16x32xf32>
    %cst_119 = arith.constant dense<0.000000e+00> : vector<16xf32>
    %332 = vector.multi_reduction <add>, %331, %cst_119 [1] : vector<16x32xf32> to vector<16xf32>
    %333 = vector.shape_cast %332 : vector<16xf32> to vector<16x1xf32>
    %cst_120 = arith.constant 3.200000e+01 : f32
    %334 = vector.broadcast %cst_120 : f32 to vector<16x1xf32>
    %335 = arith.divf %333, %334 : vector<16x1xf32>
    %cst_121 = arith.constant 9.99999996E-13 : f32
    %336 = vector.broadcast %cst_121 : f32 to vector<16x1xf32>
    %337 = arith.addf %335, %336 : vector<16x1xf32>
    %338 = math.rsqrt %337 : vector<16x1xf32>
    %339 = vector.broadcast %338 : vector<16x1xf32> to vector<16x32xf32>
    %340 = arith.mulf %330, %339 : vector<16x32xf32>
    %341 = vector.broadcast %322 : vector<1x32xf32> to vector<16x32xf32>
    %342 = arith.mulf %340, %341 : vector<16x32xf32>
    %343 = vector.broadcast %324 : vector<1x32xf32> to vector<16x32xf32>
    %344 = arith.addf %342, %343 : vector<16x32xf32>
    %345 = arith.truncf %344 : vector<16x32xf32> to vector<16x32xbf16>
    %c1_122 = arith.constant 1 : index
    %c0_123 = arith.constant 0 : index
    %c0_124 = arith.constant 0 : index
    %346 = vector.load %arg4[%c1_122, %c0_123, %c0_124] : memref<2x32x96xbf16, #tpu.memory_space<vmem>>, vector<1x32x96xbf16>
    %347 = vector.shape_cast %346 : vector<1x32x96xbf16> to vector<32x96xbf16>
    %cst_125 = arith.constant dense<0.000000e+00> : vector<16x96xf32>
    %348 = tpu.matmul %345, %347, %cst_125 {dimension_numbers = #tpu.dot_dimension_numbers<[1], [0], [0], [1], [0, 0, 1, 1], [], []>} : vector<16x32xbf16>, vector<32x96xbf16>, vector<16x96xf32> -> vector<16x96xf32>
    %c1_126 = arith.constant 1 : index
    %c0_127 = arith.constant 0 : index
    %c0_128 = arith.constant 0 : index
    %349 = vector.load %arg5[%c1_126, %c0_127, %c0_128] : memref<2x1x96xf32, #tpu.memory_space<vmem>>, vector<1x1x96xf32>
    %350 = vector.shape_cast %349 : vector<1x1x96xf32> to vector<1x96xf32>
    %351 = vector.broadcast %350 : vector<1x96xf32> to vector<16x96xf32>
    %352 = arith.addf %348, %351 : vector<16x96xf32>
    %c1_129 = arith.constant 1 : index
    %c0_130 = arith.constant 0 : index
    %c0_131 = arith.constant 0 : index
    %353 = vector.load %arg6[%c1_129, %c0_130, %c0_131] : memref<2x32x32xf32, #tpu.memory_space<vmem>>, vector<1x32x32xf32>
    %354 = vector.shape_cast %353 : vector<1x32x32xf32> to vector<32x32xf32>
    %355 = vector.extract_strided_slice %352 {offsets = [0, 0], sizes = [8, 96], strides = [1, 1]} : vector<16x96xf32> to vector<8x96xf32>
    %c0_132 = arith.constant 0 : index
    %c0_133 = arith.constant 0 : index
    %c0_134 = arith.constant 0 : index
    %356 = vector.load %arg1[%c0_132, %c0_133, %c0_134] : memref<2x1x8xf32, #tpu.memory_space<vmem>>, vector<1x1x8xf32>
    %357 = vector.shape_cast %356 : vector<1x1x8xf32> to vector<1x8xf32>
    %358 = vector.shape_cast %357 : vector<1x8xf32> to vector<1x8xf32>
    %359 = vector.broadcast %358 : vector<1x8xf32> to vector<8x8xf32>
    %360 = vector.extract_strided_slice %355 {offsets = [0, 32], sizes = [8, 32], strides = [1, 1]} : vector<8x96xf32> to vector<8x32xf32>
    %361 = tpu.transpose %360, [1, 0] : vector<8x32xf32> -> vector<32x8xf32>
    %362 = arith.truncf %361 : vector<32x8xf32> to vector<32x8xbf16>
    %cst_135 = arith.constant 0.000000e+00 : f32
    %363 = vector.broadcast %cst_135 : f32 to vector<8x32xf32>
    %364 = vector.extract_strided_slice %355 {offsets = [0, 0], sizes = [8, 8], strides = [1, 1]} : vector<8x96xf32> to vector<8x8xf32>
    %365 = arith.truncf %364 : vector<8x8xf32> to vector<8x8xbf16>
    %366 = vector.extract_strided_slice %362 {offsets = [0, 0], sizes = [8, 8], strides = [1, 1]} : vector<32x8xbf16> to vector<8x8xbf16>
    %367 = vector.extract_strided_slice %355 {offsets = [0, 64], sizes = [8, 8], strides = [1, 1]} : vector<8x96xf32> to vector<8x8xf32>
    %368 = arith.truncf %367 : vector<8x8xf32> to vector<8x8xbf16>
    %cst_136 = arith.constant dense<0.000000e+00> : vector<8x8xf32>
    %369 = tpu.matmul %365, %366, %cst_136 {dimension_numbers = #tpu.dot_dimension_numbers<[1], [0], [0], [1], [0, 0, 1, 1], [], []>} : vector<8x8xbf16>, vector<8x8xbf16>, vector<8x8xf32> -> vector<8x8xf32>
    %cst_137 = arith.constant 0.353553385 : f32
    %370 = vector.broadcast %cst_137 : f32 to vector<8x8xf32>
    %371 = arith.mulf %369, %370 : vector<8x8xf32>
    %372 = arith.addf %371, %359 : vector<8x8xf32>
    %cst_138 = arith.constant dense<0xFF800000> : vector<8xf32>
    %373 = vector.multi_reduction <maximumf>, %372, %cst_138 [1] : vector<8x8xf32> to vector<8xf32>
    %374 = vector.shape_cast %373 : vector<8xf32> to vector<8x1xf32>
    %375 = vector.broadcast %374 : vector<8x1xf32> to vector<8x8xf32>
    %376 = arith.subf %372, %375 : vector<8x8xf32>
    %377 = math.exp %376 : vector<8x8xf32>
    %cst_139 = arith.constant dense<0.000000e+00> : vector<8xf32>
    %378 = vector.multi_reduction <add>, %377, %cst_139 [1] : vector<8x8xf32> to vector<8xf32>
    %379 = vector.shape_cast %378 : vector<8xf32> to vector<8x1xf32>
    %380 = tpu.reciprocal %379 {approx = true} : vector<8x1xf32> -> vector<8x1xf32>
    %381 = vector.broadcast %380 : vector<8x1xf32> to vector<8x8xf32>
    %382 = arith.mulf %377, %381 : vector<8x8xf32>
    %383 = arith.truncf %382 : vector<8x8xf32> to vector<8x8xbf16>
    %cst_140 = arith.constant dense<0.000000e+00> : vector<8x8xf32>
    %384 = tpu.matmul %383, %368, %cst_140 {dimension_numbers = #tpu.dot_dimension_numbers<[1], [0], [0], [1], [0, 0, 1, 1], [], []>} : vector<8x8xbf16>, vector<8x8xbf16>, vector<8x8xf32> -> vector<8x8xf32>
    %385 = arith.truncf %384 : vector<8x8xf32> to vector<8x8xbf16>
    %386 = vector.extract_strided_slice %354 {offsets = [0, 0], sizes = [8, 32], strides = [1, 1]} : vector<32x32xf32> to vector<8x32xf32>
    %387 = arith.truncf %386 : vector<8x32xf32> to vector<8x32xbf16>
    %cst_141 = arith.constant dense<0.000000e+00> : vector<8x32xf32>
    %388 = tpu.matmul %385, %387, %cst_141 {dimension_numbers = #tpu.dot_dimension_numbers<[1], [0], [0], [1], [0, 0, 1, 1], [], []>} : vector<8x8xbf16>, vector<8x32xbf16>, vector<8x32xf32> -> vector<8x32xf32>
    %389 = arith.addf %363, %388 : vector<8x32xf32>
    %390 = vector.extract_strided_slice %355 {offsets = [0, 8], sizes = [8, 8], strides = [1, 1]} : vector<8x96xf32> to vector<8x8xf32>
    %391 = arith.truncf %390 : vector<8x8xf32> to vector<8x8xbf16>
    %392 = vector.extract_strided_slice %362 {offsets = [8, 0], sizes = [8, 8], strides = [1, 1]} : vector<32x8xbf16> to vector<8x8xbf16>
    %393 = vector.extract_strided_slice %355 {offsets = [0, 72], sizes = [8, 8], strides = [1, 1]} : vector<8x96xf32> to vector<8x8xf32>
    %394 = arith.truncf %393 : vector<8x8xf32> to vector<8x8xbf16>
    %cst_142 = arith.constant dense<0.000000e+00> : vector<8x8xf32>
    %395 = tpu.matmul %391, %392, %cst_142 {dimension_numbers = #tpu.dot_dimension_numbers<[1], [0], [0], [1], [0, 0, 1, 1], [], []>} : vector<8x8xbf16>, vector<8x8xbf16>, vector<8x8xf32> -> vector<8x8xf32>
    %cst_143 = arith.constant 0.353553385 : f32
    %396 = vector.broadcast %cst_143 : f32 to vector<8x8xf32>
    %397 = arith.mulf %395, %396 : vector<8x8xf32>
    %398 = arith.addf %397, %359 : vector<8x8xf32>
    %cst_144 = arith.constant dense<0xFF800000> : vector<8xf32>
    %399 = vector.multi_reduction <maximumf>, %398, %cst_144 [1] : vector<8x8xf32> to vector<8xf32>
    %400 = vector.shape_cast %399 : vector<8xf32> to vector<8x1xf32>
    %401 = vector.broadcast %400 : vector<8x1xf32> to vector<8x8xf32>
    %402 = arith.subf %398, %401 : vector<8x8xf32>
    %403 = math.exp %402 : vector<8x8xf32>
    %cst_145 = arith.constant dense<0.000000e+00> : vector<8xf32>
    %404 = vector.multi_reduction <add>, %403, %cst_145 [1] : vector<8x8xf32> to vector<8xf32>
    %405 = vector.shape_cast %404 : vector<8xf32> to vector<8x1xf32>
    %406 = tpu.reciprocal %405 {approx = true} : vector<8x1xf32> -> vector<8x1xf32>
    %407 = vector.broadcast %406 : vector<8x1xf32> to vector<8x8xf32>
    %408 = arith.mulf %403, %407 : vector<8x8xf32>
    %409 = arith.truncf %408 : vector<8x8xf32> to vector<8x8xbf16>
    %cst_146 = arith.constant dense<0.000000e+00> : vector<8x8xf32>
    %410 = tpu.matmul %409, %394, %cst_146 {dimension_numbers = #tpu.dot_dimension_numbers<[1], [0], [0], [1], [0, 0, 1, 1], [], []>} : vector<8x8xbf16>, vector<8x8xbf16>, vector<8x8xf32> -> vector<8x8xf32>
    %411 = arith.truncf %410 : vector<8x8xf32> to vector<8x8xbf16>
    %412 = vector.extract_strided_slice %354 {offsets = [8, 0], sizes = [8, 32], strides = [1, 1]} : vector<32x32xf32> to vector<8x32xf32>
    %413 = arith.truncf %412 : vector<8x32xf32> to vector<8x32xbf16>
    %cst_147 = arith.constant dense<0.000000e+00> : vector<8x32xf32>
    %414 = tpu.matmul %411, %413, %cst_147 {dimension_numbers = #tpu.dot_dimension_numbers<[1], [0], [0], [1], [0, 0, 1, 1], [], []>} : vector<8x8xbf16>, vector<8x32xbf16>, vector<8x32xf32> -> vector<8x32xf32>
    %415 = arith.addf %389, %414 : vector<8x32xf32>
    %416 = vector.extract_strided_slice %355 {offsets = [0, 16], sizes = [8, 8], strides = [1, 1]} : vector<8x96xf32> to vector<8x8xf32>
    %417 = arith.truncf %416 : vector<8x8xf32> to vector<8x8xbf16>
    %418 = vector.extract_strided_slice %362 {offsets = [16, 0], sizes = [8, 8], strides = [1, 1]} : vector<32x8xbf16> to vector<8x8xbf16>
    %419 = vector.extract_strided_slice %355 {offsets = [0, 80], sizes = [8, 8], strides = [1, 1]} : vector<8x96xf32> to vector<8x8xf32>
    %420 = arith.truncf %419 : vector<8x8xf32> to vector<8x8xbf16>
    %cst_148 = arith.constant dense<0.000000e+00> : vector<8x8xf32>
    %421 = tpu.matmul %417, %418, %cst_148 {dimension_numbers = #tpu.dot_dimension_numbers<[1], [0], [0], [1], [0, 0, 1, 1], [], []>} : vector<8x8xbf16>, vector<8x8xbf16>, vector<8x8xf32> -> vector<8x8xf32>
    %cst_149 = arith.constant 0.353553385 : f32
    %422 = vector.broadcast %cst_149 : f32 to vector<8x8xf32>
    %423 = arith.mulf %421, %422 : vector<8x8xf32>
    %424 = arith.addf %423, %359 : vector<8x8xf32>
    %cst_150 = arith.constant dense<0xFF800000> : vector<8xf32>
    %425 = vector.multi_reduction <maximumf>, %424, %cst_150 [1] : vector<8x8xf32> to vector<8xf32>
    %426 = vector.shape_cast %425 : vector<8xf32> to vector<8x1xf32>
    %427 = vector.broadcast %426 : vector<8x1xf32> to vector<8x8xf32>
    %428 = arith.subf %424, %427 : vector<8x8xf32>
    %429 = math.exp %428 : vector<8x8xf32>
    %cst_151 = arith.constant dense<0.000000e+00> : vector<8xf32>
    %430 = vector.multi_reduction <add>, %429, %cst_151 [1] : vector<8x8xf32> to vector<8xf32>
    %431 = vector.shape_cast %430 : vector<8xf32> to vector<8x1xf32>
    %432 = tpu.reciprocal %431 {approx = true} : vector<8x1xf32> -> vector<8x1xf32>
    %433 = vector.broadcast %432 : vector<8x1xf32> to vector<8x8xf32>
    %434 = arith.mulf %429, %433 : vector<8x8xf32>
    %435 = arith.truncf %434 : vector<8x8xf32> to vector<8x8xbf16>
    %cst_152 = arith.constant dense<0.000000e+00> : vector<8x8xf32>
    %436 = tpu.matmul %435, %420, %cst_152 {dimension_numbers = #tpu.dot_dimension_numbers<[1], [0], [0], [1], [0, 0, 1, 1], [], []>} : vector<8x8xbf16>, vector<8x8xbf16>, vector<8x8xf32> -> vector<8x8xf32>
    %437 = arith.truncf %436 : vector<8x8xf32> to vector<8x8xbf16>
    %438 = vector.extract_strided_slice %354 {offsets = [16, 0], sizes = [8, 32], strides = [1, 1]} : vector<32x32xf32> to vector<8x32xf32>
    %439 = arith.truncf %438 : vector<8x32xf32> to vector<8x32xbf16>
    %cst_153 = arith.constant dense<0.000000e+00> : vector<8x32xf32>
    %440 = tpu.matmul %437, %439, %cst_153 {dimension_numbers = #tpu.dot_dimension_numbers<[1], [0], [0], [1], [0, 0, 1, 1], [], []>} : vector<8x8xbf16>, vector<8x32xbf16>, vector<8x32xf32> -> vector<8x32xf32>
    %441 = arith.addf %415, %440 : vector<8x32xf32>
    %442 = vector.extract_strided_slice %355 {offsets = [0, 24], sizes = [8, 8], strides = [1, 1]} : vector<8x96xf32> to vector<8x8xf32>
    %443 = arith.truncf %442 : vector<8x8xf32> to vector<8x8xbf16>
    %444 = vector.extract_strided_slice %362 {offsets = [24, 0], sizes = [8, 8], strides = [1, 1]} : vector<32x8xbf16> to vector<8x8xbf16>
    %445 = vector.extract_strided_slice %355 {offsets = [0, 88], sizes = [8, 8], strides = [1, 1]} : vector<8x96xf32> to vector<8x8xf32>
    %446 = arith.truncf %445 : vector<8x8xf32> to vector<8x8xbf16>
    %cst_154 = arith.constant dense<0.000000e+00> : vector<8x8xf32>
    %447 = tpu.matmul %443, %444, %cst_154 {dimension_numbers = #tpu.dot_dimension_numbers<[1], [0], [0], [1], [0, 0, 1, 1], [], []>} : vector<8x8xbf16>, vector<8x8xbf16>, vector<8x8xf32> -> vector<8x8xf32>
    %cst_155 = arith.constant 0.353553385 : f32
    %448 = vector.broadcast %cst_155 : f32 to vector<8x8xf32>
    %449 = arith.mulf %447, %448 : vector<8x8xf32>
    %450 = arith.addf %449, %359 : vector<8x8xf32>
    %cst_156 = arith.constant dense<0xFF800000> : vector<8xf32>
    %451 = vector.multi_reduction <maximumf>, %450, %cst_156 [1] : vector<8x8xf32> to vector<8xf32>
    %452 = vector.shape_cast %451 : vector<8xf32> to vector<8x1xf32>
    %453 = vector.broadcast %452 : vector<8x1xf32> to vector<8x8xf32>
    %454 = arith.subf %450, %453 : vector<8x8xf32>
    %455 = math.exp %454 : vector<8x8xf32>
    %cst_157 = arith.constant dense<0.000000e+00> : vector<8xf32>
    %456 = vector.multi_reduction <add>, %455, %cst_157 [1] : vector<8x8xf32> to vector<8xf32>
    %457 = vector.shape_cast %456 : vector<8xf32> to vector<8x1xf32>
    %458 = tpu.reciprocal %457 {approx = true} : vector<8x1xf32> -> vector<8x1xf32>
    %459 = vector.broadcast %458 : vector<8x1xf32> to vector<8x8xf32>
    %460 = arith.mulf %455, %459 : vector<8x8xf32>
    %461 = arith.truncf %460 : vector<8x8xf32> to vector<8x8xbf16>
    %cst_158 = arith.constant dense<0.000000e+00> : vector<8x8xf32>
    %462 = tpu.matmul %461, %446, %cst_158 {dimension_numbers = #tpu.dot_dimension_numbers<[1], [0], [0], [1], [0, 0, 1, 1], [], []>} : vector<8x8xbf16>, vector<8x8xbf16>, vector<8x8xf32> -> vector<8x8xf32>
    %463 = arith.truncf %462 : vector<8x8xf32> to vector<8x8xbf16>
    %464 = vector.extract_strided_slice %354 {offsets = [24, 0], sizes = [8, 32], strides = [1, 1]} : vector<32x32xf32> to vector<8x32xf32>
    %465 = arith.truncf %464 : vector<8x32xf32> to vector<8x32xbf16>
    %cst_159 = arith.constant dense<0.000000e+00> : vector<8x32xf32>
    %466 = tpu.matmul %463, %465, %cst_159 {dimension_numbers = #tpu.dot_dimension_numbers<[1], [0], [0], [1], [0, 0, 1, 1], [], []>} : vector<8x8xbf16>, vector<8x32xbf16>, vector<8x32xf32> -> vector<8x32xf32>
    %467 = arith.addf %441, %466 : vector<8x32xf32>
    %c0_160 = arith.constant 0 : index
    %c0_161 = arith.constant 0 : index
    %468 = vector.load %arg17[%c0_160, %c0_161] : memref<16x32xf32, #tpu.memory_space<vmem>>, vector<8x32xf32>
    tpu.vector_store %arg17[%c0_160, %c0_161], %467 {strides = array<i32>} : memref<16x32xf32, #tpu.memory_space<vmem>>, vector<8x32xf32>,
    %469 = vector.extract_strided_slice %352 {offsets = [8, 0], sizes = [8, 96], strides = [1, 1]} : vector<16x96xf32> to vector<8x96xf32>
    %c1_162 = arith.constant 1 : index
    %c0_163 = arith.constant 0 : index
    %c0_164 = arith.constant 0 : index
    %470 = vector.load %arg1[%c1_162, %c0_163, %c0_164] : memref<2x1x8xf32, #tpu.memory_space<vmem>>, vector<1x1x8xf32>
    %471 = vector.shape_cast %470 : vector<1x1x8xf32> to vector<1x8xf32>
    %472 = vector.shape_cast %471 : vector<1x8xf32> to vector<1x8xf32>
    %473 = vector.broadcast %472 : vector<1x8xf32> to vector<8x8xf32>
    %474 = vector.extract_strided_slice %469 {offsets = [0, 32], sizes = [8, 32], strides = [1, 1]} : vector<8x96xf32> to vector<8x32xf32>
    %475 = tpu.transpose %474, [1, 0] : vector<8x32xf32> -> vector<32x8xf32>
    %476 = arith.truncf %475 : vector<32x8xf32> to vector<32x8xbf16>
    %cst_165 = arith.constant 0.000000e+00 : f32
    %477 = vector.broadcast %cst_165 : f32 to vector<8x32xf32>
    %478 = vector.extract_strided_slice %469 {offsets = [0, 0], sizes = [8, 8], strides = [1, 1]} : vector<8x96xf32> to vector<8x8xf32>
    %479 = arith.truncf %478 : vector<8x8xf32> to vector<8x8xbf16>
    %480 = vector.extract_strided_slice %476 {offsets = [0, 0], sizes = [8, 8], strides = [1, 1]} : vector<32x8xbf16> to vector<8x8xbf16>
    %481 = vector.extract_strided_slice %469 {offsets = [0, 64], sizes = [8, 8], strides = [1, 1]} : vector<8x96xf32> to vector<8x8xf32>
    %482 = arith.truncf %481 : vector<8x8xf32> to vector<8x8xbf16>
    %cst_166 = arith.constant dense<0.000000e+00> : vector<8x8xf32>
    %483 = tpu.matmul %479, %480, %cst_166 {dimension_numbers = #tpu.dot_dimension_numbers<[1], [0], [0], [1], [0, 0, 1, 1], [], []>} : vector<8x8xbf16>, vector<8x8xbf16>, vector<8x8xf32> -> vector<8x8xf32>
    %cst_167 = arith.constant 0.353553385 : f32
    %484 = vector.broadcast %cst_167 : f32 to vector<8x8xf32>
    %485 = arith.mulf %483, %484 : vector<8x8xf32>
    %486 = arith.addf %485, %473 : vector<8x8xf32>
    %cst_168 = arith.constant dense<0xFF800000> : vector<8xf32>
    %487 = vector.multi_reduction <maximumf>, %486, %cst_168 [1] : vector<8x8xf32> to vector<8xf32>
    %488 = vector.shape_cast %487 : vector<8xf32> to vector<8x1xf32>
    %489 = vector.broadcast %488 : vector<8x1xf32> to vector<8x8xf32>
    %490 = arith.subf %486, %489 : vector<8x8xf32>
    %491 = math.exp %490 : vector<8x8xf32>
    %cst_169 = arith.constant dense<0.000000e+00> : vector<8xf32>
    %492 = vector.multi_reduction <add>, %491, %cst_169 [1] : vector<8x8xf32> to vector<8xf32>
    %493 = vector.shape_cast %492 : vector<8xf32> to vector<8x1xf32>
    %494 = tpu.reciprocal %493 {approx = true} : vector<8x1xf32> -> vector<8x1xf32>
    %495 = vector.broadcast %494 : vector<8x1xf32> to vector<8x8xf32>
    %496 = arith.mulf %491, %495 : vector<8x8xf32>
    %497 = arith.truncf %496 : vector<8x8xf32> to vector<8x8xbf16>
    %cst_170 = arith.constant dense<0.000000e+00> : vector<8x8xf32>
    %498 = tpu.matmul %497, %482, %cst_170 {dimension_numbers = #tpu.dot_dimension_numbers<[1], [0], [0], [1], [0, 0, 1, 1], [], []>} : vector<8x8xbf16>, vector<8x8xbf16>, vector<8x8xf32> -> vector<8x8xf32>
    %499 = arith.truncf %498 : vector<8x8xf32> to vector<8x8xbf16>
    %500 = vector.extract_strided_slice %354 {offsets = [0, 0], sizes = [8, 32], strides = [1, 1]} : vector<32x32xf32> to vector<8x32xf32>
    %501 = arith.truncf %500 : vector<8x32xf32> to vector<8x32xbf16>
    %cst_171 = arith.constant dense<0.000000e+00> : vector<8x32xf32>
    %502 = tpu.matmul %499, %501, %cst_171 {dimension_numbers = #tpu.dot_dimension_numbers<[1], [0], [0], [1], [0, 0, 1, 1], [], []>} : vector<8x8xbf16>, vector<8x32xbf16>, vector<8x32xf32> -> vector<8x32xf32>
    %503 = arith.addf %477, %502 : vector<8x32xf32>
    %504 = vector.extract_strided_slice %469 {offsets = [0, 8], sizes = [8, 8], strides = [1, 1]} : vector<8x96xf32> to vector<8x8xf32>
    %505 = arith.truncf %504 : vector<8x8xf32> to vector<8x8xbf16>
    %506 = vector.extract_strided_slice %476 {offsets = [8, 0], sizes = [8, 8], strides = [1, 1]} : vector<32x8xbf16> to vector<8x8xbf16>
    %507 = vector.extract_strided_slice %469 {offsets = [0, 72], sizes = [8, 8], strides = [1, 1]} : vector<8x96xf32> to vector<8x8xf32>
    %508 = arith.truncf %507 : vector<8x8xf32> to vector<8x8xbf16>
    %cst_172 = arith.constant dense<0.000000e+00> : vector<8x8xf32>
    %509 = tpu.matmul %505, %506, %cst_172 {dimension_numbers = #tpu.dot_dimension_numbers<[1], [0], [0], [1], [0, 0, 1, 1], [], []>} : vector<8x8xbf16>, vector<8x8xbf16>, vector<8x8xf32> -> vector<8x8xf32>
    %cst_173 = arith.constant 0.353553385 : f32
    %510 = vector.broadcast %cst_173 : f32 to vector<8x8xf32>
    %511 = arith.mulf %509, %510 : vector<8x8xf32>
    %512 = arith.addf %511, %473 : vector<8x8xf32>
    %cst_174 = arith.constant dense<0xFF800000> : vector<8xf32>
    %513 = vector.multi_reduction <maximumf>, %512, %cst_174 [1] : vector<8x8xf32> to vector<8xf32>
    %514 = vector.shape_cast %513 : vector<8xf32> to vector<8x1xf32>
    %515 = vector.broadcast %514 : vector<8x1xf32> to vector<8x8xf32>
    %516 = arith.subf %512, %515 : vector<8x8xf32>
    %517 = math.exp %516 : vector<8x8xf32>
    %cst_175 = arith.constant dense<0.000000e+00> : vector<8xf32>
    %518 = vector.multi_reduction <add>, %517, %cst_175 [1] : vector<8x8xf32> to vector<8xf32>
    %519 = vector.shape_cast %518 : vector<8xf32> to vector<8x1xf32>
    %520 = tpu.reciprocal %519 {approx = true} : vector<8x1xf32> -> vector<8x1xf32>
    %521 = vector.broadcast %520 : vector<8x1xf32> to vector<8x8xf32>
    %522 = arith.mulf %517, %521 : vector<8x8xf32>
    %523 = arith.truncf %522 : vector<8x8xf32> to vector<8x8xbf16>
    %cst_176 = arith.constant dense<0.000000e+00> : vector<8x8xf32>
    %524 = tpu.matmul %523, %508, %cst_176 {dimension_numbers = #tpu.dot_dimension_numbers<[1], [0], [0], [1], [0, 0, 1, 1], [], []>} : vector<8x8xbf16>, vector<8x8xbf16>, vector<8x8xf32> -> vector<8x8xf32>
    %525 = arith.truncf %524 : vector<8x8xf32> to vector<8x8xbf16>
    %526 = vector.extract_strided_slice %354 {offsets = [8, 0], sizes = [8, 32], strides = [1, 1]} : vector<32x32xf32> to vector<8x32xf32>
    %527 = arith.truncf %526 : vector<8x32xf32> to vector<8x32xbf16>
    %cst_177 = arith.constant dense<0.000000e+00> : vector<8x32xf32>
    %528 = tpu.matmul %525, %527, %cst_177 {dimension_numbers = #tpu.dot_dimension_numbers<[1], [0], [0], [1], [0, 0, 1, 1], [], []>} : vector<8x8xbf16>, vector<8x32xbf16>, vector<8x32xf32> -> vector<8x32xf32>
    %529 = arith.addf %503, %528 : vector<8x32xf32>
    %530 = vector.extract_strided_slice %469 {offsets = [0, 16], sizes = [8, 8], strides = [1, 1]} : vector<8x96xf32> to vector<8x8xf32>
    %531 = arith.truncf %530 : vector<8x8xf32> to vector<8x8xbf16>
    %532 = vector.extract_strided_slice %476 {offsets = [16, 0], sizes = [8, 8], strides = [1, 1]} : vector<32x8xbf16> to vector<8x8xbf16>
    %533 = vector.extract_strided_slice %469 {offsets = [0, 80], sizes = [8, 8], strides = [1, 1]} : vector<8x96xf32> to vector<8x8xf32>
    %534 = arith.truncf %533 : vector<8x8xf32> to vector<8x8xbf16>
    %cst_178 = arith.constant dense<0.000000e+00> : vector<8x8xf32>
    %535 = tpu.matmul %531, %532, %cst_178 {dimension_numbers = #tpu.dot_dimension_numbers<[1], [0], [0], [1], [0, 0, 1, 1], [], []>} : vector<8x8xbf16>, vector<8x8xbf16>, vector<8x8xf32> -> vector<8x8xf32>
    %cst_179 = arith.constant 0.353553385 : f32
    %536 = vector.broadcast %cst_179 : f32 to vector<8x8xf32>
    %537 = arith.mulf %535, %536 : vector<8x8xf32>
    %538 = arith.addf %537, %473 : vector<8x8xf32>
    %cst_180 = arith.constant dense<0xFF800000> : vector<8xf32>
    %539 = vector.multi_reduction <maximumf>, %538, %cst_180 [1] : vector<8x8xf32> to vector<8xf32>
    %540 = vector.shape_cast %539 : vector<8xf32> to vector<8x1xf32>
    %541 = vector.broadcast %540 : vector<8x1xf32> to vector<8x8xf32>
    %542 = arith.subf %538, %541 : vector<8x8xf32>
    %543 = math.exp %542 : vector<8x8xf32>
    %cst_181 = arith.constant dense<0.000000e+00> : vector<8xf32>
    %544 = vector.multi_reduction <add>, %543, %cst_181 [1] : vector<8x8xf32> to vector<8xf32>
    %545 = vector.shape_cast %544 : vector<8xf32> to vector<8x1xf32>
    %546 = tpu.reciprocal %545 {approx = true} : vector<8x1xf32> -> vector<8x1xf32>
    %547 = vector.broadcast %546 : vector<8x1xf32> to vector<8x8xf32>
    %548 = arith.mulf %543, %547 : vector<8x8xf32>
    %549 = arith.truncf %548 : vector<8x8xf32> to vector<8x8xbf16>
    %cst_182 = arith.constant dense<0.000000e+00> : vector<8x8xf32>
    %550 = tpu.matmul %549, %534, %cst_182 {dimension_numbers = #tpu.dot_dimension_numbers<[1], [0], [0], [1], [0, 0, 1, 1], [], []>} : vector<8x8xbf16>, vector<8x8xbf16>, vector<8x8xf32> -> vector<8x8xf32>
    %551 = arith.truncf %550 : vector<8x8xf32> to vector<8x8xbf16>
    %552 = vector.extract_strided_slice %354 {offsets = [16, 0], sizes = [8, 32], strides = [1, 1]} : vector<32x32xf32> to vector<8x32xf32>
    %553 = arith.truncf %552 : vector<8x32xf32> to vector<8x32xbf16>
    %cst_183 = arith.constant dense<0.000000e+00> : vector<8x32xf32>
    %554 = tpu.matmul %551, %553, %cst_183 {dimension_numbers = #tpu.dot_dimension_numbers<[1], [0], [0], [1], [0, 0, 1, 1], [], []>} : vector<8x8xbf16>, vector<8x32xbf16>, vector<8x32xf32> -> vector<8x32xf32>
    %555 = arith.addf %529, %554 : vector<8x32xf32>
    %556 = vector.extract_strided_slice %469 {offsets = [0, 24], sizes = [8, 8], strides = [1, 1]} : vector<8x96xf32> to vector<8x8xf32>
    %557 = arith.truncf %556 : vector<8x8xf32> to vector<8x8xbf16>
    %558 = vector.extract_strided_slice %476 {offsets = [24, 0], sizes = [8, 8], strides = [1, 1]} : vector<32x8xbf16> to vector<8x8xbf16>
    %559 = vector.extract_strided_slice %469 {offsets = [0, 88], sizes = [8, 8], strides = [1, 1]} : vector<8x96xf32> to vector<8x8xf32>
    %560 = arith.truncf %559 : vector<8x8xf32> to vector<8x8xbf16>
    %cst_184 = arith.constant dense<0.000000e+00> : vector<8x8xf32>
    %561 = tpu.matmul %557, %558, %cst_184 {dimension_numbers = #tpu.dot_dimension_numbers<[1], [0], [0], [1], [0, 0, 1, 1], [], []>} : vector<8x8xbf16>, vector<8x8xbf16>, vector<8x8xf32> -> vector<8x8xf32>
    %cst_185 = arith.constant 0.353553385 : f32
    %562 = vector.broadcast %cst_185 : f32 to vector<8x8xf32>
    %563 = arith.mulf %561, %562 : vector<8x8xf32>
    %564 = arith.addf %563, %473 : vector<8x8xf32>
    %cst_186 = arith.constant dense<0xFF800000> : vector<8xf32>
    %565 = vector.multi_reduction <maximumf>, %564, %cst_186 [1] : vector<8x8xf32> to vector<8xf32>
    %566 = vector.shape_cast %565 : vector<8xf32> to vector<8x1xf32>
    %567 = vector.broadcast %566 : vector<8x1xf32> to vector<8x8xf32>
    %568 = arith.subf %564, %567 : vector<8x8xf32>
    %569 = math.exp %568 : vector<8x8xf32>
    %cst_187 = arith.constant dense<0.000000e+00> : vector<8xf32>
    %570 = vector.multi_reduction <add>, %569, %cst_187 [1] : vector<8x8xf32> to vector<8xf32>
    %571 = vector.shape_cast %570 : vector<8xf32> to vector<8x1xf32>
    %572 = tpu.reciprocal %571 {approx = true} : vector<8x1xf32> -> vector<8x1xf32>
    %573 = vector.broadcast %572 : vector<8x1xf32> to vector<8x8xf32>
    %574 = arith.mulf %569, %573 : vector<8x8xf32>
    %575 = arith.truncf %574 : vector<8x8xf32> to vector<8x8xbf16>
    %cst_188 = arith.constant dense<0.000000e+00> : vector<8x8xf32>
    %576 = tpu.matmul %575, %560, %cst_188 {dimension_numbers = #tpu.dot_dimension_numbers<[1], [0], [0], [1], [0, 0, 1, 1], [], []>} : vector<8x8xbf16>, vector<8x8xbf16>, vector<8x8xf32> -> vector<8x8xf32>
    %577 = arith.truncf %576 : vector<8x8xf32> to vector<8x8xbf16>
    %578 = vector.extract_strided_slice %354 {offsets = [24, 0], sizes = [8, 32], strides = [1, 1]} : vector<32x32xf32> to vector<8x32xf32>
    %579 = arith.truncf %578 : vector<8x32xf32> to vector<8x32xbf16>
    %cst_189 = arith.constant dense<0.000000e+00> : vector<8x32xf32>
    %580 = tpu.matmul %577, %579, %cst_189 {dimension_numbers = #tpu.dot_dimension_numbers<[1], [0], [0], [1], [0, 0, 1, 1], [], []>} : vector<8x8xbf16>, vector<8x32xbf16>, vector<8x32xf32> -> vector<8x32xf32>
    %581 = arith.addf %555, %580 : vector<8x32xf32>
    %c8_190 = arith.constant 8 : index
    %c0_191 = arith.constant 0 : index
    %582 = vector.load %arg17[%c8_190, %c0_191] : memref<16x32xf32, #tpu.memory_space<vmem>>, vector<8x32xf32>
    tpu.vector_store %arg17[%c8_190, %c0_191], %581 {strides = array<i32>} : memref<16x32xf32, #tpu.memory_space<vmem>>, vector<8x32xf32>,
    %c0_192 = arith.constant 0 : index
    %c0_193 = arith.constant 0 : index
    %583 = vector.load %arg17[%c0_192, %c0_193] : memref<16x32xf32, #tpu.memory_space<vmem>>, vector<16x32xf32>
    %c1_194 = arith.constant 1 : index
    %c0_195 = arith.constant 0 : index
    %c0_196 = arith.constant 0 : index
    %584 = vector.load %arg7[%c1_194, %c0_195, %c0_196] : memref<2x1x32xf32, #tpu.memory_space<vmem>>, vector<1x1x32xf32>
    %585 = vector.shape_cast %584 : vector<1x1x32xf32> to vector<1x32xf32>
    %586 = vector.broadcast %585 : vector<1x32xf32> to vector<16x32xf32>
    %587 = arith.addf %583, %586 : vector<16x32xf32>
    %588 = arith.addf %587, %344 : vector<16x32xf32>
    %c1_197 = arith.constant 1 : index
    %c0_198 = arith.constant 0 : index
    %c0_199 = arith.constant 0 : index
    %589 = vector.load %arg8[%c1_197, %c0_198, %c0_199] : memref<2x1x32xf32, #tpu.memory_space<vmem>>, vector<1x1x32xf32>
    %590 = vector.shape_cast %589 : vector<1x1x32xf32> to vector<1x32xf32>
    %c1_200 = arith.constant 1 : index
    %c0_201 = arith.constant 0 : index
    %c0_202 = arith.constant 0 : index
    %591 = vector.load %arg9[%c1_200, %c0_201, %c0_202] : memref<2x1x32xf32, #tpu.memory_space<vmem>>, vector<1x1x32xf32>
    %592 = vector.shape_cast %591 : vector<1x1x32xf32> to vector<1x32xf32>
    %cst_203 = arith.constant dense<0.000000e+00> : vector<16xf32>
    %593 = vector.multi_reduction <add>, %588, %cst_203 [1] : vector<16x32xf32> to vector<16xf32>
    %594 = vector.shape_cast %593 : vector<16xf32> to vector<16x1xf32>
    %cst_204 = arith.constant 3.200000e+01 : f32
    %595 = vector.broadcast %cst_204 : f32 to vector<16x1xf32>
    %596 = arith.divf %594, %595 : vector<16x1xf32>
    %597 = vector.broadcast %596 : vector<16x1xf32> to vector<16x32xf32>
    %598 = arith.subf %588, %597 : vector<16x32xf32>
    %599 = arith.mulf %598, %598 : vector<16x32xf32>
    %cst_205 = arith.constant dense<0.000000e+00> : vector<16xf32>
    %600 = vector.multi_reduction <add>, %599, %cst_205 [1] : vector<16x32xf32> to vector<16xf32>
    %601 = vector.shape_cast %600 : vector<16xf32> to vector<16x1xf32>
    %cst_206 = arith.constant 3.200000e+01 : f32
    %602 = vector.broadcast %cst_206 : f32 to vector<16x1xf32>
    %603 = arith.divf %601, %602 : vector<16x1xf32>
    %cst_207 = arith.constant 9.99999996E-13 : f32
    %604 = vector.broadcast %cst_207 : f32 to vector<16x1xf32>
    %605 = arith.addf %603, %604 : vector<16x1xf32>
    %606 = math.rsqrt %605 : vector<16x1xf32>
    %607 = vector.broadcast %606 : vector<16x1xf32> to vector<16x32xf32>
    %608 = arith.mulf %598, %607 : vector<16x32xf32>
    %609 = vector.broadcast %590 : vector<1x32xf32> to vector<16x32xf32>
    %610 = arith.mulf %608, %609 : vector<16x32xf32>
    %611 = vector.broadcast %592 : vector<1x32xf32> to vector<16x32xf32>
    %612 = arith.addf %610, %611 : vector<16x32xf32>
    %613 = arith.truncf %612 : vector<16x32xf32> to vector<16x32xbf16>
    %c1_208 = arith.constant 1 : index
    %c0_209 = arith.constant 0 : index
    %c0_210 = arith.constant 0 : index
    %614 = vector.load %arg10[%c1_208, %c0_209, %c0_210] : memref<2x32x64xbf16, #tpu.memory_space<vmem>>, vector<1x32x64xbf16>
    %615 = vector.shape_cast %614 : vector<1x32x64xbf16> to vector<32x64xbf16>
    %cst_211 = arith.constant dense<0.000000e+00> : vector<16x64xf32>
    %616 = tpu.matmul %613, %615, %cst_211 {dimension_numbers = #tpu.dot_dimension_numbers<[1], [0], [0], [1], [0, 0, 1, 1], [], []>} : vector<16x32xbf16>, vector<32x64xbf16>, vector<16x64xf32> -> vector<16x64xf32>
    %c1_212 = arith.constant 1 : index
    %c0_213 = arith.constant 0 : index
    %c0_214 = arith.constant 0 : index
    %617 = vector.load %arg11[%c1_212, %c0_213, %c0_214] : memref<2x1x64xf32, #tpu.memory_space<vmem>>, vector<1x1x64xf32>
    %618 = vector.shape_cast %617 : vector<1x1x64xf32> to vector<1x64xf32>
    %619 = vector.broadcast %618 : vector<1x64xf32> to vector<16x64xf32>
    %620 = arith.addf %616, %619 : vector<16x64xf32>
    %621 = arith.mulf %620, %620 : vector<16x64xf32>
    %622 = arith.mulf %620, %621 : vector<16x64xf32>
    %cst_215 = arith.constant 4.471500e-02 : f32
    %623 = vector.broadcast %cst_215 : f32 to vector<16x64xf32>
    %624 = arith.mulf %623, %622 : vector<16x64xf32>
    %625 = arith.addf %620, %624 : vector<16x64xf32>
    %cst_216 = arith.constant 0.797884583 : f32
    %626 = vector.broadcast %cst_216 : f32 to vector<16x64xf32>
    %627 = arith.mulf %626, %625 : vector<16x64xf32>
    %628 = math.tanh %627 : vector<16x64xf32>
    %cst_217 = arith.constant 1.000000e+00 : f32
    %629 = vector.broadcast %cst_217 : f32 to vector<16x64xf32>
    %630 = arith.addf %629, %628 : vector<16x64xf32>
    %cst_218 = arith.constant 5.000000e-01 : f32
    %631 = vector.broadcast %cst_218 : f32 to vector<16x64xf32>
    %632 = arith.mulf %631, %630 : vector<16x64xf32>
    %633 = arith.mulf %620, %632 : vector<16x64xf32>
    %634 = arith.truncf %633 : vector<16x64xf32> to vector<16x64xbf16>
    %c1_219 = arith.constant 1 : index
    %c0_220 = arith.constant 0 : index
    %c0_221 = arith.constant 0 : index
    %635 = vector.load %arg12[%c1_219, %c0_220, %c0_221] : memref<2x64x32xbf16, #tpu.memory_space<vmem>>, vector<1x64x32xbf16>
    %636 = vector.shape_cast %635 : vector<1x64x32xbf16> to vector<64x32xbf16>
    %cst_222 = arith.constant dense<0.000000e+00> : vector<16x32xf32>
    %637 = tpu.matmul %634, %636, %cst_222 {dimension_numbers = #tpu.dot_dimension_numbers<[1], [0], [0], [1], [0, 0, 1, 1], [], []>} : vector<16x64xbf16>, vector<64x32xbf16>, vector<16x32xf32> -> vector<16x32xf32>
    %c1_223 = arith.constant 1 : index
    %c0_224 = arith.constant 0 : index
    %c0_225 = arith.constant 0 : index
    %638 = vector.load %arg13[%c1_223, %c0_224, %c0_225] : memref<2x1x32xf32, #tpu.memory_space<vmem>>, vector<1x1x32xf32>
    %639 = vector.shape_cast %638 : vector<1x1x32xf32> to vector<1x32xf32>
    %640 = vector.broadcast %639 : vector<1x32xf32> to vector<16x32xf32>
    %641 = arith.addf %637, %640 : vector<16x32xf32>
    %642 = arith.addf %641, %612 : vector<16x32xf32>
    %c1_226 = arith.constant 1 : index
    %c0_227 = arith.constant 0 : index
    %c0_228 = arith.constant 0 : index
    %643 = vector.load %arg14[%c1_226, %c0_227, %c0_228] : memref<2x1x32xf32, #tpu.memory_space<vmem>>, vector<1x1x32xf32>
    %644 = vector.shape_cast %643 : vector<1x1x32xf32> to vector<1x32xf32>
    %c1_229 = arith.constant 1 : index
    %c0_230 = arith.constant 0 : index
    %c0_231 = arith.constant 0 : index
    %645 = vector.load %arg15[%c1_229, %c0_230, %c0_231] : memref<2x1x32xf32, #tpu.memory_space<vmem>>, vector<1x1x32xf32>
    %646 = vector.shape_cast %645 : vector<1x1x32xf32> to vector<1x32xf32>
    %cst_232 = arith.constant dense<0.000000e+00> : vector<16xf32>
    %647 = vector.multi_reduction <add>, %642, %cst_232 [1] : vector<16x32xf32> to vector<16xf32>
    %648 = vector.shape_cast %647 : vector<16xf32> to vector<16x1xf32>
    %cst_233 = arith.constant 3.200000e+01 : f32
    %649 = vector.broadcast %cst_233 : f32 to vector<16x1xf32>
    %650 = arith.divf %648, %649 : vector<16x1xf32>
    %651 = vector.broadcast %650 : vector<16x1xf32> to vector<16x32xf32>
    %652 = arith.subf %642, %651 : vector<16x32xf32>
    %653 = arith.mulf %652, %652 : vector<16x32xf32>
    %cst_234 = arith.constant dense<0.000000e+00> : vector<16xf32>
    %654 = vector.multi_reduction <add>, %653, %cst_234 [1] : vector<16x32xf32> to vector<16xf32>
    %655 = vector.shape_cast %654 : vector<16xf32> to vector<16x1xf32>
    %cst_235 = arith.constant 3.200000e+01 : f32
    %656 = vector.broadcast %cst_235 : f32 to vector<16x1xf32>
    %657 = arith.divf %655, %656 : vector<16x1xf32>
    %cst_236 = arith.constant 9.99999996E-13 : f32
    %658 = vector.broadcast %cst_236 : f32 to vector<16x1xf32>
    %659 = arith.addf %657, %658 : vector<16x1xf32>
    %660 = math.rsqrt %659 : vector<16x1xf32>
    %661 = vector.broadcast %660 : vector<16x1xf32> to vector<16x32xf32>
    %662 = arith.mulf %652, %661 : vector<16x32xf32>
    %663 = vector.broadcast %644 : vector<1x32xf32> to vector<16x32xf32>
    %664 = arith.mulf %662, %663 : vector<16x32xf32>
    %665 = vector.broadcast %646 : vector<1x32xf32> to vector<16x32xf32>
    %666 = arith.addf %664, %665 : vector<16x32xf32>
    %c0_237 = arith.constant 0 : index
    %c0_238 = arith.constant 0 : index
    %667 = vector.load %arg16[%c0_237, %c0_238] : memref<16x32xf32, #tpu.memory_space<vmem>>, vector<16x32xf32>
    tpu.vector_store %arg16[%c0_237, %c0_238], %666 {strides = array<i32>} : memref<16x32xf32, #tpu.memory_space<vmem>>, vector<16x32xf32>,
    return
  }
}

</mosaic_0001>

<bundles_post_ra>
// kernel: bert_model_forward.1
= control target key start
LH: loop header
LB: loop body
LE: loop exit
PB: predicated region body
PF: predicated region fallthrough
CT: control target
= control target key end

     0   :  { %vm58_vm0 = vcmask 261120   ;;  %v4268_v15 = vmov 0.0   ;;  %vm4269_vm1 = vmmov 0   ;;  %s4271_s20 = smov 120   ;;  %vm224_vm2 = vcmask 1043456   ;;  %s4273_s24 = smov 56   ;;  %s4999_s0 = inlined_call_operand.vmem [shape: f32[16,32], index: 0, kind: input, shape index: {}]   ;;  %s5000_s4 = inlined_call_operand.vmem [shape: bf16[2,32,96], index: 4, kind: input, shape index: {}]   ;;  %s5001_s2 = inlined_call_operand.vmem [shape: f32[1,32], index: 2, kind: input, shape index: {}]   ;;  %s5002_s3 = inlined_call_operand.vmem [shape: f32[1,32], index: 3, kind: input, shape index: {}]   ;;  %s5003_s5 = inlined_call_operand.vmem [shape: f32[2,1,96], index: 5, kind: input, shape index: {}]   ;;  %s5004_s1 = inlined_call_operand.vmem [shape: f32[2,1,8], index: 1, kind: input, shape index: {}]   ;;  %s5005_s6 = inlined_call_operand.vmem [shape: f32[2,32,32], index: 6, kind: input, shape index: {}]   ;;  %s5006_s7 = inlined_call_operand.vmem [shape: f32[2,1,32], index: 7, kind: input, shape index: {}]   ;;  %s5007_s10 = inlined_call_operand.vmem [shape: bf16[2,32,64], index: 10, kind: input, shape index: {}]   ;;  %s5008_s8 = inlined_call_operand.vmem [shape: f32[2,1,32], index: 8, kind: input, shape index: {}]   ;;  %s5009_s9 = inlined_call_operand.vmem [shape: f32[2,1,32], index: 9, kind: input, shape index: {}]   ;;  %s5010_s12 = inlined_call_operand.vmem [shape: bf16[2,64,32], index: 12, kind: input, shape index: {}]   ;;  %s5011_s11 = inlined_call_operand.vmem [shape: f32[2,1,64], index: 11, kind: input, shape index: {}]   ;;  %s5012_s13 = inlined_call_operand.vmem [shape: f32[2,1,32], index: 13, kind: input, shape index: {}]   ;;  %s5013_s14 = inlined_call_operand.vmem [shape: f32[2,1,32], index: 14, kind: input, shape index: {}]   ;;  %s5014_s15 = inlined_call_operand.vmem [shape: f32[2,1,32], index: 15, kind: input, shape index: {}]   ;;  %s5015_s16 = inlined_call_operand.vmem [shape: f32[16,32], index: 16, kind: output, shape index: {}]  }
   0x1   :  { %5017 = sst [smem:[#allocation3_spill]] %s4999_s0  ;;  %v4160_v14 = vld [vmem:[%s5000_s4] sm:$0xff]   ;;  %3758 = vmatprep.subr.bf16.mxu0 %v4268_v15  ;;  %3772 = vmatprep.subr.bf16.mxu1 %v4268_v15  ;;  %v4161_v16 = vld [vmem:[%s5000_s4 + $0x8] sm:$0xff]   ;;  %vm220_vm3 = vcmask 64512   ;;  %s4274_s25 = smov 112   ;;  %vm1712_vm4 = vcmask 523264  }
   0x2   :  { %s5018_s23 = sld [smem:[#allocation3_spill]]  ;;  %3759 = vmatpush3.bf16.msra.mxu0 %v4160_v14  ;;  %3762 = vmatprep.mubr.msk.bf16.mxu0 %vm4269_vm1, %v4268_v15  ;;  %v3518_v25 = vld [vmem:[%s5001_s2] ss:$0 sm:$0xff]  ;;  %s4275_s30 = smov 104  }
   0x3   :  { %3760 = vmatprep.subr.bf16.mxu0 %v4268_v15  ;;  %3774 = vmatprep.mubr.msk.bf16.mxu1 %vm4269_vm1, %v4268_v15  ;;  %v3519_v29 = vld [vmem:[%s5002_s3] ss:$0 sm:$0xff]  ;;  %s4270_s3 = smov 96   ;;  %s4276_s0 = smov 48  }
   0x4   :  { %v3520_v34 = vld [vmem:[%s5003_s5] ss:$0 sm:$0xff]  ;;  %s4277_s2 = smov 40  }
   0x5   :  { %v4426_v51 = vld [vmem:[%s5004_s1] ss:$0 sm:$0xff] }
   0x6   :  { %3761 = vmatpush3.bf16.msra.mxu0 %v4161_v16 }
   0x7   :  { %3766 = vmatprep.subr.bf16.mxu0 %v4268_v15 }
   0x8   :  { %v54_v0 = vld [vmem:[%s5018_s23] sm:$0xff]  ;;  %v55_v1 = vld [vmem:[%s5018_s23 + $0x8] sm:$0xff]  ;;  %s4272_s23 = smov 64  }
   0x9   :  { %v59_v2 = vsel %vm58_vm0, %v54_v0, 0.0  ;;  %v62_v3 = vsel %vm58_vm0, %v55_v1, 0.0 }
   0xa   :  { %60 = vadd.xlane.f32.xlu0 %v59_v2 }
   0xe   :  { %63 = vadd.xlane.f32.xlu0 %v62_v3 }
  0x97   :  { %v61_v4 = vpop.xlane.xlu0 %60 }
  0x98   :  { %v66_v5 = vmul.f32 0.03125, %v61_v4 }
  0x9a   :  { %v68_v6 = vsub.f32 %v54_v0, %v66_v5 }
  0x9b   :  { %v64_v7 = vpop.xlane.xlu0 %63 }
  0x9c   :  { %v67_v8 = vmul.f32 0.03125, %v64_v7  ;;  %v70_v9 = vmul.f32 %v68_v6, %v68_v6 }
  0x9e   :  { %v69_v10 = vsub.f32 %v55_v1, %v67_v8  ;;  %v72_v11 = vsel %vm58_vm0, %v70_v9, 0.0 }
  0x9f   :  { %73 = vadd.xlane.f32.xlu1 %v72_v11 }
  0xa0   :  { %v71_v12 = vmul.f32 %v69_v10, %v69_v10 }
  0xa2   :  { %v75_v13 = vsel %vm58_vm0, %v71_v12, 0.0 }
  0xa3   :  { %76 = vadd.xlane.f32.xlu1 %v75_v13 }
 0x12c   :  { %v74_v17 = vpop.xlane.xlu1 %73 }
 0x12d   :  { %v78_v18 = vmul.f32 0.03125, %v74_v17 }
 0x12f   :  { %v80_v19 = vadd.f32 1e-12, %v78_v18 }
 0x130   :  { %v77_v20 = vpop.xlane.xlu1 %76 }
 0x131   :  { %4176 = vrsqrt.f32 %v80_v19  ;;  %v79_v21 = vmul.f32 0.03125, %v77_v20 }
 0x133   :  { %v81_v22 = vadd.f32 1e-12, %v79_v21 }
 0x135   :  { %4178 = vrsqrt.f32 %v81_v22 }
 0x13b   :  { %v4177_v23 = vpop.eup %4176 }
 0x13c   :  { %v84_v24 = vmul.f32 %v4177_v23, %v68_v6 }
 0x13e   :  { %v92_v28 = vmul.f32 %v3518_v25, %v84_v24 }
 0x13f   :  { %v4179_v26 = vpop.eup %4178 }
 0x140   :  { %v85_v27 = vmul.f32 %v4179_v26, %v69_v10  ;;  %v4393_v31 = vadd.f32 %v3519_v29, %v92_v28 }
 0x142   :  { %v93_v30 = vmul.f32 %v3518_v25, %v85_v27 }
 0x144   :  { %v4395_v32 = vadd.f32 %v3519_v29, %v93_v30  ;;  %v171_v29 = vld [vmem:[%s5005_s6 + $0x8] sm:$0xff] }
 0x145   :  { %v446_v30 = vpack.c.bf16 %v171_v29, %v171_v29 }
 0x146   :  { %v102_v33 = vpack.c.bf16 %v4395_v32, %v4393_v31 }
 0x148   :  { %3763 = vmatmul.mubr.msk.bf16.vlgmr.msra.gmra.mrb[0].mxu0 %vm58_vm0, %v102_v33  ;;  %v4462_v33 = vsel %vm224_vm2, %v446_v30, 0 }
 0x149   :  { %3768 = vmatprep.mubr.msk.bf16.mxu0 %vm4269_vm1, %v4268_v15 }
 0x21b   :  { %v163_v35 = vpop.f32.mrb[0].mxu0 }
 0x21c   :  { %v164_v36 = vadd.f32 %v3520_v34, %v163_v35  ;;  %v3764_v37 = vpop.f32.mrb[1].mxu0 }
 0x21d   :  { %v166_v38 = vpop.f32.mrb[2].mxu0  ;;  %v170_v37 = vld [vmem:[%s5005_s6] sm:$0xff] }
 0x21e   :  { %v4405_v39 = vpack.c.bf16 %v164_v36, %v164_v36  ;;  %v4407_v40 = vadd.f32 %v3520_v34, %v166_v38  ;;  %182 = vrot.lane.b32.xlu0 %v164_v36, %s4270_s3  ;;  %v3765_v41 = vpop.f32.mrb[3].mxu0 }
 0x21f   :  { %v332_v41 = vpack.c.bf16 %v170_v37, %v170_v37  ;;  %v173_v37 = vld [vmem:[%s5005_s6 + $0x18] sm:$0xff] }
 0x220   :  { %333 = vrot.lane.b32.xlu1 %v4405_v39, %s4271_s20 }
 0x290   :  { %v183_v42 = vpop.permute.xlu0 %182 }
 0x291   :  { %185 = vxpose.xlu1.b32.start.end [1/1] (short) (narrow) %v183_v42, 32 }
 0x292   :  { %v334_v43 = vpop.permute.xlu1 %333 }
 0x311   :  { %v201_v44 = vpop.trf.xlu1 }
 0x315   :  { %v202_v45 = vpop.trf.xlu1 }
 0x316   :  { %v217_v46 = vpack.c.bf16 %v202_v45, %v201_v44  ;;  %v4470_v45 = vsel %vm224_vm2, %v332_v41, 0 }
 0x318   :  { %v226_v47 = vsel %vm224_vm2, %v217_v46, 0  ;;  %v336_v48 = vrot.slane %v217_v46, 4 }
 0x319   :  { %3767 = vmatpush3.bf16.msra.mxu0 %v226_v47  ;;  %v203_v11 = vpop.trf.xlu1 }
 0x31a   :  { %3778 = vmatprep.subr.bf16.mxu0 %v4268_v15  ;;  %v341_v49 = vsel %vm224_vm2, %v336_v48, 0 }
 0x31c   :  { %3769 = vmatmul.mubr.msk.bf16.vlgmr.msra.gmra.mrb[4].mxu0 %vm220_vm3, %v4405_v39 }
 0x31d   :  { %3779 = vmatpush3.bf16.msra.mxu0 %v341_v49  ;;  %3780 = vmatprep.mubr.msk.bf16.mxu0 %vm4269_vm1, %v4268_v15  ;;  %v204_v13 = vpop.trf.xlu1 }
 0x31e   :  { %3790 = vmatprep.subr.bf16.mxu0 %v4268_v15  ;;  %v4447_v24 = vpack.c.bf16 %v204_v13, %v203_v11 }
 0x320   :  { %v545_v27 = vsel %vm224_vm2, %v4447_v24, 0 }
 0x324   :  { %3781 = vmatmul.mubr.msk.bf16.vlgmr.msra.gmra.mrb[8].mxu0 %vm220_vm3, %v334_v43 }
 0x325   :  { %3792 = vmatprep.mubr.msk.bf16.mxu0 %vm4269_vm1, %v4268_v15  ;;  %3791 = vmatpush3.bf16.msra.mxu0 %v4462_v33 }
 0x326   :  { %3796 = vmatprep.subr.bf16.mxu0 %v4268_v15 }
 0x3ef   :  { %v262_v50 = vpop.f32.mrb[4].mxu0 }
 0x3f0   :  { %v268_v52 = vmul.f32 0.35355338, %v262_v50  ;;  %v3770_v53 = vpop.f32.mrb[5].mxu0 }
 0x3f1   :  { %v265_v54 = vpop.f32.mrb[6].mxu0 }
 0x3f2   :  { %v3771_v55 = vpop.f32.mrb[7].mxu0  ;;  %v269_v56 = vadd.f32 %v4426_v51, %v268_v52 }
 0x3f4   :  { %v270_v57 = vsel %vm220_vm3, %v269_v56, -inf }
 0x3f5   :  { %271 = vmax.xlane.f32.xlu0 %v270_v57 }
 0x3f7   :  { %v377_v58 = vpop.f32.mrb[8].mxu0 }
 0x3f8   :  { %v383_v59 = vmul.f32 0.35355338, %v377_v58  ;;  %v3782_v60 = vpop.f32.mrb[9].mxu0 }
 0x3f9   :  { %v380_v61 = vpop.f32.mrb[10].mxu0 }
 0x3fa   :  { %v3783_v62 = vpop.f32.mrb[11].mxu0  ;;  %v384_v63 = vadd.f32 %v4426_v51, %v383_v59 }
 0x3fc   :  { %v385_v0 = vsel %vm220_vm3, %v384_v63, -inf }
 0x3fd   :  { %386 = vmax.xlane.f32.xlu0 %v385_v0 }
 0x482   :  { %v272_v1 = vpop.xlane.xlu0 %271 }
 0x483   :  { %v273_v2 = vsub.f32 %v269_v56, %v272_v1 }
 0x485   :  { %v274_v3 = vmul.f32 1.442695, %v273_v2  ;;  %v701_v2 = vrot.slane %v4447_v24, 4 }
 0x487   :  { %4180 = vpow2.f32 %v274_v3 }
 0x48a   :  { %v387_v4 = vpop.xlane.xlu0 %386 }
 0x48b   :  { %v388_v5 = vsub.f32 %v384_v63, %v387_v4 }
 0x48d   :  { %v389_v6 = vmul.f32 1.442695, %v388_v5  ;;  %v706_v5 = vsel %vm224_vm2, %v701_v2, 0 }
 0x48f   :  { %4182 = vpow2.f32 %v389_v6 }
 0x491   :  { %v4181_v7 = vpop.eup %4180 }
 0x492   :  { %v276_v8 = vsel %vm220_vm3, %v4181_v7, 0.0 }
 0x493   :  { %277 = vadd.xlane.f32.xlu0 %v276_v8 }
 0x499   :  { %v4183_v9 = vpop.eup %4182 }
 0x49a   :  { %v391_v10 = vsel %vm220_vm3, %v4183_v9, 0.0 }
 0x49b   :  { %392 = vadd.xlane.f32.xlu1 %v391_v10 }
 0x4a9   :  { %283 = vrot.lane.b32.xlu0 %v4405_v39, %s4272_s23 }
 0x4ad   :  { %397 = vrot.lane.b32.xlu0 %v4405_v39, %s4273_s24 }
 0x4b1   :  { %539 = vrot.lane.b32.xlu0 %v4405_v39, %s4274_s25 }
 0x520   :  { %v278_v12 = vpop.xlane.xlu0 %277 }
 0x521   :  { %4184 = vrcp.f32 %v278_v12 }
 0x524   :  { %v284_v14 = vpop.permute.xlu0 %283 }
 0x525   :  { %v289_v16 = vsel %vm224_vm2, %v284_v14, 0 }
 0x526   :  { %3773 = vmatpush3.bf16.msra.mxu1 %v289_v16 }
 0x527   :  { %3784 = vmatprep.subr.bf16.mxu1 %v4268_v15 }
 0x528   :  { %v393_v17 = vpop.xlane.xlu1 %392  ;;  %v398_v20 = vpop.permute.xlu0 %397 }
 0x529   :  { %4186 = vrcp.f32 %v393_v17  ;;  %v403_v22 = vsel %vm224_vm2, %v398_v20, 0 }
 0x52b   :  { %v4185_v18 = vpop.eup %4184 }
 0x52c   :  { %v280_v19 = vmul.f32 %v4185_v18, %v4181_v7  ;;  %v540_v28 = vpop.permute.xlu0 %539  ;;  %v172_v7 = vld [vmem:[%s5005_s6 + $0x10] sm:$0xff] }
 0x52d   :  { %v650_v8 = vpack.c.bf16 %v172_v7, %v172_v7 }
 0x52e   :  { %v281_v21 = vpack.c.bf16 %v280_v19, %v280_v19 }
 0x530   :  { %3775 = vmatmul.mubr.msk.bf16.vlgmr.msra.gmra.mrb[0].mxu1 %vm220_vm3, %v281_v21 }
 0x531   :  { %3785 = vmatpush3.bf16.msra.mxu1 %v403_v22  ;;  %3786 = vmatprep.mubr.msk.bf16.mxu1 %vm4269_vm1, %v4268_v15 }
 0x532   :  { %3802 = vmatprep.subr.bf16.mxu1 %v4268_v15 }
 0x533   :  { %v4187_v23 = vpop.eup %4186 }
 0x534   :  { %v395_v25 = vmul.f32 %v4187_v23, %v4183_v9  ;;  %v4502_v9 = vsel %vm224_vm2, %v650_v8, 0  ;;  %v4515_v23 = vpack.c.bf16 %v4407_v40, %v4407_v40 }
 0x536   :  { %v396_v26 = vpack.c.bf16 %v395_v25, %v395_v25 }
 0x538   :  { %3787 = vmatmul.mubr.msk.bf16.vlgmr.msra.gmra.mrb[4].mxu1 %vm220_vm3, %v396_v26 }
 0x539   :  { %3803 = vmatpush3.bf16.msra.mxu1 %v545_v27  ;;  %3804 = vmatprep.mubr.msk.bf16.mxu1 %vm4269_vm1, %v4268_v15 }
 0x53a   :  { %3808 = vmatprep.subr.bf16.mxu1 %v4268_v15 }
 0x540   :  { %3805 = vmatmul.mubr.msk.bf16.vlgmr.msra.gmra.mrb[8].mxu1 %vm220_vm3, %v540_v28 }
 0x541   :  { %3810 = vmatprep.mubr.msk.bf16.mxu1 %vm4269_vm1, %v4268_v15 }
 0x603   :  { %v325_v34 = vpop.f32.mrb[0].mxu1 }
 0x604   :  { %v3776_v35 = vpop.f32.mrb[1].mxu1  ;;  %v331_v55 = vpack.c.bf16 %v325_v34, %v325_v34 }
 0x605   :  { %v328_v36 = vpop.f32.mrb[2].mxu1 }
 0x606   :  { %v3777_v38 = vpop.f32.mrb[3].mxu1 }
 0x607   :  { %v811_v38 = vpack.c.bf16 %v173_v37, %v173_v37 }
 0x609   :  { %v4531_v41 = vsel %vm224_vm2, %v811_v38, 0 }
 0x60b   :  { %v439_v42 = vpop.f32.mrb[4].mxu1 }
 0x60c   :  { %v445_v43 = vpack.c.bf16 %v439_v42, %v439_v42  ;;  %v3788_v44 = vpop.f32.mrb[5].mxu1 }
 0x60d   :  { %v442_v46 = vpop.f32.mrb[6].mxu1 }
 0x60e   :  { %v3789_v47 = vpop.f32.mrb[7].mxu1  ;;  %3793 = vmatmul.mubr.msk.bf16.vlgmr.msra.gmra.mrb[12].mxu0 %vm220_vm3, %v445_v43 }
 0x60f   :  { %3797 = vmatpush3.bf16.msra.mxu0 %v4470_v45  ;;  %3798 = vmatprep.mubr.msk.bf16.mxu0 %vm4269_vm1, %v4268_v15 }
 0x610   :  { %3814 = vmatprep.subr.bf16.mxu0 %v4268_v15 }
 0x613   :  { %v581_v48 = vpop.f32.mrb[8].mxu1 }
 0x614   :  { %v587_v49 = vmul.f32 0.35355338, %v581_v48  ;;  %v3806_v50 = vpop.f32.mrb[9].mxu1 }
 0x615   :  { %v584_v52 = vpop.f32.mrb[10].mxu1 }
 0x616   :  { %v3807_v53 = vpop.f32.mrb[11].mxu1  ;;  %v588_v54 = vadd.f32 %v4426_v51, %v587_v49 }
 0x618   :  { %v589_v56 = vsel %vm220_vm3, %v588_v54, -inf }
 0x619   :  { %590 = vmax.xlane.f32.xlu0 %v589_v56  ;;  %v4554_v56 = vld [vmem:[%s5004_s1 + $0x1] ss:$0 sm:$0xff] }
 0x61a   :  { %3799 = vmatmul.mubr.msk.bf16.vlgmr.msra.gmra.mrb[12].mxu0 %vm220_vm3, %v331_v55 }
 0x61b   :  { %3816 = vmatprep.mubr.msk.bf16.mxu0 %vm4269_vm1, %v4268_v15  ;;  %3815 = vmatpush3.bf16.msra.mxu0 %v4502_v9 }
 0x61c   :  { %3826 = vmatprep.subr.bf16.mxu0 %v4268_v15 }
 0x62f   :  { %698 = vrot.lane.b32.xlu0 %v4405_v39, %s4275_s30 }
 0x6a6   :  { %v591_v57 = vpop.xlane.xlu0 %590 }
 0x6a7   :  { %v592_v58 = vsub.f32 %v588_v54, %v591_v57 }
 0x6a9   :  { %v593_v59 = vmul.f32 1.442695, %v592_v58 }
 0x6aa   :  { %v699_v6 = vpop.permute.xlu0 %698 }
 0x6ab   :  { %4188 = vpow2.f32 %v593_v59 }
 0x6b5   :  { %v4189_v60 = vpop.eup %4188 }
 0x6b6   :  { %v595_v61 = vsel %vm220_vm3, %v4189_v60, 0.0 }
 0x6b7   :  { %596 = vadd.xlane.f32.xlu1 %v595_v61 }
 0x6c8   :  { %601 = vrot.lane.b32.xlu1 %v4405_v39, %s4276_s0 }
 0x744   :  { %v597_v62 = vpop.xlane.xlu1 %596 }
 0x745   :  { %4190 = vrcp.f32 %v597_v62 }
 0x748   :  { %v602_v63 = vpop.permute.xlu1 %601 }
 0x749   :  { %v607_v0 = vsel %vm224_vm2, %v602_v63, 0 }
 0x74a   :  { %3809 = vmatpush3.bf16.msra.mxu1 %v607_v0 }
 0x74b   :  { %3820 = vmatprep.subr.bf16.mxu1 %v4268_v15 }
 0x74f   :  { %v4191_v1 = vpop.eup %4190 }
 0x750   :  { %v599_v3 = vmul.f32 %v4191_v1, %v4189_v60 }
 0x752   :  { %v600_v4 = vpack.c.bf16 %v599_v3, %v599_v3 }
 0x754   :  { %3811 = vmatmul.mubr.msk.bf16.vlgmr.msra.gmra.mrb[12].mxu1 %vm220_vm3, %v600_v4 }
 0x755   :  { %3821 = vmatpush3.bf16.msra.mxu1 %v706_v5  ;;  %3822 = vmatprep.mubr.msk.bf16.mxu1 %vm4269_vm1, %v4268_v15 }
 0x756   :  { %3838 = vmatprep.subr.bf16.mxu1 %v4268_v15 }
 0x75c   :  { %3823 = vmatmul.mubr.msk.bf16.vlgmr.msra.gmra.mrb[16].mxu1 %vm220_vm3, %v699_v6 }
 0x75d   :  { %3840 = vmatprep.mubr.msk.bf16.mxu1 %vm4269_vm1, %v4268_v15 }
 0x827   :  { %v643_v10 = vpop.f32.mrb[12].mxu1 }
 0x828   :  { %v649_v11 = vpack.c.bf16 %v643_v10, %v643_v10  ;;  %v3812_v12 = vpop.f32.mrb[13].mxu1 }
 0x829   :  { %v646_v13 = vpop.f32.mrb[14].mxu1 }
 0x82a   :  { %v3813_v14 = vpop.f32.mrb[15].mxu1  ;;  %3817 = vmatmul.mubr.msk.bf16.vlgmr.msra.gmra.mrb[12].mxu0 %vm220_vm3, %v649_v11 }
 0x82b   :  { %3828 = vmatprep.mubr.msk.bf16.mxu0 %vm4269_vm1, %v4268_v15 }
 0x82f   :  { %v742_v16 = vpop.f32.mrb[16].mxu1 }
 0x830   :  { %v748_v17 = vmul.f32 0.35355338, %v742_v16  ;;  %v3824_v18 = vpop.f32.mrb[17].mxu1 }
 0x831   :  { %v745_v19 = vpop.f32.mrb[18].mxu1 }
 0x832   :  { %v3825_v20 = vpop.f32.mrb[19].mxu1  ;;  %v749_v21 = vadd.f32 %v4426_v51, %v748_v17 }
 0x834   :  { %v750_v22 = vsel %vm220_vm3, %v749_v21, -inf }
 0x835   :  { %751 = vmax.xlane.f32.xlu1 %v750_v22 }
 0x846   :  { %762 = vrot.lane.b32.xlu1 %v4405_v39, %s4277_s2 }
 0x84a   :  { %1017 = vrot.lane.b32.xlu1 %v4515_v23, %s4271_s20 }
 0x8c2   :  { %v752_v24 = vpop.xlane.xlu1 %751 }
 0x8c3   :  { %v753_v25 = vsub.f32 %v749_v21, %v752_v24 }
 0x8c5   :  { %v754_v26 = vmul.f32 1.442695, %v753_v25 }
 0x8c6   :  { %v763_v27 = vpop.permute.xlu1 %762 }
 0x8c7   :  { %4192 = vpow2.f32 %v754_v26  ;;  %v768_v51 = vsel %vm224_vm2, %v763_v27, 0 }
 0x8c8   :  { %3827 = vmatpush3.bf16.msra.mxu0 %v768_v51 }
 0x8c9   :  { %3832 = vmatprep.subr.bf16.mxu0 %v4268_v15 }
 0x8d1   :  { %v4193_v28 = vpop.eup %4192 }
 0x8d2   :  { %v756_v39 = vsel %vm220_vm3, %v4193_v28, 0.0 }
 0x8d3   :  { %757 = vadd.xlane.f32.xlu0 %v756_v39 }
 0x8e9   :  { %869 = vrot.lane.b32.xlu0 %v4407_v40, %s4270_s3  ;;  %v1018_v40 = vpop.permute.xlu1 %1017 }
 0x960   :  { %v758_v29 = vpop.xlane.xlu0 %757 }
 0x961   :  { %4194 = vrcp.f32 %v758_v29 }
 0x964   :  { %v870_v30 = vpop.permute.xlu0 %869 }
 0x965   :  { %872 = vxpose.xlu1.b32.start.end [1/1] (short) (narrow) %v870_v30, 32 }
 0x96b   :  { %v4195_v34 = vpop.eup %4194 }
 0x96c   :  { %v760_v35 = vmul.f32 %v4195_v34, %v4193_v28 }
 0x96e   :  { %v761_v36 = vpack.c.bf16 %v760_v35, %v760_v35 }
 0x970   :  { %3829 = vmatmul.mubr.msk.bf16.vlgmr.msra.gmra.mrb[16].mxu0 %vm220_vm3, %v761_v36 }
 0x971   :  { %3834 = vmatprep.mubr.msk.bf16.mxu0 %vm4269_vm1, %v4268_v15  ;;  %3833 = vmatpush3.bf16.msra.mxu0 %v4531_v41 }
 0x972   :  { %3850 = vmatprep.subr.bf16.mxu0 %v4268_v15 }
 0x9e5   :  { %v888_v42 = vpop.trf.xlu1 }
 0x9e9   :  { %v889_v43 = vpop.trf.xlu1 }
 0x9ea   :  { %v904_v44 = vpack.c.bf16 %v889_v43, %v888_v42 }
 0x9ec   :  { %v911_v46 = vsel %vm224_vm2, %v904_v44, 0  ;;  %v1020_v47 = vrot.slane %v904_v44, 4 }
 0x9ed   :  { %3839 = vmatpush3.bf16.msra.mxu1 %v911_v46  ;;  %v890_v24 = vpop.trf.xlu1 }
 0x9ee   :  { %3844 = vmatprep.subr.bf16.mxu1 %v4268_v15  ;;  %v1025_v54 = vsel %vm224_vm2, %v1020_v47, 0 }
 0x9f0   :  { %3841 = vmatmul.mubr.msk.bf16.vlgmr.msra.gmra.mrb[20].mxu1 %vm220_vm3, %v4515_v23 }
 0x9f1   :  { %3846 = vmatprep.mubr.msk.bf16.mxu1 %vm4269_vm1, %v4268_v15  ;;  %v891_v25 = vpop.trf.xlu1 }
 0x9f2   :  { %v905_v35 = vpack.c.bf16 %v891_v25, %v890_v24 }
 0x9f4   :  { %v1222_v38 = vsel %vm224_vm2, %v905_v35, 0 }
 0xa43   :  { %v804_v48 = vpop.f32.mrb[16].mxu0 }
 0xa44   :  { %v810_v49 = vpack.c.bf16 %v804_v48, %v804_v48  ;;  %v3830_v50 = vpop.f32.mrb[17].mxu0 }
 0xa45   :  { %v807_v52 = vpop.f32.mrb[18].mxu0 }
 0xa46   :  { %v3831_v53 = vpop.f32.mrb[19].mxu0  ;;  %3835 = vmatmul.mubr.msk.bf16.vlgmr.msra.gmra.mrb[12].mxu0 %vm220_vm3, %v810_v49 }
 0xa47   :  { %3851 = vmatpush3.bf16.msra.mxu0 %v1025_v54  ;;  %3852 = vmatprep.mubr.msk.bf16.mxu0 %vm4269_vm1, %v4268_v15 }
 0xa48   :  { %3862 = vmatprep.subr.bf16.mxu0 %v4268_v15 }
 0xa4e   :  { %3853 = vmatmul.mubr.msk.bf16.vlgmr.msra.gmra.mrb[20].mxu0 %vm220_vm3, %v1018_v40 }
 0xa4f   :  { %3863 = vmatpush3.bf16.msra.mxu0 %v4462_v33  ;;  %3864 = vmatprep.mubr.msk.bf16.mxu0 %vm4269_vm1, %v4268_v15 }
 0xa50   :  { %3868 = vmatprep.subr.bf16.mxu0 %v4268_v15 }
 0xac3   :  { %v947_v55 = vpop.f32.mrb[20].mxu1 }
 0xac4   :  { %v953_v57 = vmul.f32 0.35355338, %v947_v55  ;;  %v3842_v58 = vpop.f32.mrb[21].mxu1 }
 0xac5   :  { %v950_v59 = vpop.f32.mrb[22].mxu1 }
 0xac6   :  { %v3843_v60 = vpop.f32.mrb[23].mxu1  ;;  %v954_v61 = vadd.f32 %v4554_v56, %v953_v57 }
 0xac8   :  { %v955_v62 = vsel %vm220_vm3, %v954_v61, -inf }
 0xac9   :  { %956 = vmax.xlane.f32.xlu0 %v955_v62 }
 0xb19   :  { %v852_v33 = vpop.f32.mrb[12].mxu0 }
 0xb1a   :  { %859 = vst.msk [vmem:[#allocation2] sm:$0xff] %vm58_vm0, %v852_v33  ;;  %v3836_v63 = vpop.f32.mrb[13].mxu0 }
 0xb1b   :  { %v855_v0 = vpop.f32.mrb[14].mxu0 }
 0xb1c   :  { %v3837_v1 = vpop.f32.mrb[15].mxu0 }
 0xb21   :  { %v1061_v2 = vpop.f32.mrb[20].mxu0 }
 0xb22   :  { %v1067_v3 = vmul.f32 0.35355338, %v1061_v2  ;;  %v3854_v4 = vpop.f32.mrb[21].mxu0 }
 0xb23   :  { %v1064_v5 = vpop.f32.mrb[22].mxu0  ;;  %v1374_v4 = vrot.slane %v905_v35, 4 }
 0xb24   :  { %v3855_v6 = vpop.f32.mrb[23].mxu0  ;;  %v1068_v7 = vadd.f32 %v4554_v56, %v1067_v3 }
 0xb26   :  { %v1069_v8 = vsel %vm220_vm3, %v1068_v7, -inf }
 0xb27   :  { %1070 = vmax.xlane.f32.xlu0 %v1069_v8 }
 0xb3d   :  { %968 = vrot.lane.b32.xlu0 %v4515_v23, %s4272_s23 }
 0xb56   :  { %v957_v10 = vpop.xlane.xlu0 %956 }
 0xb57   :  { %v958_v11 = vsub.f32 %v954_v61, %v957_v10 }
 0xb59   :  { %v959_v12 = vmul.f32 1.442695, %v958_v11 }
 0xb5b   :  { %4196 = vpow2.f32 %v959_v12 }
 0xb65   :  { %v4197_v13 = vpop.eup %4196 }
 0xb66   :  { %v961_v14 = vsel %vm220_vm3, %v4197_v13, 0.0 }
 0xb67   :  { %962 = vadd.xlane.f32.xlu1 %v961_v14 }
 0xbb4   :  { %v1071_v16 = vpop.xlane.xlu0 %1070 }
 0xbb5   :  { %v1072_v17 = vsub.f32 %v1068_v7, %v1071_v16  ;;  %v1379_v7 = vsel %vm224_vm2, %v1374_v4, 0 }
 0xbb7   :  { %v1073_v18 = vmul.f32 1.442695, %v1072_v17 }
 0xbb8   :  { %v969_v19 = vpop.permute.xlu0 %968 }
 0xbb9   :  { %4198 = vpow2.f32 %v1073_v18  ;;  %v974_v20 = vsel %vm224_vm2, %v969_v19, 0 }
 0xbba   :  { %3845 = vmatpush3.bf16.msra.mxu1 %v974_v20 }
 0xbbb   :  { %3856 = vmatprep.subr.bf16.mxu1 %v4268_v15 }
 0xbc3   :  { %v4199_v21 = vpop.eup %4198 }
 0xbc4   :  { %v1075_v22 = vsel %vm220_vm3, %v4199_v21, 0.0 }
 0xbc5   :  { %1076 = vadd.xlane.f32.xlu0 %v1075_v22 }
 0xbdb   :  { %1081 = vrot.lane.b32.xlu0 %v4515_v23, %s4273_s24 }
 0xbdf   :  { %1216 = vrot.lane.b32.xlu0 %v4515_v23, %s4274_s25 }
 0xbf4   :  { %v963_v26 = vpop.xlane.xlu1 %962 }
 0xbf5   :  { %4200 = vrcp.f32 %v963_v26 }
 0xbff   :  { %v4201_v27 = vpop.eup %4200 }
 0xc00   :  { %v965_v51 = vmul.f32 %v4201_v27, %v4197_v13 }
 0xc02   :  { %v966_v28 = vpack.c.bf16 %v965_v51, %v965_v51 }
 0xc04   :  { %3847 = vmatmul.mubr.msk.bf16.vlgmr.msra.gmra.mrb[24].mxu1 %vm220_vm3, %v966_v28  ;;  %v1529_v28 = vld [vmem:[#allocation2] sm:$0xff] }
 0xc05   :  { %3858 = vmatprep.mubr.msk.bf16.mxu1 %vm4269_vm1, %v4268_v15 }
 0xc52   :  { %v1077_v39 = vpop.xlane.xlu0 %1076 }
 0xc53   :  { %4202 = vrcp.f32 %v1077_v39 }
 0xc56   :  { %v1082_v29 = vpop.permute.xlu0 %1081 }
 0xc57   :  { %v1087_v30 = vsel %vm224_vm2, %v1082_v29, 0 }
 0xc58   :  { %3857 = vmatpush3.bf16.msra.mxu1 %v1087_v30 }
 0xc59   :  { %3874 = vmatprep.subr.bf16.mxu1 %v4268_v15 }
 0xc5a   :  { %v1217_v40 = vpop.permute.xlu0 %1216 }
 0xc5d   :  { %v4203_v34 = vpop.eup %4202 }
 0xc5e   :  { %v1079_v36 = vmul.f32 %v4203_v34, %v4199_v21 }
 0xc60   :  { %v1080_v37 = vpack.c.bf16 %v1079_v36, %v1079_v36 }
 0xc62   :  { %3859 = vmatmul.mubr.msk.bf16.vlgmr.msra.gmra.mrb[28].mxu1 %vm220_vm3, %v1080_v37 }
 0xc63   :  { %3875 = vmatpush3.bf16.msra.mxu1 %v1222_v38  ;;  %3876 = vmatprep.mubr.msk.bf16.mxu1 %vm4269_vm1, %v4268_v15 }
 0xc64   :  { %3880 = vmatprep.subr.bf16.mxu1 %v4268_v15 }
 0xc6a   :  { %3877 = vmatmul.mubr.msk.bf16.vlgmr.msra.gmra.mrb[32].mxu1 %vm220_vm3, %v1217_v40 }
 0xc6b   :  { %3882 = vmatprep.mubr.msk.bf16.mxu1 %vm4269_vm1, %v4268_v15 }
 0xcd7   :  { %v1010_v42 = vpop.f32.mrb[24].mxu1 }
 0xcd8   :  { %v3848_v43 = vpop.f32.mrb[25].mxu1  ;;  %v1016_v60 = vpack.c.bf16 %v1010_v42, %v1010_v42 }
 0xcd9   :  { %v1013_v44 = vpop.f32.mrb[26].mxu1 }
 0xcda   :  { %v3849_v46 = vpop.f32.mrb[27].mxu1 }
 0xd35   :  { %v1123_v47 = vpop.f32.mrb[28].mxu1 }
 0xd36   :  { %v1129_v48 = vpack.c.bf16 %v1123_v47, %v1123_v47  ;;  %v3860_v49 = vpop.f32.mrb[29].mxu1 }
 0xd37   :  { %v1126_v50 = vpop.f32.mrb[30].mxu1 }
 0xd38   :  { %v3861_v52 = vpop.f32.mrb[31].mxu1  ;;  %3865 = vmatmul.mubr.msk.bf16.vlgmr.msra.gmra.mrb[24].mxu0 %vm220_vm3, %v1129_v48 }
 0xd39   :  { %3869 = vmatpush3.bf16.msra.mxu0 %v4470_v45  ;;  %3870 = vmatprep.mubr.msk.bf16.mxu0 %vm4269_vm1, %v4268_v15 }
 0xd3a   :  { %3886 = vmatprep.subr.bf16.mxu0 %v4268_v15 }
 0xd3d   :  { %v1258_v53 = vpop.f32.mrb[32].mxu1 }
 0xd3e   :  { %v1264_v54 = vmul.f32 0.35355338, %v1258_v53  ;;  %v3878_v55 = vpop.f32.mrb[33].mxu1 }
 0xd3f   :  { %v1261_v57 = vpop.f32.mrb[34].mxu1 }
 0xd40   :  { %v3879_v58 = vpop.f32.mrb[35].mxu1  ;;  %v1265_v59 = vadd.f32 %v4554_v56, %v1264_v54 }
 0xd42   :  { %v1266_v61 = vsel %vm220_vm3, %v1265_v59, -inf }
 0xd43   :  { %1267 = vmax.xlane.f32.xlu0 %v1266_v61 }
 0xd44   :  { %3871 = vmatmul.mubr.msk.bf16.vlgmr.msra.gmra.mrb[24].mxu0 %vm220_vm3, %v1016_v60 }
 0xd45   :  { %3887 = vmatpush3.bf16.msra.mxu0 %v4502_v9  ;;  %3888 = vmatprep.mubr.msk.bf16.mxu0 %vm4269_vm1, %v4268_v15 }
 0xd46   :  { %3898 = vmatprep.subr.bf16.mxu0 %v4268_v15 }
 0xd59   :  { %1371 = vrot.lane.b32.xlu0 %v4515_v23, %s4275_s30 }
 0xdd0   :  { %v1268_v45 = vpop.xlane.xlu0 %1267 }
 0xdd1   :  { %v1269_v62 = vsub.f32 %v1265_v59, %v1268_v45 }
 0xdd3   :  { %v1270_v33 = vmul.f32 1.442695, %v1269_v62 }
 0xdd4   :  { %v1372_v8 = vpop.permute.xlu0 %1371 }
 0xdd5   :  { %4204 = vpow2.f32 %v1270_v33 }
 0xddf   :  { %v4205_v63 = vpop.eup %4204 }
 0xde0   :  { %v1272_v0 = vsel %vm220_vm3, %v4205_v63, 0.0 }
 0xde1   :  { %1273 = vadd.xlane.f32.xlu1 %v1272_v0  ;;  %v4163_v0 = vld [vmem:[%s5007_s10 + $0x8] sm:$0xff]  }
 0xdf2   :  { %1278 = vrot.lane.b32.xlu1 %v4515_v23, %s4276_s0 }
 0xe6e   :  { %v1274_v9 = vpop.xlane.xlu1 %1273 }
 0xe6f   :  { %4206 = vrcp.f32 %v1274_v9 }
 0xe72   :  { %v1279_v1 = vpop.permute.xlu1 %1278 }
 0xe73   :  { %v1284_v2 = vsel %vm224_vm2, %v1279_v1, 0 }
 0xe74   :  { %3881 = vmatpush3.bf16.msra.mxu1 %v1284_v2 }
 0xe75   :  { %3892 = vmatprep.subr.bf16.mxu1 %v4268_v15 }
 0xe79   :  { %v4207_v3 = vpop.eup %4206 }
 0xe7a   :  { %v1276_v5 = vmul.f32 %v4207_v3, %v4205_v63  ;;  %v4162_v63 = vld [vmem:[%s5007_s10] sm:$0xff]  }
 0xe7c   :  { %v1277_v6 = vpack.c.bf16 %v1276_v5, %v1276_v5 }
 0xe7e   :  { %3883 = vmatmul.mubr.msk.bf16.vlgmr.msra.gmra.mrb[36].mxu1 %vm220_vm3, %v1277_v6 }
 0xe7f   :  { %3893 = vmatpush3.bf16.msra.mxu1 %v1379_v7  ;;  %3894 = vmatprep.mubr.msk.bf16.mxu1 %vm4269_vm1, %v4268_v15  ;;  %v3552_v7 = vld [vmem:[%s5008_s8] ss:$0 sm:$0xff] }
 0xe80   :  { %3910 = vmatprep.subr.bf16.mxu1 %v4268_v15 }
 0xe86   :  { %3895 = vmatmul.mubr.msk.bf16.vlgmr.msra.gmra.mrb[40].mxu1 %vm220_vm3, %v1372_v8 }
 0xe87   :  { %3914 = vmatprep.mubr.msk.bf16.mxu1 %vm4269_vm1, %v4268_v15  ;;  %3911 = vmatpush3.bf16.msra.mxu1 %v4162_v63 }
 0xe88   :  { %3912 = vmatprep.subr.bf16.mxu1 %v4268_v15 }
 0xe8b   :  { %3913 = vmatpush3.bf16.msra.mxu1 %v4163_v0 }
 0xe8c   :  { %3918 = vmatprep.subr.bf16.mxu1 %v4268_v15 }
 0xf51   :  { %v1320_v10 = vpop.f32.mrb[36].mxu1 }
 0xf52   :  { %v1326_v11 = vpack.c.bf16 %v1320_v10, %v1320_v10  ;;  %v3884_v12 = vpop.f32.mrb[37].mxu1 }
 0xf53   :  { %v1323_v13 = vpop.f32.mrb[38].mxu1  ;;  %v3553_v12 = vld [vmem:[%s5009_s9] ss:$0 sm:$0xff] }
 0xf54   :  { %v3885_v14 = vpop.f32.mrb[39].mxu1  ;;  %3889 = vmatmul.mubr.msk.bf16.vlgmr.msra.gmra.mrb[24].mxu0 %vm220_vm3, %v1326_v11 }
 0xf55   :  { %3900 = vmatprep.mubr.msk.bf16.mxu0 %vm4269_vm1, %v4268_v15 }
 0xf59   :  { %v1415_v16 = vpop.f32.mrb[40].mxu1 }
 0xf5a   :  { %v1421_v17 = vmul.f32 0.35355338, %v1415_v16  ;;  %v3896_v18 = vpop.f32.mrb[41].mxu1 }
 0xf5b   :  { %v1418_v19 = vpop.f32.mrb[42].mxu1  ;;  %v4164_v18 = vld [vmem:[%s5010_s12] sm:$0xff]  }
 0xf5c   :  { %v3897_v20 = vpop.f32.mrb[43].mxu1  ;;  %v1422_v21 = vadd.f32 %v4554_v56, %v1421_v17  ;;  %v3551_v56 = vld [vmem:[%s5006_s7] ss:$0 sm:$0xff]  ;;  %v4165_v19 = vld [vmem:[%s5010_s12 + $0x8] sm:$0xff]  }
 0xf5d   :  { %v1538_v39 = vadd.f32 %v3551_v56, %v1529_v28  ;;  %v4166_v20 = vld [vmem:[%s5010_s12 + $0x10] sm:$0xff]  }
 0xf5e   :  { %v1423_v22 = vsel %vm220_vm3, %v1422_v21, -inf }
 0xf5f   :  { %1424 = vmax.xlane.f32.xlu1 %v1423_v22  ;;  %v3554_v22 = vld [vmem:[%s5011_s11] ss:$0 sm:$0xff] }
 0xf70   :  { %1435 = vrot.lane.b32.xlu1 %v4515_v23, %s4277_s2  ;;  %v1540_v23 = vadd.f32 %v1538_v39, %v4393_v31 }
 0xf72   :  { %v1544_v34 = vsel %vm58_vm0, %v1540_v23, 0.0 }
 0xfec   :  { %v1425_v24 = vpop.xlane.xlu1 %1424 }
 0xfed   :  { %v1426_v25 = vsub.f32 %v1422_v21, %v1425_v24  ;;  %v4167_v21 = vld [vmem:[%s5010_s12 + $0x18] sm:$0xff]  }
 0xfef   :  { %v1427_v26 = vmul.f32 1.442695, %v1426_v25 }
 0xff0   :  { %v1436_v27 = vpop.permute.xlu1 %1435 }
 0xff1   :  { %4208 = vpow2.f32 %v1427_v26  ;;  %v1441_v51 = vsel %vm224_vm2, %v1436_v27, 0 }
 0xff2   :  { %3899 = vmatpush3.bf16.msra.mxu0 %v1441_v51 }
 0xff3   :  { %3904 = vmatprep.subr.bf16.mxu0 %v4268_v15 }
 0xffb   :  { %v4209_v29 = vpop.eup %4208 }
 0xffc   :  { %v1429_v30 = vsel %vm220_vm3, %v4209_v29, 0.0 }
 0xffd   :  { %1430 = vadd.xlane.f32.xlu0 %v1429_v30 }
0x1001   :  { %1545 = vadd.xlane.f32.xlu0 %v1544_v34 }
0x108a   :  { %v1431_v35 = vpop.xlane.xlu0 %1430 }
0x108b   :  { %4210 = vrcp.f32 %v1431_v35 }
0x108e   :  { %v1546_v36 = vpop.xlane.xlu0 %1545 }
0x108f   :  { %v1550_v37 = vmul.f32 0.03125, %v1546_v36 }
0x1091   :  { %v1552_v38 = vsub.f32 %v1540_v23, %v1550_v37 }
0x1093   :  { %v1554_v40 = vmul.f32 %v1552_v38, %v1552_v38 }
0x1095   :  { %v4211_v42 = vpop.eup %4210  ;;  %v1556_v43 = vsel %vm58_vm0, %v1554_v40, 0.0 }
0x1096   :  { %v1433_v44 = vmul.f32 %v4211_v42, %v4209_v29  ;;  %1557 = vadd.xlane.f32.xlu0 %v1556_v43 }
0x1098   :  { %v1434_v46 = vpack.c.bf16 %v1433_v44, %v1433_v44 }
0x109a   :  { %3901 = vmatmul.mubr.msk.bf16.vlgmr.msra.gmra.mrb[28].mxu0 %vm220_vm3, %v1434_v46 }
0x109b   :  { %3905 = vmatpush3.bf16.msra.mxu0 %v4531_v41  ;;  %3906 = vmatprep.mubr.msk.bf16.mxu0 %vm4269_vm1, %v4268_v15 }
0x109c   :  { %3930 = vmatprep.subr.bf16.mxu0 %v4268_v15 }
0x116d   :  { %v1477_v31 = vpop.f32.mrb[28].mxu0 }
0x116e   :  { %v1483_v47 = vpack.c.bf16 %v1477_v31, %v1477_v31  ;;  %v3902_v48 = vpop.f32.mrb[29].mxu0 }
0x116f   :  { %v1480_v49 = vpop.f32.mrb[30].mxu0 }
0x1170   :  { %v3903_v50 = vpop.f32.mrb[31].mxu0  ;;  %3907 = vmatmul.mubr.msk.bf16.vlgmr.msra.gmra.mrb[24].mxu0 %vm220_vm3, %v1483_v47 }
0x1171   :  { %3934 = vmatprep.mubr.msk.bf16.mxu0 %vm4269_vm1, %v4268_v15  ;;  %v3558_v50 = vld [vmem:[%s5012_s13] ss:$0 sm:$0xff] }
0x1243   :  { %v1521_v52 = vpop.f32.mrb[24].mxu0 }
0x1244   :  { %1528 = vst.msk [vmem:[#allocation2 + $0x8] sm:$0xff] %vm58_vm0, %v1521_v52  ;;  %v3908_v53 = vpop.f32.mrb[25].mxu0 }
0x1245   :  { %v1524_v41 = vpop.f32.mrb[26].mxu0 }
0x1246   :  { %v3909_v54 = vpop.f32.mrb[27].mxu0 }
0x124b   :  { %v1530_v55 = vld [vmem:[#allocation2 + $0x8] sm:$0xff] }
0x124c   :  { %v1539_v57 = vadd.f32 %v3551_v56, %v1530_v55 }
0x124e   :  { %v1541_v58 = vadd.f32 %v1539_v57, %v4395_v32  ;;  %v1558_v32 = vpop.xlane.xlu0 %1557 }
0x124f   :  { %v1562_v9 = vmul.f32 0.03125, %v1558_v32 }
0x1250   :  { %v1547_v59 = vsel %vm58_vm0, %v1541_v58, 0.0 }
0x1251   :  { %1548 = vadd.xlane.f32.xlu1 %v1547_v59  ;;  %v1564_v1 = vadd.f32 1e-12, %v1562_v9 }
0x1253   :  { %4212 = vrsqrt.f32 %v1564_v1 }
0x125d   :  { %v4213_v5 = vpop.eup %4212 }
0x125e   :  { %v1568_v6 = vmul.f32 %v4213_v5, %v1552_v38  ;;  %v4169_v5 = vld [vmem:[%s5000_s4 + $0x18] sm:$0xff]  }
0x1260   :  { %v1576_v10 = vmul.f32 %v3552_v7, %v1568_v6 }
0x1262   :  { %v1584_v14 = vadd.f32 %v3553_v12, %v1576_v10 }
0x12de   :  { %v1549_v60 = vpop.xlane.xlu1 %1548 }
0x12df   :  { %v1551_v61 = vmul.f32 0.03125, %v1549_v60 }
0x12e1   :  { %v1553_v45 = vsub.f32 %v1541_v58, %v1551_v61 }
0x12e3   :  { %v1555_v62 = vmul.f32 %v1553_v45, %v1553_v45 }
0x12e5   :  { %v1559_v33 = vsel %vm58_vm0, %v1555_v62, 0.0 }
0x12e6   :  { %1560 = vadd.xlane.f32.xlu0 %v1559_v33 }
0x1373   :  { %v1561_v2 = vpop.xlane.xlu0 %1560 }
0x1374   :  { %v1563_v3 = vmul.f32 0.03125, %v1561_v2 }
0x1376   :  { %v1565_v4 = vadd.f32 1e-12, %v1563_v3 }
0x1378   :  { %4214 = vrsqrt.f32 %v1565_v4  ;;  %v4168_v4 = vld [vmem:[%s5000_s4 + $0x10] sm:$0xff]  }
0x1379   :  { %3931 = vmatpush3.bf16.msra.mxu0 %v4168_v4 }
0x137a   :  { %3932 = vmatprep.subr.bf16.mxu0 %v4268_v15 }
0x137d   :  { %3933 = vmatpush3.bf16.msra.mxu0 %v4169_v5 }
0x137e   :  { %3938 = vmatprep.subr.bf16.mxu0 %v4268_v15 }
0x1382   :  { %v4215_v8 = vpop.eup %4214 }
0x1383   :  { %v1569_v11 = vmul.f32 %v4215_v8, %v1553_v45 }
0x1385   :  { %v1577_v13 = vmul.f32 %v3552_v7, %v1569_v11 }
0x1387   :  { %v1585_v16 = vadd.f32 %v3553_v12, %v1577_v13 }
0x1389   :  { %v1586_v17 = vpack.c.bf16 %v1585_v16, %v1584_v14 }
0x138b   :  { %3915 = vmatmul.mubr.msk.bf16.vlgmr.msra.gmra.mrb[44].mxu1 %vm58_vm0, %v1586_v17 }
0x138c   :  { %3926 = vmatprep.mubr.msk.bf16.mxu1 %vm4269_vm1, %v4268_v15  ;;  %3919 = vmatpush3.bf16.msra.mxu1 %v4164_v18 }
0x138d   :  { %3920 = vmatprep.subr.bf16.mxu1 %v4268_v15 }
0x1390   :  { %3921 = vmatpush3.bf16.msra.mxu1 %v4165_v19 }
0x1391   :  { %3922 = vmatprep.subr.bf16.mxu1 %v4268_v15 }
0x1394   :  { %3923 = vmatpush3.bf16.msra.mxu1 %v4166_v20  ;;  %v3565_v20 = vld [vmem:[%s5014_s15] ss:$0 sm:$0xff] }
0x1395   :  { %3924 = vmatprep.subr.bf16.mxu1 %v4268_v15 }
0x1398   :  { %3925 = vmatpush3.bf16.msra.mxu1 %v4167_v21 }
0x1399   :  { %3944 = vmatprep.subr.bf16.mxu1 %v4268_v15 }
0x145e   :  { %v1647_v24 = vpop.f32.mrb[44].mxu1 }
0x145f   :  { %v1648_v25 = vadd.f32 %v3554_v22, %v1647_v24  ;;  %v3916_v26 = vpop.f32.mrb[45].mxu1 }
0x1460   :  { %v1650_v27 = vpop.f32.mrb[46].mxu1  ;;  %v3571_v26 = vld [vmem:[%s5003_s5 + $0x1] ss:$0 sm:$0xff] }
0x1461   :  { %v1654_v51 = vmul.f32 %v1648_v25, %v1648_v25  ;;  %v1651_v28 = vadd.f32 %v3554_v22, %v1650_v27  ;;  %v3917_v56 = vpop.f32.mrb[47].mxu1 }
0x1463   :  { %v1656_v39 = vmul.f32 %v1654_v51, %v1648_v25  ;;  %v1655_v29 = vmul.f32 %v1651_v28, %v1651_v28 }
0x1465   :  { %v1658_v30 = vmul.f32 0.044715, %v1656_v39  ;;  %v1657_v23 = vmul.f32 %v1655_v29, %v1651_v28 }
0x1467   :  { %v1660_v34 = vadd.f32 %v1658_v30, %v1648_v25  ;;  %v1659_v35 = vmul.f32 0.044715, %v1657_v23 }
0x1469   :  { %v1662_v36 = vmul.f32 0.7978846, %v1660_v34  ;;  %v1661_v37 = vadd.f32 %v1659_v35, %v1651_v28 }
0x146b   :  { %4216 = vtanh.f32 %v1662_v36  ;;  %v1663_v38 = vmul.f32 0.7978846, %v1661_v37 }
0x146d   :  { %4218 = vtanh.f32 %v1663_v38 }
0x1475   :  { %v4217_v40 = vpop.eup %4216 }
0x1476   :  { %v1666_v42 = vadd.f32 1.0, %v4217_v40 }
0x1477   :  { %v4219_v43 = vpop.eup %4218 }
0x1478   :  { %v1668_v44 = vmul.f32 0.5, %v1666_v42  ;;  %v1667_v46 = vadd.f32 1.0, %v4219_v43 }
0x147a   :  { %v1669_v31 = vmul.f32 0.5, %v1667_v46  ;;  %v1670_v47 = vmul.f32 %v1668_v44, %v1648_v25  ;;  %v4732_v44 = vld [vmem:[%s5004_s1] ss:$0 sm:$0xff] }
0x147c   :  { %v1671_v48 = vmul.f32 %v1669_v31, %v1651_v28 }
0x147e   :  { %v1672_v49 = vpack.c.bf16 %v1671_v48, %v1670_v47 }
0x1480   :  { %3927 = vmatmul.mubr.msk.bf16.vlgmr.msra.gmra.mrb[48].mxu1 %vm1712_vm4, %v1672_v49 }
0x1481   :  { %3946 = vmatprep.mubr.msk.bf16.mxu1 %vm4269_vm1, %v4268_v15 }
0x1553   :  { %v1750_v52 = vpop.f32.mrb[48].mxu1 }
0x1554   :  { %v1751_v53 = vadd.f32 %v3558_v50, %v1750_v52  ;;  %v3928_v41 = vpop.f32.mrb[49].mxu1 }
0x1555   :  { %v1753_v54 = vpop.f32.mrb[50].mxu1 }
0x1556   :  { %v1754_v55 = vadd.f32 %v3558_v50, %v1753_v54  ;;  %v3929_v57 = vpop.f32.mrb[51].mxu1  ;;  %v1757_v58 = vadd.f32 %v1751_v53, %v1584_v14 }
0x1558   :  { %v1761_v59 = vsel %vm58_vm0, %v1757_v58, 0.0  ;;  %v1758_v60 = vadd.f32 %v1754_v55, %v1585_v16  ;;  %v3564_v16 = vld [vmem:[%s5013_s14] ss:$0 sm:$0xff] }
0x1559   :  { %1762 = vadd.xlane.f32.xlu0 %v1761_v59 }
0x155a   :  { %v1764_v61 = vsel %vm58_vm0, %v1758_v60, 0.0 }
0x155d   :  { %1765 = vadd.xlane.f32.xlu0 %v1764_v61 }
0x15e6   :  { %v1763_v45 = vpop.xlane.xlu0 %1762 }
0x15e7   :  { %v1767_v62 = vmul.f32 0.03125, %v1763_v45 }
0x15e9   :  { %v1769_v33 = vsub.f32 %v1757_v58, %v1767_v62 }
0x15ea   :  { %v1766_v63 = vpop.xlane.xlu0 %1765 }
0x15eb   :  { %v1768_v0 = vmul.f32 0.03125, %v1766_v63  ;;  %v1771_v32 = vmul.f32 %v1769_v33, %v1769_v33 }
0x15ed   :  { %v1770_v9 = vsub.f32 %v1758_v60, %v1768_v0  ;;  %v1773_v1 = vsel %vm58_vm0, %v1771_v32, 0.0 }
0x15ee   :  { %1774 = vadd.xlane.f32.xlu0 %v1773_v1 }
0x15ef   :  { %v1772_v2 = vmul.f32 %v1770_v9, %v1770_v9 }
0x15f1   :  { %v1776_v3 = vsel %vm58_vm0, %v1772_v2, 0.0 }
0x15f2   :  { %1777 = vadd.xlane.f32.xlu0 %v1776_v3 }
0x167b   :  { %v1775_v6 = vpop.xlane.xlu0 %1774 }
0x167c   :  { %v1779_v7 = vmul.f32 0.03125, %v1775_v6 }
0x167e   :  { %v1781_v8 = vadd.f32 1e-12, %v1779_v7 }
0x167f   :  { %v1778_v10 = vpop.xlane.xlu0 %1777 }
0x1680   :  { %4220 = vrsqrt.f32 %v1781_v8  ;;  %v1780_v11 = vmul.f32 0.03125, %v1778_v10 }
0x1682   :  { %v1782_v12 = vadd.f32 1e-12, %v1780_v11 }
0x1684   :  { %4222 = vrsqrt.f32 %v1782_v12 }
0x168a   :  { %v4221_v13 = vpop.eup %4220 }
0x168b   :  { %v1785_v14 = vmul.f32 %v4221_v13, %v1769_v33 }
0x168d   :  { %v1793_v18 = vmul.f32 %v3564_v16, %v1785_v14 }
0x168e   :  { %v4223_v17 = vpop.eup %4222 }
0x168f   :  { %v1786_v19 = vmul.f32 %v4223_v17, %v1770_v9  ;;  %v4699_v22 = vadd.f32 %v3565_v20, %v1793_v18 }
0x1691   :  { %v1794_v21 = vmul.f32 %v3564_v16, %v1786_v19 }
0x1693   :  { %v4701_v24 = vadd.f32 %v3565_v20, %v1794_v21  ;;  %v3576_v20 = vld [vmem:[%s5005_s6 + $0x28] sm:$0xff] }
0x1694   :  { %v2148_v21 = vpack.c.bf16 %v3576_v20, %v3576_v20 }
0x1695   :  { %v1803_v25 = vpack.c.bf16 %v4701_v24, %v4699_v22 }
0x1697   :  { %3935 = vmatmul.mubr.msk.bf16.vlgmr.msra.gmra.mrb[32].mxu0 %vm58_vm0, %v1803_v25  ;;  %v4768_v25 = vsel %vm224_vm2, %v2148_v21, 0 }
0x1698   :  { %3940 = vmatprep.mubr.msk.bf16.mxu0 %vm4269_vm1, %v4268_v15 }
0x176a   :  { %v1866_v27 = vpop.f32.mrb[32].mxu0 }
0x176b   :  { %v1867_v51 = vadd.f32 %v3571_v26, %v1866_v27  ;;  %v3936_v28 = vpop.f32.mrb[33].mxu0 }
0x176c   :  { %v1869_v56 = vpop.f32.mrb[34].mxu0  ;;  %v3575_v28 = vld [vmem:[%s5005_s6 + $0x20] sm:$0xff] }
0x176d   :  { %v4711_v39 = vpack.c.bf16 %v1867_v51, %v1867_v51  ;;  %v4713_v29 = vadd.f32 %v3571_v26, %v1869_v56  ;;  %1886 = vrot.lane.b32.xlu0 %v1867_v51, %s4270_s3  ;;  %v3937_v30 = vpop.f32.mrb[35].mxu0 }
0x176e   :  { %v2034_v30 = vpack.c.bf16 %v3575_v28, %v3575_v28  ;;  %v3578_v28 = vld [vmem:[%s5005_s6 + $0x38] sm:$0xff] }
0x176f   :  { %2035 = vrot.lane.b32.xlu1 %v4711_v39, %s4271_s20 }
0x17df   :  { %v1887_v23 = vpop.permute.xlu0 %1886 }
0x17e0   :  { %1889 = vxpose.xlu0.b32.start.end [1/1] (short) (narrow) %v1887_v23, 32 }
0x17e1   :  { %v2036_v42 = vpop.permute.xlu1 %2035 }
0x1860   :  { %v1905_v34 = vpop.trf.xlu0 }
0x1864   :  { %v1906_v35 = vpop.trf.xlu0 }
0x1865   :  { %v1921_v36 = vpack.c.bf16 %v1906_v35, %v1905_v34 }
0x1867   :  { %v1928_v37 = vsel %vm224_vm2, %v1921_v36, 0  ;;  %v2038_v38 = vrot.slane %v1921_v36, 4  ;;  %v4776_v36 = vsel %vm224_vm2, %v2034_v30, 0 }
0x1868   :  { %3939 = vmatpush3.bf16.msra.mxu0 %v1928_v37  ;;  %v1907_v59 = vpop.trf.xlu0 }
0x1869   :  { %3950 = vmatprep.subr.bf16.mxu0 %v4268_v15  ;;  %v2043_v40 = vsel %vm224_vm2, %v2038_v38, 0 }
0x186b   :  { %3941 = vmatmul.mubr.msk.bf16.vlgmr.msra.gmra.mrb[36].mxu0 %vm220_vm3, %v4711_v39 }
0x186c   :  { %3951 = vmatpush3.bf16.msra.mxu0 %v2043_v40  ;;  %3952 = vmatprep.mubr.msk.bf16.mxu0 %vm4269_vm1, %v4268_v15  ;;  %v1908_v62 = vpop.trf.xlu0 }
0x186d   :  { %3962 = vmatprep.subr.bf16.mxu0 %v4268_v15  ;;  %v4753_v14 = vpack.c.bf16 %v1908_v62, %v1907_v59 }
0x186f   :  { %v2247_v18 = vsel %vm224_vm2, %v4753_v14, 0 }
0x1873   :  { %3953 = vmatmul.mubr.msk.bf16.vlgmr.msra.gmra.mrb[40].mxu0 %vm220_vm3, %v2036_v42 }
0x1874   :  { %3964 = vmatprep.mubr.msk.bf16.mxu0 %vm4269_vm1, %v4268_v15  ;;  %3963 = vmatpush3.bf16.msra.mxu0 %v4768_v25 }
0x1875   :  { %3968 = vmatprep.subr.bf16.mxu0 %v4268_v15 }
0x193e   :  { %v1964_v43 = vpop.f32.mrb[36].mxu0 }
0x193f   :  { %v1970_v46 = vmul.f32 0.35355338, %v1964_v43  ;;  %v3942_v31 = vpop.f32.mrb[37].mxu0 }
0x1940   :  { %v1967_v47 = vpop.f32.mrb[38].mxu0 }
0x1941   :  { %v3943_v48 = vpop.f32.mrb[39].mxu0  ;;  %v1971_v49 = vadd.f32 %v4732_v44, %v1970_v46 }
0x1943   :  { %v1972_v50 = vsel %vm220_vm3, %v1971_v49, -inf }
0x1944   :  { %1973 = vmax.xlane.f32.xlu1 %v1972_v50 }
0x1946   :  { %v2079_v52 = vpop.f32.mrb[40].mxu0 }
0x1947   :  { %v2085_v53 = vmul.f32 0.35355338, %v2079_v52  ;;  %v3954_v41 = vpop.f32.mrb[41].mxu0 }
0x1948   :  { %v2082_v54 = vpop.f32.mrb[42].mxu0 }
0x1949   :  { %v3955_v55 = vpop.f32.mrb[43].mxu0  ;;  %v2086_v57 = vadd.f32 %v4732_v44, %v2085_v53 }
0x194b   :  { %v2087_v58 = vsel %vm220_vm3, %v2086_v57, -inf }
0x194c   :  { %2088 = vmax.xlane.f32.xlu0 %v2087_v58 }
0x1955   :  { %1985 = vrot.lane.b32.xlu1 %v4711_v39, %s4272_s23 }
0x19d1   :  { %v1974_v60 = vpop.xlane.xlu1 %1973 }
0x19d2   :  { %v1975_v61 = vsub.f32 %v1971_v49, %v1974_v60  ;;  %v2403_v60 = vrot.slane %v4753_v14, 4 }
0x19d4   :  { %v1976_v45 = vmul.f32 1.442695, %v1975_v61  ;;  %v2408_v62 = vsel %vm224_vm2, %v2403_v60, 0 }
0x19d5   :  { %v1986_v33 = vpop.permute.xlu1 %1985 }
0x19d6   :  { %4224 = vpow2.f32 %v1976_v45  ;;  %v1991_v63 = vsel %vm224_vm2, %v1986_v33, 0 }
0x19d7   :  { %3945 = vmatpush3.bf16.msra.mxu1 %v1991_v63  ;;  %v3577_v63 = vld [vmem:[%s5005_s6 + $0x30] sm:$0xff] }
0x19d8   :  { %3956 = vmatprep.subr.bf16.mxu1 %v4268_v15 }
0x19d9   :  { %v2089_v0 = vpop.xlane.xlu0 %2088 }
0x19da   :  { %v2090_v32 = vsub.f32 %v2086_v57, %v2089_v0  ;;  %v2352_v0 = vpack.c.bf16 %v3577_v63, %v3577_v63 }
0x19dc   :  { %v2091_v9 = vmul.f32 1.442695, %v2090_v32  ;;  %v4808_v32 = vsel %vm224_vm2, %v2352_v0, 0 }
0x19de   :  { %4226 = vpow2.f32 %v2091_v9 }
0x19e0   :  { %v4225_v1 = vpop.eup %4224 }
0x19e1   :  { %v1978_v2 = vsel %vm220_vm3, %v4225_v1, 0.0 }
0x19e2   :  { %1979 = vadd.xlane.f32.xlu1 %v1978_v2 }
0x19e8   :  { %v4227_v3 = vpop.eup %4226 }
0x19e9   :  { %v2093_v4 = vsel %vm220_vm3, %v4227_v3, 0.0 }
0x19ea   :  { %2094 = vadd.xlane.f32.xlu1 %v2093_v4 }
0x19fb   :  { %2099 = vrot.lane.b32.xlu1 %v4711_v39, %s4273_s24 }
0x19ff   :  { %2241 = vrot.lane.b32.xlu1 %v4711_v39, %s4274_s25 }
0x1a6f   :  { %v1980_v5 = vpop.xlane.xlu1 %1979 }
0x1a70   :  { %4228 = vrcp.f32 %v1980_v5 }
0x1a77   :  { %v2095_v6 = vpop.xlane.xlu1 %2094 }
0x1a78   :  { %4230 = vrcp.f32 %v2095_v6 }
0x1a7a   :  { %v4229_v7 = vpop.eup %4228 }
0x1a7b   :  { %v1982_v8 = vmul.f32 %v4229_v7, %v4225_v1  ;;  %v2100_v10 = vpop.permute.xlu1 %2099 }
0x1a7c   :  { %v2105_v12 = vsel %vm224_vm2, %v2100_v10, 0 }
0x1a7d   :  { %v1983_v11 = vpack.c.bf16 %v1982_v8, %v1982_v8 }
0x1a7f   :  { %3947 = vmatmul.mubr.msk.bf16.vlgmr.msra.gmra.mrb[52].mxu1 %vm220_vm3, %v1983_v11  ;;  %v2242_v19 = vpop.permute.xlu1 %2241 }
0x1a80   :  { %3957 = vmatpush3.bf16.msra.mxu1 %v2105_v12  ;;  %3958 = vmatprep.mubr.msk.bf16.mxu1 %vm4269_vm1, %v4268_v15 }
0x1a81   :  { %3974 = vmatprep.subr.bf16.mxu1 %v4268_v15 }
0x1a82   :  { %v4231_v13 = vpop.eup %4230 }
0x1a83   :  { %v2097_v16 = vmul.f32 %v4231_v13, %v4227_v3  ;;  %v4821_v13 = vpack.c.bf16 %v4713_v29, %v4713_v29 }
0x1a85   :  { %v2098_v17 = vpack.c.bf16 %v2097_v16, %v2097_v16 }
0x1a87   :  { %3959 = vmatmul.mubr.msk.bf16.vlgmr.msra.gmra.mrb[56].mxu1 %vm220_vm3, %v2098_v17 }
0x1a88   :  { %3975 = vmatpush3.bf16.msra.mxu1 %v2247_v18  ;;  %3976 = vmatprep.mubr.msk.bf16.mxu1 %vm4269_vm1, %v4268_v15 }
0x1a89   :  { %3980 = vmatprep.subr.bf16.mxu1 %v4268_v15 }
0x1a8f   :  { %3977 = vmatmul.mubr.msk.bf16.vlgmr.msra.gmra.mrb[60].mxu1 %vm220_vm3, %v2242_v19 }
0x1a90   :  { %3982 = vmatprep.mubr.msk.bf16.mxu1 %vm4269_vm1, %v4268_v15 }
0x1b52   :  { %v2027_v26 = vpop.f32.mrb[52].mxu1 }
0x1b53   :  { %v3948_v27 = vpop.f32.mrb[53].mxu1  ;;  %v2033_v48 = vpack.c.bf16 %v2027_v26, %v2027_v26 }
0x1b54   :  { %v2030_v51 = vpop.f32.mrb[54].mxu1 }
0x1b55   :  { %v3949_v56 = vpop.f32.mrb[55].mxu1 }
0x1b56   :  { %v2513_v56 = vpack.c.bf16 %v3578_v28, %v3578_v28 }
0x1b58   :  { %v4837_v30 = vsel %vm224_vm2, %v2513_v56, 0 }
0x1b5a   :  { %v2141_v23 = vpop.f32.mrb[56].mxu1 }
0x1b5b   :  { %v2147_v34 = vpack.c.bf16 %v2141_v23, %v2141_v23  ;;  %v3960_v35 = vpop.f32.mrb[57].mxu1 }
0x1b5c   :  { %v2144_v37 = vpop.f32.mrb[58].mxu1 }
0x1b5d   :  { %v3961_v38 = vpop.f32.mrb[59].mxu1  ;;  %3965 = vmatmul.mubr.msk.bf16.vlgmr.msra.gmra.mrb[44].mxu0 %vm220_vm3, %v2147_v34 }
0x1b5e   :  { %3969 = vmatpush3.bf16.msra.mxu0 %v4776_v36  ;;  %3970 = vmatprep.mubr.msk.bf16.mxu0 %vm4269_vm1, %v4268_v15 }
0x1b5f   :  { %3986 = vmatprep.subr.bf16.mxu0 %v4268_v15 }
0x1b62   :  { %v2283_v40 = vpop.f32.mrb[60].mxu1 }
0x1b63   :  { %v2289_v42 = vmul.f32 0.35355338, %v2283_v40  ;;  %v3978_v43 = vpop.f32.mrb[61].mxu1 }
0x1b64   :  { %v2286_v46 = vpop.f32.mrb[62].mxu1 }
0x1b65   :  { %v3979_v31 = vpop.f32.mrb[63].mxu1  ;;  %v2290_v47 = vadd.f32 %v4732_v44, %v2289_v42 }
0x1b67   :  { %v2291_v49 = vsel %vm220_vm3, %v2290_v47, -inf }
0x1b68   :  { %2292 = vmax.xlane.f32.xlu1 %v2291_v49  ;;  %v4860_v49 = vld [vmem:[%s5004_s1 + $0x1] ss:$0 sm:$0xff] }
0x1b69   :  { %3971 = vmatmul.mubr.msk.bf16.vlgmr.msra.gmra.mrb[44].mxu0 %vm220_vm3, %v2033_v48 }
0x1b6a   :  { %3988 = vmatprep.mubr.msk.bf16.mxu0 %vm4269_vm1, %v4268_v15  ;;  %3987 = vmatpush3.bf16.msra.mxu0 %v4808_v32 }
0x1b6b   :  { %3998 = vmatprep.subr.bf16.mxu0 %v4268_v15 }
0x1b79   :  { %2400 = vrot.lane.b32.xlu1 %v4711_v39, %s4275_s30 }
0x1bf5   :  { %v2293_v50 = vpop.xlane.xlu1 %2292 }
0x1bf6   :  { %v2294_v52 = vsub.f32 %v2290_v47, %v2293_v50 }
0x1bf8   :  { %v2295_v53 = vmul.f32 1.442695, %v2294_v52 }
0x1bf9   :  { %v2401_v33 = vpop.permute.xlu1 %2400 }
0x1bfa   :  { %4232 = vpow2.f32 %v2295_v53 }
0x1c04   :  { %v4233_v41 = vpop.eup %4232 }
0x1c05   :  { %v2297_v54 = vsel %vm220_vm3, %v4233_v41, 0.0 }
0x1c06   :  { %2298 = vadd.xlane.f32.xlu0 %v2297_v54 }
0x1c1c   :  { %2303 = vrot.lane.b32.xlu0 %v4711_v39, %s4276_s0 }
0x1c93   :  { %v2299_v55 = vpop.xlane.xlu0 %2298 }
0x1c94   :  { %4234 = vrcp.f32 %v2299_v55 }
0x1c97   :  { %v2304_v57 = vpop.permute.xlu0 %2303 }
0x1c98   :  { %v2309_v58 = vsel %vm224_vm2, %v2304_v57, 0 }
0x1c99   :  { %3981 = vmatpush3.bf16.msra.mxu1 %v2309_v58 }
0x1c9a   :  { %3992 = vmatprep.subr.bf16.mxu1 %v4268_v15 }
0x1c9e   :  { %v4235_v59 = vpop.eup %4234 }
0x1c9f   :  { %v2301_v61 = vmul.f32 %v4235_v59, %v4233_v41 }
0x1ca1   :  { %v2302_v45 = vpack.c.bf16 %v2301_v61, %v2301_v61 }
0x1ca3   :  { %3983 = vmatmul.mubr.msk.bf16.vlgmr.msra.gmra.mrb[64].mxu1 %vm220_vm3, %v2302_v45 }
0x1ca4   :  { %3993 = vmatpush3.bf16.msra.mxu1 %v2408_v62  ;;  %3994 = vmatprep.mubr.msk.bf16.mxu1 %vm4269_vm1, %v4268_v15 }
0x1ca5   :  { %4010 = vmatprep.subr.bf16.mxu1 %v4268_v15 }
0x1cab   :  { %3995 = vmatmul.mubr.msk.bf16.vlgmr.msra.gmra.mrb[68].mxu1 %vm220_vm3, %v2401_v33 }
0x1cac   :  { %4012 = vmatprep.mubr.msk.bf16.mxu1 %vm4269_vm1, %v4268_v15 }
0x1d76   :  { %v2345_v9 = vpop.f32.mrb[64].mxu1 }
0x1d77   :  { %v2351_v1 = vpack.c.bf16 %v2345_v9, %v2345_v9  ;;  %v3984_v2 = vpop.f32.mrb[65].mxu1 }
0x1d78   :  { %v2348_v3 = vpop.f32.mrb[66].mxu1 }
0x1d79   :  { %v3985_v4 = vpop.f32.mrb[67].mxu1  ;;  %3989 = vmatmul.mubr.msk.bf16.vlgmr.msra.gmra.mrb[44].mxu0 %vm220_vm3, %v2351_v1 }
0x1d7a   :  { %4000 = vmatprep.mubr.msk.bf16.mxu0 %vm4269_vm1, %v4268_v15 }
0x1d7e   :  { %v2444_v5 = vpop.f32.mrb[68].mxu1 }
0x1d7f   :  { %v2450_v6 = vmul.f32 0.35355338, %v2444_v5  ;;  %v3996_v7 = vpop.f32.mrb[69].mxu1 }
0x1d80   :  { %v2447_v8 = vpop.f32.mrb[70].mxu1 }
0x1d81   :  { %v3997_v10 = vpop.f32.mrb[71].mxu1  ;;  %v2451_v11 = vadd.f32 %v4732_v44, %v2450_v6 }
0x1d83   :  { %v2452_v12 = vsel %vm220_vm3, %v2451_v11, -inf }
0x1d84   :  { %2453 = vmax.xlane.f32.xlu0 %v2452_v12 }
0x1d9a   :  { %2464 = vrot.lane.b32.xlu0 %v4711_v39, %s4277_s2 }
0x1d9e   :  { %2718 = vrot.lane.b32.xlu0 %v4821_v13, %s4271_s20 }
0x1e11   :  { %v2454_v14 = vpop.xlane.xlu0 %2453 }
0x1e12   :  { %v2455_v16 = vsub.f32 %v2451_v11, %v2454_v14 }
0x1e14   :  { %v2456_v17 = vmul.f32 1.442695, %v2455_v16 }
0x1e15   :  { %v2465_v18 = vpop.permute.xlu0 %2464 }
0x1e16   :  { %4236 = vpow2.f32 %v2456_v17  ;;  %v2470_v44 = vsel %vm224_vm2, %v2465_v18, 0 }
0x1e17   :  { %3999 = vmatpush3.bf16.msra.mxu0 %v2470_v44 }
0x1e18   :  { %4004 = vmatprep.subr.bf16.mxu0 %v4268_v15 }
0x1e20   :  { %v4237_v19 = vpop.eup %4236 }
0x1e21   :  { %v2458_v39 = vsel %vm220_vm3, %v4237_v19, 0.0 }
0x1e22   :  { %2459 = vadd.xlane.f32.xlu1 %v2458_v39 }
0x1e33   :  { %2570 = vrot.lane.b32.xlu1 %v4713_v29, %s4270_s3  ;;  %v2719_v29 = vpop.permute.xlu0 %2718 }
0x1eaf   :  { %v2460_v20 = vpop.xlane.xlu1 %2459 }
0x1eb0   :  { %4238 = vrcp.f32 %v2460_v20 }
0x1eb3   :  { %v2571_v21 = vpop.permute.xlu1 %2570 }
0x1eb4   :  { %2573 = vxpose.xlu0.b32.start.end [1/1] (short) (narrow) %v2571_v21, 32 }
0x1eba   :  { %v4239_v26 = vpop.eup %4238 }
0x1ebb   :  { %v2462_v27 = vmul.f32 %v4239_v26, %v4237_v19 }
0x1ebd   :  { %v2463_v51 = vpack.c.bf16 %v2462_v27, %v2462_v27 }
0x1ebf   :  { %4001 = vmatmul.mubr.msk.bf16.vlgmr.msra.gmra.mrb[48].mxu0 %vm220_vm3, %v2463_v51 }
0x1ec0   :  { %4006 = vmatprep.mubr.msk.bf16.mxu0 %vm4269_vm1, %v4268_v15  ;;  %4005 = vmatpush3.bf16.msra.mxu0 %v4837_v30 }
0x1ec1   :  { %4022 = vmatprep.subr.bf16.mxu0 %v4268_v15 }
0x1f34   :  { %v2589_v23 = vpop.trf.xlu0 }
0x1f38   :  { %v2590_v34 = vpop.trf.xlu0 }
0x1f39   :  { %v2605_v35 = vpack.c.bf16 %v2590_v34, %v2589_v23 }
0x1f3b   :  { %v2612_v37 = vsel %vm224_vm2, %v2605_v35, 0  ;;  %v2721_v38 = vrot.slane %v2605_v35, 4 }
0x1f3c   :  { %4011 = vmatpush3.bf16.msra.mxu1 %v2612_v37  ;;  %v2591_v5 = vpop.trf.xlu0 }
0x1f3d   :  { %4016 = vmatprep.subr.bf16.mxu1 %v4268_v15  ;;  %v2726_v47 = vsel %vm224_vm2, %v2721_v38, 0 }
0x1f3f   :  { %4013 = vmatmul.mubr.msk.bf16.vlgmr.msra.gmra.mrb[72].mxu1 %vm220_vm3, %v4821_v13 }
0x1f40   :  { %4018 = vmatprep.mubr.msk.bf16.mxu1 %vm4269_vm1, %v4268_v15  ;;  %v2592_v6 = vpop.trf.xlu0 }
0x1f41   :  { %v2606_v27 = vpack.c.bf16 %v2592_v6, %v2591_v5 }
0x1f43   :  { %v2923_v56 = vsel %vm224_vm2, %v2606_v27, 0 }
0x1f92   :  { %v2506_v40 = vpop.f32.mrb[48].mxu0 }
0x1f93   :  { %v2512_v42 = vpack.c.bf16 %v2506_v40, %v2506_v40  ;;  %v4002_v43 = vpop.f32.mrb[49].mxu0 }
0x1f94   :  { %v2509_v46 = vpop.f32.mrb[50].mxu0 }
0x1f95   :  { %v4003_v31 = vpop.f32.mrb[51].mxu0  ;;  %4007 = vmatmul.mubr.msk.bf16.vlgmr.msra.gmra.mrb[44].mxu0 %vm220_vm3, %v2512_v42 }
0x1f96   :  { %4023 = vmatpush3.bf16.msra.mxu0 %v2726_v47  ;;  %4024 = vmatprep.mubr.msk.bf16.mxu0 %vm4269_vm1, %v4268_v15 }
0x1f97   :  { %4034 = vmatprep.subr.bf16.mxu0 %v4268_v15 }
0x1f9d   :  { %4025 = vmatmul.mubr.msk.bf16.vlgmr.msra.gmra.mrb[52].mxu0 %vm220_vm3, %v2719_v29 }
0x1f9e   :  { %4035 = vmatpush3.bf16.msra.mxu0 %v4768_v25  ;;  %4036 = vmatprep.mubr.msk.bf16.mxu0 %vm4269_vm1, %v4268_v15 }
0x1f9f   :  { %4040 = vmatprep.subr.bf16.mxu0 %v4268_v15 }
0x2012   :  { %v2648_v48 = vpop.f32.mrb[72].mxu1 }
0x2013   :  { %v2654_v50 = vmul.f32 0.35355338, %v2648_v48  ;;  %v4014_v52 = vpop.f32.mrb[73].mxu1 }
0x2014   :  { %v2651_v53 = vpop.f32.mrb[74].mxu1 }
0x2015   :  { %v4015_v41 = vpop.f32.mrb[75].mxu1  ;;  %v2655_v54 = vadd.f32 %v4860_v49, %v2654_v50 }
0x2017   :  { %v2656_v55 = vsel %vm220_vm3, %v2655_v54, -inf }
0x2018   :  { %2657 = vmax.xlane.f32.xlu1 %v2656_v55 }
0x2068   :  { %v2554_v25 = vpop.f32.mrb[44].mxu0 }
0x2069   :  { %2561 = vst.msk [vmem:[#allocation2] sm:$0xff] %vm58_vm0, %v2554_v25  ;;  %v4008_v57 = vpop.f32.mrb[45].mxu0 }
0x206a   :  { %v2557_v58 = vpop.f32.mrb[46].mxu0 }
0x206b   :  { %v4009_v59 = vpop.f32.mrb[47].mxu0 }
0x2070   :  { %v2762_v60 = vpop.f32.mrb[52].mxu0 }
0x2071   :  { %v2768_v61 = vmul.f32 0.35355338, %v2762_v60  ;;  %v4026_v45 = vpop.f32.mrb[53].mxu0 }
0x2072   :  { %v2765_v62 = vpop.f32.mrb[54].mxu0  ;;  %v3075_v45 = vrot.slane %v2606_v27, 4 }
0x2073   :  { %v4027_v33 = vpop.f32.mrb[55].mxu0  ;;  %v2769_v63 = vadd.f32 %v4860_v49, %v2768_v61 }
0x2075   :  { %v2770_v0 = vsel %vm220_vm3, %v2769_v63, -inf }
0x2076   :  { %2771 = vmax.xlane.f32.xlu0 %v2770_v0 }
0x20a5   :  { %v2658_v9 = vpop.xlane.xlu1 %2657 }
0x20a6   :  { %v2659_v1 = vsub.f32 %v2655_v54, %v2658_v9 }
0x20a8   :  { %v2660_v2 = vmul.f32 1.442695, %v2659_v1 }
0x20aa   :  { %4240 = vpow2.f32 %v2660_v2 }
0x20b4   :  { %v4241_v3 = vpop.eup %4240 }
0x20b5   :  { %v2662_v4 = vsel %vm220_vm3, %v4241_v3, 0.0 }
0x20b6   :  { %2663 = vadd.xlane.f32.xlu1 %v2662_v4 }
0x20c7   :  { %2669 = vrot.lane.b32.xlu1 %v4821_v13, %s4272_s23 }
0x2103   :  { %v2772_v7 = vpop.xlane.xlu0 %2771 }
0x2104   :  { %v2773_v8 = vsub.f32 %v2769_v63, %v2772_v7  ;;  %v3080_v63 = vsel %vm224_vm2, %v3075_v45, 0 }
0x2106   :  { %v2774_v10 = vmul.f32 1.442695, %v2773_v8 }
0x2108   :  { %4242 = vpow2.f32 %v2774_v10 }
0x2112   :  { %v4243_v11 = vpop.eup %4242 }
0x2113   :  { %v2776_v12 = vsel %vm220_vm3, %v4243_v11, 0.0 }
0x2114   :  { %2777 = vadd.xlane.f32.xlu1 %v2776_v12 }
0x2125   :  { %2782 = vrot.lane.b32.xlu1 %v4821_v13, %s4273_s24 }
0x2129   :  { %2917 = vrot.lane.b32.xlu1 %v4821_v13, %s4274_s25 }
0x2143   :  { %v2664_v14 = vpop.xlane.xlu1 %2663 }
0x2144   :  { %4244 = vrcp.f32 %v2664_v14  ;;  %v3230_v14 = vld [vmem:[#allocation2] sm:$0xff] }
0x2147   :  { %v2670_v16 = vpop.permute.xlu1 %2669 }
0x2148   :  { %v2675_v17 = vsel %vm224_vm2, %v2670_v16, 0  ;;  %v3607_v16 = vld [vmem:[%s5006_s7 + $0x1] ss:$0 sm:$0xff] }
0x2149   :  { %4017 = vmatpush3.bf16.msra.mxu1 %v2675_v17  ;;  %v3240_v17 = vadd.f32 %v3607_v16, %v3230_v14 }
0x214a   :  { %4028 = vmatprep.subr.bf16.mxu1 %v4268_v15 }
0x214e   :  { %v4245_v18 = vpop.eup %4244 }
0x214f   :  { %v2666_v44 = vmul.f32 %v4245_v18, %v4241_v3  ;;  %v3242_v18 = vadd.f32 %v3240_v17, %v4699_v22 }
0x2151   :  { %v2667_v19 = vpack.c.bf16 %v2666_v44, %v2666_v44  ;;  %v3248_v44 = vsel %vm58_vm0, %v3242_v18, 0.0 }
0x2153   :  { %4019 = vmatmul.mubr.msk.bf16.vlgmr.msra.gmra.mrb[76].mxu1 %vm220_vm3, %v2667_v19 }
0x2154   :  { %4030 = vmatprep.mubr.msk.bf16.mxu1 %vm4269_vm1, %v4268_v15 }
0x21a1   :  { %v2778_v39 = vpop.xlane.xlu1 %2777 }
0x21a2   :  { %4246 = vrcp.f32 %v2778_v39 }
0x21a5   :  { %v2783_v20 = vpop.permute.xlu1 %2782 }
0x21a6   :  { %v2788_v21 = vsel %vm224_vm2, %v2783_v20, 0 }
0x21a7   :  { %4029 = vmatpush3.bf16.msra.mxu1 %v2788_v21 }
0x21a8   :  { %4046 = vmatprep.subr.bf16.mxu1 %v4268_v15 }
0x21a9   :  { %v2918_v29 = vpop.permute.xlu1 %2917 }
0x21ac   :  { %v4247_v26 = vpop.eup %4246 }
0x21ad   :  { %v2780_v51 = vmul.f32 %v4247_v26, %v4243_v11 }
0x21af   :  { %v2781_v28 = vpack.c.bf16 %v2780_v51, %v2780_v51 }
0x21b1   :  { %4031 = vmatmul.mubr.msk.bf16.vlgmr.msra.gmra.mrb[80].mxu1 %vm220_vm3, %v2781_v28 }
0x21b2   :  { %4047 = vmatpush3.bf16.msra.mxu1 %v2923_v56  ;;  %4048 = vmatprep.mubr.msk.bf16.mxu1 %vm4269_vm1, %v4268_v15 }
0x21b3   :  { %4052 = vmatprep.subr.bf16.mxu1 %v4268_v15 }
0x21b9   :  { %4049 = vmatmul.mubr.msk.bf16.vlgmr.msra.gmra.mrb[84].mxu1 %vm220_vm3, %v2918_v29 }
0x21ba   :  { %4054 = vmatprep.mubr.msk.bf16.mxu1 %vm4269_vm1, %v4268_v15 }
0x2226   :  { %v2711_v23 = vpop.f32.mrb[76].mxu1 }
0x2227   :  { %v4020_v34 = vpop.f32.mrb[77].mxu1  ;;  %v2717_v41 = vpack.c.bf16 %v2711_v23, %v2711_v23 }
0x2228   :  { %v2714_v35 = vpop.f32.mrb[78].mxu1 }
0x2229   :  { %v4021_v37 = vpop.f32.mrb[79].mxu1 }
0x2284   :  { %v2824_v38 = vpop.f32.mrb[80].mxu1 }
0x2285   :  { %v2830_v40 = vpack.c.bf16 %v2824_v38, %v2824_v38  ;;  %v4032_v42 = vpop.f32.mrb[81].mxu1 }
0x2286   :  { %v2827_v43 = vpop.f32.mrb[82].mxu1 }
0x2287   :  { %v4033_v46 = vpop.f32.mrb[83].mxu1  ;;  %4037 = vmatmul.mubr.msk.bf16.vlgmr.msra.gmra.mrb[56].mxu0 %vm220_vm3, %v2830_v40 }
0x2288   :  { %4041 = vmatpush3.bf16.msra.mxu0 %v4776_v36  ;;  %4042 = vmatprep.mubr.msk.bf16.mxu0 %vm4269_vm1, %v4268_v15 }
0x2289   :  { %4058 = vmatprep.subr.bf16.mxu0 %v4268_v15 }
0x228c   :  { %v2959_v31 = vpop.f32.mrb[84].mxu1 }
0x228d   :  { %v2965_v47 = vmul.f32 0.35355338, %v2959_v31  ;;  %v4050_v48 = vpop.f32.mrb[85].mxu1 }
0x228e   :  { %v2962_v50 = vpop.f32.mrb[86].mxu1 }
0x228f   :  { %v4051_v52 = vpop.f32.mrb[87].mxu1  ;;  %v2966_v53 = vadd.f32 %v4860_v49, %v2965_v47 }
0x2291   :  { %v2967_v54 = vsel %vm220_vm3, %v2966_v53, -inf }
0x2292   :  { %2968 = vmax.xlane.f32.xlu1 %v2967_v54 }
0x2293   :  { %4043 = vmatmul.mubr.msk.bf16.vlgmr.msra.gmra.mrb[56].mxu0 %vm220_vm3, %v2717_v41 }
0x2294   :  { %4059 = vmatpush3.bf16.msra.mxu0 %v4808_v32  ;;  %4060 = vmatprep.mubr.msk.bf16.mxu0 %vm4269_vm1, %v4268_v15 }
0x2295   :  { %4070 = vmatprep.subr.bf16.mxu0 %v4268_v15 }
0x231f   :  { %v2969_v36 = vpop.xlane.xlu1 %2968 }
0x2320   :  { %v2970_v55 = vsub.f32 %v2966_v53, %v2969_v36 }
0x2322   :  { %v2971_v25 = vmul.f32 1.442695, %v2970_v55 }
0x2324   :  { %4248 = vpow2.f32 %v2971_v25 }
0x232e   :  { %v4249_v57 = vpop.eup %4248 }
0x232f   :  { %v2973_v58 = vsel %vm220_vm3, %v4249_v57, 0.0 }
0x2330   :  { %2974 = vadd.xlane.f32.xlu0 %v2973_v58 }
0x2346   :  { %2979 = vrot.lane.b32.xlu0 %v4821_v13, %s4276_s0 }
0x234a   :  { %3072 = vrot.lane.b32.xlu0 %v4821_v13, %s4275_s30 }
0x23bd   :  { %v2975_v32 = vpop.xlane.xlu0 %2974 }
0x23be   :  { %4250 = vrcp.f32 %v2975_v32 }
0x23c1   :  { %v2980_v59 = vpop.permute.xlu0 %2979 }
0x23c2   :  { %v2985_v60 = vsel %vm224_vm2, %v2980_v59, 0 }
0x23c3   :  { %4053 = vmatpush3.bf16.msra.mxu1 %v2985_v60 }
0x23c4   :  { %4064 = vmatprep.subr.bf16.mxu1 %v4268_v15 }
0x23c5   :  { %v3073_v0 = vpop.permute.xlu0 %3072 }
0x23c8   :  { %v4251_v61 = vpop.eup %4250 }
0x23c9   :  { %v2977_v62 = vmul.f32 %v4251_v61, %v4249_v57  ;;  %v4170_v57 = vld [vmem:[%s5007_s10 + $0x10] sm:$0xff]  }
0x23cb   :  { %v2978_v33 = vpack.c.bf16 %v2977_v62, %v2977_v62 }
0x23cd   :  { %4055 = vmatmul.mubr.msk.bf16.vlgmr.msra.gmra.mrb[88].mxu1 %vm220_vm3, %v2978_v33 }
0x23ce   :  { %4065 = vmatpush3.bf16.msra.mxu1 %v3080_v63  ;;  %4066 = vmatprep.mubr.msk.bf16.mxu1 %vm4269_vm1, %v4268_v15  ;;  %v3610_v63 = vld [vmem:[%s5008_s8 + $0x1] ss:$0 sm:$0xff] }
0x23cf   :  { %4082 = vmatprep.subr.bf16.mxu1 %v4268_v15 }
0x23d5   :  { %4067 = vmatmul.mubr.msk.bf16.vlgmr.msra.gmra.mrb[92].mxu1 %vm220_vm3, %v3073_v0 }
0x23d6   :  { %4086 = vmatprep.mubr.msk.bf16.mxu1 %vm4269_vm1, %v4268_v15  ;;  %4083 = vmatpush3.bf16.msra.mxu1 %v4170_v57 }
0x23d7   :  { %4084 = vmatprep.subr.bf16.mxu1 %v4268_v15 }
0x24a0   :  { %v3021_v9 = vpop.f32.mrb[88].mxu1 }
0x24a1   :  { %v3027_v1 = vpack.c.bf16 %v3021_v9, %v3021_v9  ;;  %v4056_v2 = vpop.f32.mrb[89].mxu1 }
0x24a2   :  { %v3024_v3 = vpop.f32.mrb[90].mxu1  ;;  %v3611_v2 = vld [vmem:[%s5009_s9 + $0x1] ss:$0 sm:$0xff] }
0x24a3   :  { %v4057_v4 = vpop.f32.mrb[91].mxu1  ;;  %4061 = vmatmul.mubr.msk.bf16.vlgmr.msra.gmra.mrb[56].mxu0 %vm220_vm3, %v3027_v1 }
0x24a4   :  { %4072 = vmatprep.mubr.msk.bf16.mxu0 %vm4269_vm1, %v4268_v15 }
0x24a8   :  { %v3116_v5 = vpop.f32.mrb[92].mxu1 }
0x24a9   :  { %v3122_v6 = vmul.f32 0.35355338, %v3116_v5  ;;  %v4068_v7 = vpop.f32.mrb[93].mxu1 }
0x24aa   :  { %v3119_v8 = vpop.f32.mrb[94].mxu1  ;;  %v4172_v7 = vld [vmem:[%s5010_s12 + $0x20] sm:$0xff]  }
0x24ab   :  { %v4069_v10 = vpop.f32.mrb[95].mxu1  ;;  %v3123_v11 = vadd.f32 %v4860_v49, %v3122_v6  ;;  %v4173_v8 = vld [vmem:[%s5010_s12 + $0x28] sm:$0xff]  }
0x24ac   :  { %v4174_v10 = vld [vmem:[%s5010_s12 + $0x30] sm:$0xff]  }
0x24ad   :  { %v3124_v12 = vsel %vm220_vm3, %v3123_v11, -inf }
0x24ae   :  { %3125 = vmax.xlane.f32.xlu1 %v3124_v12  ;;  %v3617_v12 = vld [vmem:[%s5011_s11 + $0x1] ss:$0 sm:$0xff] }
0x24bf   :  { %3136 = vrot.lane.b32.xlu1 %v4821_v13, %s4277_s2 }
0x24e3   :  { %3249 = vadd.xlane.f32.xlu1 %v3248_v44 }
0x253b   :  { %v3126_v19 = vpop.xlane.xlu1 %3125 }
0x253c   :  { %v3127_v39 = vsub.f32 %v3123_v11, %v3126_v19  ;;  %v4175_v11 = vld [vmem:[%s5010_s12 + $0x38] sm:$0xff]  }
0x253e   :  { %v3128_v49 = vmul.f32 1.442695, %v3127_v39 }
0x253f   :  { %v3137_v20 = vpop.permute.xlu1 %3136 }
0x2540   :  { %4252 = vpow2.f32 %v3128_v49  ;;  %v3142_v21 = vsel %vm224_vm2, %v3137_v20, 0 }
0x2541   :  { %4071 = vmatpush3.bf16.msra.mxu0 %v3142_v21 }
0x2542   :  { %4076 = vmatprep.subr.bf16.mxu0 %v4268_v15 }
0x254a   :  { %v4253_v13 = vpop.eup %4252 }
0x254b   :  { %v3130_v26 = vsel %vm220_vm3, %v4253_v13, 0.0 }
0x254c   :  { %3131 = vadd.xlane.f32.xlu0 %v3130_v26 }
0x2570   :  { %v3250_v40 = vpop.xlane.xlu1 %3249 }
0x2571   :  { %v3254_v46 = vmul.f32 0.03125, %v3250_v40 }
0x25d9   :  { %v3132_v27 = vpop.xlane.xlu0 %3131 }
0x25da   :  { %4254 = vrcp.f32 %v3132_v27 }
0x25e4   :  { %v4255_v22 = vpop.eup %4254 }
0x25e5   :  { %v3134_v51 = vmul.f32 %v4255_v22, %v4253_v13 }
0x25e7   :  { %v3135_v28 = vpack.c.bf16 %v3134_v51, %v3134_v51 }
0x25e9   :  { %4073 = vmatmul.mubr.msk.bf16.vlgmr.msra.gmra.mrb[60].mxu0 %vm220_vm3, %v3135_v28 }
0x25ea   :  { %4077 = vmatpush3.bf16.msra.mxu0 %v4837_v30  ;;  %4078 = vmatprep.mubr.msk.bf16.mxu0 %vm4269_vm1, %v4268_v15  ;;  %v3256_v30 = vsub.f32 %v3242_v18, %v3254_v46 }
0x25ec   :  { %v3258_v52 = vmul.f32 %v3256_v30, %v3256_v30 }
0x25ee   :  { %v3260_v53 = vsel %vm58_vm0, %v3258_v52, 0.0 }
0x26bc   :  { %v3178_v56 = vpop.f32.mrb[60].mxu0 }
0x26bd   :  { %v3184_v29 = vpack.c.bf16 %v3178_v56, %v3178_v56  ;;  %v4074_v23 = vpop.f32.mrb[61].mxu0 }
0x26be   :  { %v3181_v34 = vpop.f32.mrb[62].mxu0 }
0x26bf   :  { %v4075_v35 = vpop.f32.mrb[63].mxu0  ;;  %4079 = vmatmul.mubr.msk.bf16.vlgmr.msra.gmra.mrb[56].mxu0 %vm220_vm3, %v3184_v29 }
0x2792   :  { %v3222_v37 = vpop.f32.mrb[56].mxu0 }
0x2793   :  { %3229 = vst.msk [vmem:[#allocation2 + $0x8] sm:$0xff] %vm58_vm0, %v3222_v37  ;;  %v4080_v38 = vpop.f32.mrb[57].mxu0 }
0x2794   :  { %v3225_v42 = vpop.f32.mrb[58].mxu0 }
0x2795   :  { %v4081_v43 = vpop.f32.mrb[59].mxu0  ;;  %v3630_v42 = vld [vmem:[%s5012_s13 + $0x1] ss:$0 sm:$0xff] }
0x279a   :  { %v3231_v31 = vld [vmem:[#allocation2 + $0x8] sm:$0xff] }
0x279b   :  { %v3241_v47 = vadd.f32 %v3607_v16, %v3231_v31 }
0x279d   :  { %v3243_v48 = vadd.f32 %v3241_v47, %v4701_v24  ;;  %v4171_v24 = vld [vmem:[%s5007_s10 + $0x18] sm:$0xff]  }
0x279e   :  { %4085 = vmatpush3.bf16.msra.mxu1 %v4171_v24 }
0x279f   :  { %v3251_v50 = vsel %vm58_vm0, %v3243_v48, 0.0  ;;  %4090 = vmatprep.subr.bf16.mxu1 %v4268_v15 }
0x27a0   :  { %3252 = vadd.xlane.f32.xlu0 %v3251_v50 }
0x27a4   :  { %3261 = vadd.xlane.f32.xlu0 %v3260_v53 }
0x282d   :  { %v3253_v41 = vpop.xlane.xlu0 %3252 }
0x282e   :  { %v3255_v54 = vmul.f32 0.03125, %v3253_v41 }
0x2830   :  { %v3257_v36 = vsub.f32 %v3243_v48, %v3255_v54 }
0x2831   :  { %v3262_v58 = vpop.xlane.xlu0 %3261 }
0x2832   :  { %v3259_v55 = vmul.f32 %v3257_v36, %v3257_v36  ;;  %v3266_v32 = vmul.f32 0.03125, %v3262_v58 }
0x2834   :  { %v3263_v25 = vsel %vm58_vm0, %v3259_v55, 0.0  ;;  %v3268_v59 = vadd.f32 1e-12, %v3266_v32 }
0x2835   :  { %3264 = vadd.xlane.f32.xlu0 %v3263_v25 }
0x2836   :  { %4256 = vrsqrt.f32 %v3268_v59 }
0x2840   :  { %v4257_v62 = vpop.eup %4256 }
0x2841   :  { %v3272_v33 = vmul.f32 %v4257_v62, %v3256_v30 }
0x2843   :  { %v3280_v9 = vmul.f32 %v3610_v63, %v3272_v33 }
0x2845   :  { %v3288_v4 = vadd.f32 %v3611_v2, %v3280_v9 }
0x28c2   :  { %v3265_v60 = vpop.xlane.xlu0 %3264 }
0x28c3   :  { %v3267_v61 = vmul.f32 0.03125, %v3265_v60 }
0x28c5   :  { %v3269_v45 = vadd.f32 1e-12, %v3267_v61 }
0x28c7   :  { %4258 = vrsqrt.f32 %v3269_v45 }
0x28d1   :  { %v4259_v0 = vpop.eup %4258 }
0x28d2   :  { %v3273_v1 = vmul.f32 %v4259_v0, %v3257_v36 }
0x28d4   :  { %v3281_v3 = vmul.f32 %v3610_v63, %v3273_v1  ;;  %v3638_v1 = vld [vmem:[%s5013_s14 + $0x1] ss:$0 sm:$0xff] }
0x28d6   :  { %v3289_v5 = vadd.f32 %v3611_v2, %v3281_v3  ;;  %v3639_v3 = vld [vmem:[%s5014_s15 + $0x1] ss:$0 sm:$0xff] }
0x28d8   :  { %v3290_v6 = vpack.c.bf16 %v3289_v5, %v3288_v4 }
0x28da   :  { %4087 = vmatmul.mubr.msk.bf16.vlgmr.msra.gmra.mrb[96].mxu1 %vm58_vm0, %v3290_v6 }
0x28db   :  { %4098 = vmatprep.mubr.msk.bf16.mxu1 %vm4269_vm1, %v4268_v15  ;;  %4091 = vmatpush3.bf16.msra.mxu1 %v4172_v7 }
0x28dc   :  { %4092 = vmatprep.subr.bf16.mxu1 %v4268_v15 }
0x28df   :  { %4093 = vmatpush3.bf16.msra.mxu1 %v4173_v8 }
0x28e0   :  { %4094 = vmatprep.subr.bf16.mxu1 %v4268_v15 }
0x28e3   :  { %4095 = vmatpush3.bf16.msra.mxu1 %v4174_v10 }
0x28e4   :  { %4096 = vmatprep.subr.bf16.mxu1 %v4268_v15 }
0x28e7   :  { %4097 = vmatpush3.bf16.msra.mxu1 %v4175_v11 }
0x29ad   :  { %v3353_v14 = vpop.f32.mrb[96].mxu1 }
0x29ae   :  { %v3354_v16 = vadd.f32 %v3617_v12, %v3353_v14  ;;  %v4088_v17 = vpop.f32.mrb[97].mxu1 }
0x29af   :  { %v3356_v18 = vpop.f32.mrb[98].mxu1 }
0x29b0   :  { %v3360_v44 = vmul.f32 %v3354_v16, %v3354_v16  ;;  %v3357_v19 = vadd.f32 %v3617_v12, %v3356_v18  ;;  %v4089_v39 = vpop.f32.mrb[99].mxu1 }
0x29b2   :  { %v3362_v49 = vmul.f32 %v3360_v44, %v3354_v16  ;;  %v3361_v20 = vmul.f32 %v3357_v19, %v3357_v19 }
0x29b4   :  { %v3364_v21 = vmul.f32 0.044715, %v3362_v49  ;;  %v3363_v15 = vmul.f32 %v3361_v20, %v3357_v19 }
0x29b6   :  { %v3366_v13 = vadd.f32 %v3364_v21, %v3354_v16  ;;  %v3365_v26 = vmul.f32 0.044715, %v3363_v15 }
0x29b8   :  { %v3368_v27 = vmul.f32 0.7978846, %v3366_v13  ;;  %v3367_v22 = vadd.f32 %v3365_v26, %v3357_v19 }
0x29ba   :  { %4260 = vtanh.f32 %v3368_v27  ;;  %v3369_v51 = vmul.f32 0.7978846, %v3367_v22 }
0x29bc   :  { %4262 = vtanh.f32 %v3369_v51 }
0x29c4   :  { %v4261_v28 = vpop.eup %4260 }
0x29c5   :  { %v3372_v56 = vadd.f32 1.0, %v4261_v28 }
0x29c6   :  { %v4263_v29 = vpop.eup %4262 }
0x29c7   :  { %v3374_v23 = vmul.f32 0.5, %v3372_v56  ;;  %v3373_v34 = vadd.f32 1.0, %v4263_v29 }
0x29c9   :  { %v3375_v35 = vmul.f32 0.5, %v3373_v34  ;;  %v3376_v37 = vmul.f32 %v3374_v23, %v3354_v16 }
0x29cb   :  { %v3377_v38 = vmul.f32 %v3375_v35, %v3357_v19 }
0x29cd   :  { %v3378_v40 = vpack.c.bf16 %v3377_v38, %v3376_v37 }
0x29cf   :  { %4099 = vmatmul.mubr.msk.bf16.vlgmr.msra.gmra.mrb[100].mxu1 %vm1712_vm4, %v3378_v40 }
0x2aa2   :  { %v3457_v43 = vpop.f32.mrb[100].mxu1 }
0x2aa3   :  { %v3458_v46 = vadd.f32 %v3630_v42, %v3457_v43  ;;  %v4100_v31 = vpop.f32.mrb[101].mxu1 }
0x2aa4   :  { %v3460_v30 = vpop.f32.mrb[102].mxu1 }
0x2aa5   :  { %v3464_v47 = vadd.f32 %v3458_v46, %v3288_v4  ;;  %v3461_v48 = vadd.f32 %v3630_v42, %v3460_v30  ;;  %v4101_v50 = vpop.f32.mrb[103].mxu1 }
0x2aa7   :  { %v3465_v52 = vadd.f32 %v3461_v48, %v3289_v5  ;;  %v3470_v53 = vsel %vm58_vm0, %v3464_v47, 0.0 }
0x2aa8   :  { %3471 = vadd.xlane.f32.xlu0 %v3470_v53 }
0x2aa9   :  { %v3473_v41 = vsel %vm58_vm0, %v3465_v52, 0.0 }
0x2aac   :  { %3474 = vadd.xlane.f32.xlu0 %v3473_v41 }
0x2b35   :  { %v3472_v54 = vpop.xlane.xlu0 %3471 }
0x2b36   :  { %v3476_v36 = vmul.f32 0.03125, %v3472_v54 }
0x2b38   :  { %v3478_v55 = vsub.f32 %v3464_v47, %v3476_v36 }
0x2b39   :  { %v3475_v25 = vpop.xlane.xlu0 %3474 }
0x2b3a   :  { %v3477_v57 = vmul.f32 0.03125, %v3475_v25  ;;  %v3480_v24 = vmul.f32 %v3478_v55, %v3478_v55 }
0x2b3c   :  { %v3479_v58 = vsub.f32 %v3465_v52, %v3477_v57  ;;  %v3482_v32 = vsel %vm58_vm0, %v3480_v24, 0.0 }
0x2b3d   :  { %3483 = vadd.xlane.f32.xlu0 %v3482_v32 }
0x2b3e   :  { %v3481_v59 = vmul.f32 %v3479_v58, %v3479_v58 }
0x2b40   :  { %v3485_v60 = vsel %vm58_vm0, %v3481_v59, 0.0 }
0x2b41   :  { %3486 = vadd.xlane.f32.xlu0 %v3485_v60 }
0x2bca   :  { %v3484_v61 = vpop.xlane.xlu0 %3483 }
0x2bcb   :  { %v3488_v45 = vmul.f32 0.03125, %v3484_v61 }
0x2bcd   :  { %v3490_v62 = vadd.f32 1e-12, %v3488_v45 }
0x2bce   :  { %v3487_v33 = vpop.xlane.xlu0 %3486 }
0x2bcf   :  { %4264 = vrsqrt.f32 %v3490_v62  ;;  %v3489_v63 = vmul.f32 0.03125, %v3487_v33 }
0x2bd1   :  { %v3491_v0 = vadd.f32 1e-12, %v3489_v63 }
0x2bd3   :  { %4266 = vrsqrt.f32 %v3491_v0 }
0x2bd9   :  { %v4265_v9 = vpop.eup %4264 }
0x2bda   :  { %v3494_v2 = vmul.f32 %v4265_v9, %v3478_v55 }
0x2bdc   :  { %v3502_v4 = vmul.f32 %v3638_v1, %v3494_v2 }
0x2bdd   :  { %v4267_v5 = vpop.eup %4266 }
0x2bde   :  { %v3510_v6 = vadd.f32 %v3639_v3, %v3502_v4  ;;  %v3495_v7 = vmul.f32 %v4267_v5, %v3479_v58 }
0x2be0   :  { %3512 = vst.msk [vmem:[%s5015_s16] sm:$0xff] %vm58_vm0, %v3510_v6  ;;  %v3503_v8 = vmul.f32 %v3638_v1, %v3495_v7 }
0x2be2   :  { %v3511_v10 = vadd.f32 %v3639_v3, %v3503_v8 }
0x2be4   :  { %3513 = vst.msk [vmem:[%s5015_s16 + $0x8] sm:$0xff] %vm58_vm0, %v3511_v10 }

</bundles_post_ra>
